<compile_context>
chip_gen: v7x
topology: tpu7x:2x2x1
jax: 0.10.0
libtpu: 0.0.40
codegen_flags: <defaults>
</compile_context>

<pallas_src>
import functools

import jax
import jax.numpy as jnp
import numpy as np
from jax.experimental import pallas as pl
from jax.experimental.pallas import tpu as pltpu


def _attn_kernel(mq_ref, mk_ref, x_ref, wqkv_ref, wproj_ref, bproj_ref,
                 o_ref, o_scr_ref, *, num_head: int, head_dim: int, exp_dtype):
    """One batch block per grid step: fused QKV proj, masked SDPA, out proj."""
    bb, N, D = x_ref.shape
    H, hd = num_head, head_dim

    # ---- fused QKV projection: bf16 MXU operands, f32 accumulation.
    # The softmax scale is already folded into the Q columns of Wqkv.
    x2 = x_ref[...].reshape(bb * N, D)
    qkv = jnp.dot(x2, wqkv_ref[...], preferred_element_type=jnp.float32)
    qkv = qkv.astype(jnp.bfloat16).reshape(bb, N, 3 * D)

    # ---- additive mask bias (f32), shared by every head: (bb, N, N).
    # disallowed[b, n, m] = node_mask[b, n] and (not node_mask[b, m])
    bias = mq_ref[...] * (1.0 - mk_ref[...]) * jnp.float32(-1e30)

    # ---- per-head attention (hd is tiny, heads statically unrolled).
    # TODO(synk): move heads onto a grid axis + flash-style query tiling for
    # production-size N/H (bounds live (N, N) intermediates per step).
    for h in range(H):
        qh = qkv[:, :, h * hd:(h + 1) * hd]
        kh = qkv[:, :, D + h * hd:D + (h + 1) * hd]
        vh = qkv[:, :, 2 * D + h * hd:2 * D + (h + 1) * hd]

        s = jnp.einsum('bnd,bmd->bnm', qh, kh,
                       preferred_element_type=jnp.float32)           # (bb,N,N)
        s = s + bias
        s = s - jnp.max(s, axis=-1, keepdims=True)
        # exp in bf16 on bf16-EUP chips; row-sum / reciprocal stay f32.
        e = jnp.exp(s.astype(exp_dtype)).astype(jnp.float32)
        p = e * pl.reciprocal(jnp.sum(e, axis=-1, keepdims=True), approx=True)
        oh = jnp.einsum('bnm,bmd->bnd', p.astype(jnp.bfloat16), vh,
                        preferred_element_type=jnp.float32)          # (bb,N,hd)
        # Stage this head's output in its lane slice of the bf16 scratch so the
        # output projection below is one full-width MXU matmul (no per-head
        # read-modify-write accumulation sweeps).
        o_scr_ref[:, :, h * hd:(h + 1) * hd] = oh.astype(jnp.bfloat16)

    # ---- single full-width output projection + bias.
    o_all = o_scr_ref[...].reshape(bb * N, D)
    y = jnp.dot(o_all, wproj_ref[...], preferred_element_type=jnp.float32)
    o_ref[...] = (y + bproj_ref[...]).reshape(bb, N, D).astype(o_ref.dtype)


def _device_kind() -> str:
    try:
        return jax.devices()[0].device_kind.lower()
    except Exception:
        return ""


def _vmem_capacity_bytes(kind: str) -> int:
    try:
        return int(pltpu.get_tpu_info().vmem_capacity_bytes)
    except Exception:
        return (64 << 20) if "v7" in kind else (128 << 20)


def attention_with_node_mask(x, node_mask, wqkv, wproj, bproj, *, num_head,
                             batch_block=None):
    """x: (B,N,D); node_mask: (B,N) bool; wqkv: (D,3D); wproj: (D,D); bproj: (D,)."""
    B, N, D = x.shape
    assert D % num_head == 0, 'dim should be divisible by num_head'
    H = num_head
    hd = D // H
    scale = float(hd) ** -0.5

    # --- generation-aware knobs -------------------------------------------
    kind = _device_kind()
    vmem_cap = _vmem_capacity_bytes(kind)
    # Chips with >1 TensorCore per device (v7x, v5p, v4) want >= 2 grid steps
    # so the "parallel" batch axis can shard across cores; single-TC chips
    # (v5e/v6e) prefer one big batch block to amortize per-step overhead.
    multi_tc = any(t in kind for t in ("v7", "v5p", "v4"))
    # bf16 EUP exists on v6e/v7x; keep f32 exp elsewhere (v5e has no bf16 EUP).
    exp_dtype = jnp.bfloat16 if ("v6" in kind or "v7" in kind) else jnp.float32
    vmem_limit = int(min(vmem_cap // 2, 64 << 20))          # 32 MiB on v7x
    ws_cap = (4 << 20) if vmem_cap < (96 << 20) else (20 << 20)

    # --- one-off weight prep: fold scale into Q columns, cast to bf16 ------
    wqkv_s = jnp.concatenate([wqkv[:, :D] * scale, wqkv[:, D:]],
                             axis=1).astype(jnp.bfloat16)             # (D, 3D)
    wproj_b = wproj.astype(jnp.bfloat16)                               # (D, D)
    bproj_b = bproj.reshape(1, D).astype(jnp.float32)

    x_bf = x.astype(jnp.bfloat16)
    mask_q = node_mask.astype(jnp.float32).reshape(B, N, 1)            # query side
    mask_k = node_mask.astype(jnp.float32).reshape(B, 1, N)            # key side

    # --- per-batch working-set estimate: f32 qkv + bf16 copy, f32 bias,
    #     ~2 heads of live (N,N) score/exp/prob chains, x/out/head buffers ---
    per_batch = (N * 3 * D * 6 + N * N * 4 + 2 * N * N * 10
                 + N * D * (2 + 2 + 4 + 4))
    if batch_block is None:
        max_bb = max(1, min(B, ws_cap // max(per_batch, 1)))
        batch_block = 1
        for cand in range(max_bb, 0, -1):
            if B % cand != 0:
                continue
            if multi_tc and B >= 2 and B // cand < 2:
                continue
            batch_block = cand
            break
    bb = batch_block
    assert B % bb == 0

    kernel = functools.partial(_attn_kernel, num_head=H, head_dim=hd,
                               exp_dtype=exp_dtype)
    out_dtype = x.dtype

    def build(single_buffer_weights: bool):
        if single_buffer_weights:
            def w_spec(shape):
                return pl.BlockSpec(shape, lambda b: (0, 0),
                                    pipeline_mode=pl.Buffered(1))
        else:
            def w_spec(shape):
                return pl.BlockSpec(shape, lambda b: (0, 0))
        return pl.pallas_call(
            kernel,
            out_shape=jax.ShapeDtypeStruct((B, N, D), out_dtype),
            grid=(B // bb,),
            in_specs=[
                pl.BlockSpec((bb, N, 1), lambda b: (b, 0, 0)),     # mask (query)
                pl.BlockSpec((bb, 1, N), lambda b: (b, 0, 0)),     # mask (key)
                pl.BlockSpec((bb, N, D), lambda b: (b, 0, 0)),     # x (bf16)
                w_spec((D, 3 * D)),                                # Wqkv (bf16)
                w_spec((D, D)),                                    # Wproj (bf16)
                w_spec((1, D)),                                    # bproj (f32)
            ],
            out_specs=pl.BlockSpec((bb, N, D), lambda b: (b, 0, 0)),
            scratch_shapes=[pltpu.VMEM((bb, N, D), jnp.bfloat16)],
            compiler_params=pltpu.CompilerParams(
                dimension_semantics=("parallel",),
                vmem_limit_bytes=vmem_limit),
        )

    args = (mask_q, mask_k, x_bf, wqkv_s, wproj_b, bproj_b)
    try:
        # Constant-index weight blocks only need a single VMEM buffer.
        return build(True)(*args)
    except Exception:
        # Fallback: installed JAX rejects pipeline_mode here -> default buffering.
        return build(False)(*args)


def reference(x, node_mask, wqkv, wproj, bproj, *, num_head):
    """Pure-JAX (f32) reproduction of the PyTorch forward for verification."""
    B, N, D = x.shape
    hd = D // num_head
    qkv = x @ wqkv
    qkv = qkv.reshape(B, N, 3, num_head, hd).transpose(2, 0, 3, 1, 4)
    q, k, v = qkv[0], qkv[1], qkv[2]                                   # (B,H,N,hd)
    pair = node_mask[:, None, :, None] & node_mask[:, None, None, :]
    pair = jnp.broadcast_to(pair, (B, num_head, N, N))
    row_ok = jnp.sum(pair, axis=-1, keepdims=True) > 0
    pair = jnp.where(row_ok, pair, True)
    s = jnp.einsum('bhnd,bhmd->bhnm', q, k) * (hd ** -0.5)
    s = jnp.where(pair, s, -jnp.inf)
    p = jax.nn.softmax(s, axis=-1)
    o = jnp.einsum('bhnm,bhmd->bhnd', p, v)
    o = o.transpose(0, 2, 1, 3).reshape(B, N, D)
    return o @ wproj + bproj[None, None, :]


if __name__ == "__main__":
    B, N, D, H = 2, 16, 64, 8

    key = jax.random.PRNGKey(0)
    kx, kq, kp, kb = jax.random.split(key, 4)

    x = jax.random.normal(kx, (B, N, D), dtype=jnp.float32)
    # Deterministic node mask: batch 0 keeps 12 nodes, batch 1 keeps 10.
    node_mask = jnp.stack([
        jnp.arange(N) < 12,
        jnp.arange(N) < 10,
    ]).astype(jnp.bool_)

    wqkv = 0.05 * jax.random.normal(kq, (D, 3 * D), dtype=jnp.float32)
    wproj = 0.05 * jax.random.normal(kp, (D, D), dtype=jnp.float32)
    bproj = 0.05 * jax.random.normal(kb, (D,), dtype=jnp.float32)

    out = attention_with_node_mask(x, node_mask, wqkv, wproj, bproj, num_head=H)
    out = jax.block_until_ready(out)

    ref = reference(x, node_mask, wqkv, wproj, bproj, num_head=H)
    # Kernel uses bf16 MXU operands (f32 accumulation / softmax statistics),
    # so compare against the f32 reference with a bf16-level tolerance.
    np.testing.assert_allclose(np.asarray(out), np.asarray(ref),
                               rtol=2e-2, atol=2e-2)

    print("KERNEL_OK")
</pallas_src>

<mosaic_0001>
module attributes {stable_mosaic.version = 11 : i64} {
  func.func @_attn_kernel(%arg0: i32, %arg1: memref<2x16x1xf32, #tpu.memory_space<vmem>>, %arg2: memref<2x1x16xf32, #tpu.memory_space<vmem>>, %arg3: memref<2x16x64xbf16, #tpu.memory_space<vmem>>, %arg4: memref<64x192xbf16, #tpu.memory_space<vmem>>, %arg5: memref<64x64xbf16, #tpu.memory_space<vmem>>, %arg6: memref<1x64xf32, #tpu.memory_space<vmem>>, %arg7: memref<2x16x64xf32, #tpu.memory_space<vmem>>, %arg8: memref<2x16x64xbf16, #tpu.memory_space<vmem>>) attributes {dimension_semantics = [#tpu.dimension_semantics<parallel>], iteration_bounds = array<i64: 1>, scalar_prefetch = 0 : i64, scratch_operands = 1 : i64, tpu.core_type = #tpu.core_type<tc>, window_params = [{transform_indices = @transform_0, window_bounds = array<i64: 2, 16, 1>}, {transform_indices = @transform_1, window_bounds = array<i64: 2, 1, 16>}, {transform_indices = @transform_2, window_bounds = array<i64: 2, 16, 64>}, {pipeline_mode = #tpu.pipeline_mode<synchronous>, transform_indices = @transform_3, window_bounds = array<i64: 64, 192>}, {pipeline_mode = #tpu.pipeline_mode<synchronous>, transform_indices = @transform_4, window_bounds = array<i64: 64, 64>}, {pipeline_mode = #tpu.pipeline_mode<synchronous>, transform_indices = @transform_5, window_bounds = array<i64: 1, 64>}, {transform_indices = @transform_6, window_bounds = array<i64: 2, 16, 64>}]} {
    %c0 = arith.constant 0 : index
    %c0_0 = arith.constant 0 : index
    %c0_1 = arith.constant 0 : index
    %0 = vector.load %arg3[%c0, %c0_0, %c0_1] : memref<2x16x64xbf16, #tpu.memory_space<vmem>>, vector<2x16x64xbf16>
    %1 = vector.shape_cast %0 : vector<2x16x64xbf16> to vector<32x64xbf16>
    %c0_2 = arith.constant 0 : index
    %c0_3 = arith.constant 0 : index
    %2 = vector.load %arg4[%c0_2, %c0_3] : memref<64x192xbf16, #tpu.memory_space<vmem>>, vector<64x192xbf16>
    %cst = arith.constant dense<0.000000e+00> : vector<32x192xf32>
    %3 = tpu.matmul %1, %2, %cst {dimension_numbers = #tpu.dot_dimension_numbers<[1], [0], [0], [1], [0, 0, 1, 1], [], []>} : vector<32x64xbf16>, vector<64x192xbf16>, vector<32x192xf32> -> vector<32x192xf32>
    %4 = arith.truncf %3 : vector<32x192xf32> to vector<32x192xbf16>
    %5 = vector.shape_cast %4 : vector<32x192xbf16> to vector<2x16x192xbf16>
    %c0_4 = arith.constant 0 : index
    %c0_5 = arith.constant 0 : index
    %c0_6 = arith.constant 0 : index
    %6 = vector.load %arg1[%c0_4, %c0_5, %c0_6] : memref<2x16x1xf32, #tpu.memory_space<vmem>>, vector<2x16x1xf32>
    %c0_7 = arith.constant 0 : index
    %c0_8 = arith.constant 0 : index
    %c0_9 = arith.constant 0 : index
    %7 = vector.load %arg2[%c0_7, %c0_8, %c0_9] : memref<2x1x16xf32, #tpu.memory_space<vmem>>, vector<2x1x16xf32>
    %cst_10 = arith.constant 1.000000e+00 : f32
    %8 = vector.broadcast %cst_10 : f32 to vector<2x1x16xf32>
    %9 = arith.subf %8, %7 : vector<2x1x16xf32>
    %10 = vector.broadcast %6 : vector<2x16x1xf32> to vector<2x16x16xf32>
    %11 = vector.broadcast %9 : vector<2x1x16xf32> to vector<2x16x16xf32>
    %12 = arith.mulf %10, %11 : vector<2x16x16xf32>
    %cst_11 = arith.constant -1.000000e+30 : f32
    %13 = vector.broadcast %cst_11 : f32 to vector<2x16x16xf32>
    %14 = arith.mulf %12, %13 : vector<2x16x16xf32>
    %15 = vector.extract_strided_slice %5 {offsets = [0, 0, 0], sizes = [2, 16, 8], strides = [1, 1, 1]} : vector<2x16x192xbf16> to vector<2x16x8xbf16>
    %16 = vector.extract_strided_slice %5 {offsets = [0, 0, 64], sizes = [2, 16, 8], strides = [1, 1, 1]} : vector<2x16x192xbf16> to vector<2x16x8xbf16>
    %17 = vector.extract_strided_slice %5 {offsets = [0, 0, 128], sizes = [2, 16, 8], strides = [1, 1, 1]} : vector<2x16x192xbf16> to vector<2x16x8xbf16>
    "tpu.trace_start"() <{level = 10 : i32, message = "bnd,bmd->bnm"}> : () -> ()
    %cst_12 = arith.constant dense<0.000000e+00> : vector<2x16x16xf32>
    %18 = tpu.matmul %15, %16, %cst_12 {dimension_numbers = #tpu.dot_dimension_numbers<[2], [2], [1], [1], [0, 0, 0, 1, 1, 1], [0], [0]>} : vector<2x16x8xbf16>, vector<2x16x8xbf16>, vector<2x16x16xf32> -> vector<2x16x16xf32>
    "tpu.trace_stop"() : () -> ()
    %19 = arith.addf %18, %14 : vector<2x16x16xf32>
    %cst_13 = arith.constant dense<0xFF800000> : vector<2x16xf32>
    %20 = vector.multi_reduction <maximumf>, %19, %cst_13 [2] : vector<2x16x16xf32> to vector<2x16xf32>
    %21 = vector.shape_cast %20 : vector<2x16xf32> to vector<2x16x1xf32>
    %22 = vector.broadcast %21 : vector<2x16x1xf32> to vector<2x16x16xf32>
    %23 = arith.subf %19, %22 : vector<2x16x16xf32>
    %24 = math.exp %23 : vector<2x16x16xf32>
    %cst_14 = arith.constant dense<0.000000e+00> : vector<2x16xf32>
    %25 = vector.multi_reduction <add>, %24, %cst_14 [2] : vector<2x16x16xf32> to vector<2x16xf32>
    %26 = vector.shape_cast %25 : vector<2x16xf32> to vector<2x16x1xf32>
    %27 = tpu.reciprocal %26 {approx = true} : vector<2x16x1xf32> -> vector<2x16x1xf32>
    %28 = vector.broadcast %27 : vector<2x16x1xf32> to vector<2x16x16xf32>
    %29 = arith.mulf %24, %28 : vector<2x16x16xf32>
    %30 = arith.truncf %29 : vector<2x16x16xf32> to vector<2x16x16xbf16>
    "tpu.trace_start"() <{level = 10 : i32, message = "bnm,bmd->bnd"}> : () -> ()
    %cst_15 = arith.constant dense<0.000000e+00> : vector<2x16x8xf32>
    %31 = tpu.matmul %30, %17, %cst_15 {dimension_numbers = #tpu.dot_dimension_numbers<[2], [1], [1], [2], [0, 0, 0, 1, 1, 2], [0], [0]>} : vector<2x16x16xbf16>, vector<2x16x8xbf16>, vector<2x16x8xf32> -> vector<2x16x8xf32>
    "tpu.trace_stop"() : () -> ()
    %32 = arith.truncf %31 : vector<2x16x8xf32> to vector<2x16x8xbf16>
    %c0_16 = arith.constant 0 : index
    %c0_17 = arith.constant 0 : index
    %c0_18 = arith.constant 0 : index
    %33 = vector.load %arg8[%c0_16, %c0_17, %c0_18] : memref<2x16x64xbf16, #tpu.memory_space<vmem>>, vector<2x16x8xbf16>
    tpu.vector_store %arg8[%c0_16, %c0_17, %c0_18], %32 {strides = array<i32>} : memref<2x16x64xbf16, #tpu.memory_space<vmem>>, vector<2x16x8xbf16>,
    %34 = vector.extract_strided_slice %5 {offsets = [0, 0, 8], sizes = [2, 16, 8], strides = [1, 1, 1]} : vector<2x16x192xbf16> to vector<2x16x8xbf16>
    %35 = vector.extract_strided_slice %5 {offsets = [0, 0, 72], sizes = [2, 16, 8], strides = [1, 1, 1]} : vector<2x16x192xbf16> to vector<2x16x8xbf16>
    %36 = vector.extract_strided_slice %5 {offsets = [0, 0, 136], sizes = [2, 16, 8], strides = [1, 1, 1]} : vector<2x16x192xbf16> to vector<2x16x8xbf16>
    "tpu.trace_start"() <{level = 10 : i32, message = "bnd,bmd->bnm"}> : () -> ()
    %cst_19 = arith.constant dense<0.000000e+00> : vector<2x16x16xf32>
    %37 = tpu.matmul %34, %35, %cst_19 {dimension_numbers = #tpu.dot_dimension_numbers<[2], [2], [1], [1], [0, 0, 0, 1, 1, 1], [0], [0]>} : vector<2x16x8xbf16>, vector<2x16x8xbf16>, vector<2x16x16xf32> -> vector<2x16x16xf32>
    "tpu.trace_stop"() : () -> ()
    %38 = arith.addf %37, %14 : vector<2x16x16xf32>
    %cst_20 = arith.constant dense<0xFF800000> : vector<2x16xf32>
    %39 = vector.multi_reduction <maximumf>, %38, %cst_20 [2] : vector<2x16x16xf32> to vector<2x16xf32>
    %40 = vector.shape_cast %39 : vector<2x16xf32> to vector<2x16x1xf32>
    %41 = vector.broadcast %40 : vector<2x16x1xf32> to vector<2x16x16xf32>
    %42 = arith.subf %38, %41 : vector<2x16x16xf32>
    %43 = math.exp %42 : vector<2x16x16xf32>
    %cst_21 = arith.constant dense<0.000000e+00> : vector<2x16xf32>
    %44 = vector.multi_reduction <add>, %43, %cst_21 [2] : vector<2x16x16xf32> to vector<2x16xf32>
    %45 = vector.shape_cast %44 : vector<2x16xf32> to vector<2x16x1xf32>
    %46 = tpu.reciprocal %45 {approx = true} : vector<2x16x1xf32> -> vector<2x16x1xf32>
    %47 = vector.broadcast %46 : vector<2x16x1xf32> to vector<2x16x16xf32>
    %48 = arith.mulf %43, %47 : vector<2x16x16xf32>
    %49 = arith.truncf %48 : vector<2x16x16xf32> to vector<2x16x16xbf16>
    "tpu.trace_start"() <{level = 10 : i32, message = "bnm,bmd->bnd"}> : () -> ()
    %cst_22 = arith.constant dense<0.000000e+00> : vector<2x16x8xf32>
    %50 = tpu.matmul %49, %36, %cst_22 {dimension_numbers = #tpu.dot_dimension_numbers<[2], [1], [1], [2], [0, 0, 0, 1, 1, 2], [0], [0]>} : vector<2x16x16xbf16>, vector<2x16x8xbf16>, vector<2x16x8xf32> -> vector<2x16x8xf32>
    "tpu.trace_stop"() : () -> ()
    %51 = arith.truncf %50 : vector<2x16x8xf32> to vector<2x16x8xbf16>
    %c0_23 = arith.constant 0 : index
    %c0_24 = arith.constant 0 : index
    %c8 = arith.constant 8 : index
    %52 = vector.load %arg8[%c0_23, %c0_24, %c8] : memref<2x16x64xbf16, #tpu.memory_space<vmem>>, vector<2x16x8xbf16>
    tpu.vector_store %arg8[%c0_23, %c0_24, %c8], %51 {strides = array<i32>} : memref<2x16x64xbf16, #tpu.memory_space<vmem>>, vector<2x16x8xbf16>,
    %53 = vector.extract_strided_slice %5 {offsets = [0, 0, 16], sizes = [2, 16, 8], strides = [1, 1, 1]} : vector<2x16x192xbf16> to vector<2x16x8xbf16>
    %54 = vector.extract_strided_slice %5 {offsets = [0, 0, 80], sizes = [2, 16, 8], strides = [1, 1, 1]} : vector<2x16x192xbf16> to vector<2x16x8xbf16>
    %55 = vector.extract_strided_slice %5 {offsets = [0, 0, 144], sizes = [2, 16, 8], strides = [1, 1, 1]} : vector<2x16x192xbf16> to vector<2x16x8xbf16>
    "tpu.trace_start"() <{level = 10 : i32, message = "bnd,bmd->bnm"}> : () -> ()
    %cst_25 = arith.constant dense<0.000000e+00> : vector<2x16x16xf32>
    %56 = tpu.matmul %53, %54, %cst_25 {dimension_numbers = #tpu.dot_dimension_numbers<[2], [2], [1], [1], [0, 0, 0, 1, 1, 1], [0], [0]>} : vector<2x16x8xbf16>, vector<2x16x8xbf16>, vector<2x16x16xf32> -> vector<2x16x16xf32>
    "tpu.trace_stop"() : () -> ()
    %57 = arith.addf %56, %14 : vector<2x16x16xf32>
    %cst_26 = arith.constant dense<0xFF800000> : vector<2x16xf32>
    %58 = vector.multi_reduction <maximumf>, %57, %cst_26 [2] : vector<2x16x16xf32> to vector<2x16xf32>
    %59 = vector.shape_cast %58 : vector<2x16xf32> to vector<2x16x1xf32>
    %60 = vector.broadcast %59 : vector<2x16x1xf32> to vector<2x16x16xf32>
    %61 = arith.subf %57, %60 : vector<2x16x16xf32>
    %62 = math.exp %61 : vector<2x16x16xf32>
    %cst_27 = arith.constant dense<0.000000e+00> : vector<2x16xf32>
    %63 = vector.multi_reduction <add>, %62, %cst_27 [2] : vector<2x16x16xf32> to vector<2x16xf32>
    %64 = vector.shape_cast %63 : vector<2x16xf32> to vector<2x16x1xf32>
    %65 = tpu.reciprocal %64 {approx = true} : vector<2x16x1xf32> -> vector<2x16x1xf32>
    %66 = vector.broadcast %65 : vector<2x16x1xf32> to vector<2x16x16xf32>
    %67 = arith.mulf %62, %66 : vector<2x16x16xf32>
    %68 = arith.truncf %67 : vector<2x16x16xf32> to vector<2x16x16xbf16>
    "tpu.trace_start"() <{level = 10 : i32, message = "bnm,bmd->bnd"}> : () -> ()
    %cst_28 = arith.constant dense<0.000000e+00> : vector<2x16x8xf32>
    %69 = tpu.matmul %68, %55, %cst_28 {dimension_numbers = #tpu.dot_dimension_numbers<[2], [1], [1], [2], [0, 0, 0, 1, 1, 2], [0], [0]>} : vector<2x16x16xbf16>, vector<2x16x8xbf16>, vector<2x16x8xf32> -> vector<2x16x8xf32>
    "tpu.trace_stop"() : () -> ()
    %70 = arith.truncf %69 : vector<2x16x8xf32> to vector<2x16x8xbf16>
    %c0_29 = arith.constant 0 : index
    %c0_30 = arith.constant 0 : index
    %c16 = arith.constant 16 : index
    %71 = vector.load %arg8[%c0_29, %c0_30, %c16] : memref<2x16x64xbf16, #tpu.memory_space<vmem>>, vector<2x16x8xbf16>
    tpu.vector_store %arg8[%c0_29, %c0_30, %c16], %70 {strides = array<i32>} : memref<2x16x64xbf16, #tpu.memory_space<vmem>>, vector<2x16x8xbf16>,
    %72 = vector.extract_strided_slice %5 {offsets = [0, 0, 24], sizes = [2, 16, 8], strides = [1, 1, 1]} : vector<2x16x192xbf16> to vector<2x16x8xbf16>
    %73 = vector.extract_strided_slice %5 {offsets = [0, 0, 88], sizes = [2, 16, 8], strides = [1, 1, 1]} : vector<2x16x192xbf16> to vector<2x16x8xbf16>
    %74 = vector.extract_strided_slice %5 {offsets = [0, 0, 152], sizes = [2, 16, 8], strides = [1, 1, 1]} : vector<2x16x192xbf16> to vector<2x16x8xbf16>
    "tpu.trace_start"() <{level = 10 : i32, message = "bnd,bmd->bnm"}> : () -> ()
    %cst_31 = arith.constant dense<0.000000e+00> : vector<2x16x16xf32>
    %75 = tpu.matmul %72, %73, %cst_31 {dimension_numbers = #tpu.dot_dimension_numbers<[2], [2], [1], [1], [0, 0, 0, 1, 1, 1], [0], [0]>} : vector<2x16x8xbf16>, vector<2x16x8xbf16>, vector<2x16x16xf32> -> vector<2x16x16xf32>
    "tpu.trace_stop"() : () -> ()
    %76 = arith.addf %75, %14 : vector<2x16x16xf32>
    %cst_32 = arith.constant dense<0xFF800000> : vector<2x16xf32>
    %77 = vector.multi_reduction <maximumf>, %76, %cst_32 [2] : vector<2x16x16xf32> to vector<2x16xf32>
    %78 = vector.shape_cast %77 : vector<2x16xf32> to vector<2x16x1xf32>
    %79 = vector.broadcast %78 : vector<2x16x1xf32> to vector<2x16x16xf32>
    %80 = arith.subf %76, %79 : vector<2x16x16xf32>
    %81 = math.exp %80 : vector<2x16x16xf32>
    %cst_33 = arith.constant dense<0.000000e+00> : vector<2x16xf32>
    %82 = vector.multi_reduction <add>, %81, %cst_33 [2] : vector<2x16x16xf32> to vector<2x16xf32>
    %83 = vector.shape_cast %82 : vector<2x16xf32> to vector<2x16x1xf32>
    %84 = tpu.reciprocal %83 {approx = true} : vector<2x16x1xf32> -> vector<2x16x1xf32>
    %85 = vector.broadcast %84 : vector<2x16x1xf32> to vector<2x16x16xf32>
    %86 = arith.mulf %81, %85 : vector<2x16x16xf32>
    %87 = arith.truncf %86 : vector<2x16x16xf32> to vector<2x16x16xbf16>
    "tpu.trace_start"() <{level = 10 : i32, message = "bnm,bmd->bnd"}> : () -> ()
    %cst_34 = arith.constant dense<0.000000e+00> : vector<2x16x8xf32>
    %88 = tpu.matmul %87, %74, %cst_34 {dimension_numbers = #tpu.dot_dimension_numbers<[2], [1], [1], [2], [0, 0, 0, 1, 1, 2], [0], [0]>} : vector<2x16x16xbf16>, vector<2x16x8xbf16>, vector<2x16x8xf32> -> vector<2x16x8xf32>
    "tpu.trace_stop"() : () -> ()
    %89 = arith.truncf %88 : vector<2x16x8xf32> to vector<2x16x8xbf16>
    %c0_35 = arith.constant 0 : index
    %c0_36 = arith.constant 0 : index
    %c24 = arith.constant 24 : index
    %90 = vector.load %arg8[%c0_35, %c0_36, %c24] : memref<2x16x64xbf16, #tpu.memory_space<vmem>>, vector<2x16x8xbf16>
    tpu.vector_store %arg8[%c0_35, %c0_36, %c24], %89 {strides = array<i32>} : memref<2x16x64xbf16, #tpu.memory_space<vmem>>, vector<2x16x8xbf16>,
    %91 = vector.extract_strided_slice %5 {offsets = [0, 0, 32], sizes = [2, 16, 8], strides = [1, 1, 1]} : vector<2x16x192xbf16> to vector<2x16x8xbf16>
    %92 = vector.extract_strided_slice %5 {offsets = [0, 0, 96], sizes = [2, 16, 8], strides = [1, 1, 1]} : vector<2x16x192xbf16> to vector<2x16x8xbf16>
    %93 = vector.extract_strided_slice %5 {offsets = [0, 0, 160], sizes = [2, 16, 8], strides = [1, 1, 1]} : vector<2x16x192xbf16> to vector<2x16x8xbf16>
    "tpu.trace_start"() <{level = 10 : i32, message = "bnd,bmd->bnm"}> : () -> ()
    %cst_37 = arith.constant dense<0.000000e+00> : vector<2x16x16xf32>
    %94 = tpu.matmul %91, %92, %cst_37 {dimension_numbers = #tpu.dot_dimension_numbers<[2], [2], [1], [1], [0, 0, 0, 1, 1, 1], [0], [0]>} : vector<2x16x8xbf16>, vector<2x16x8xbf16>, vector<2x16x16xf32> -> vector<2x16x16xf32>
    "tpu.trace_stop"() : () -> ()
    %95 = arith.addf %94, %14 : vector<2x16x16xf32>
    %cst_38 = arith.constant dense<0xFF800000> : vector<2x16xf32>
    %96 = vector.multi_reduction <maximumf>, %95, %cst_38 [2] : vector<2x16x16xf32> to vector<2x16xf32>
    %97 = vector.shape_cast %96 : vector<2x16xf32> to vector<2x16x1xf32>
    %98 = vector.broadcast %97 : vector<2x16x1xf32> to vector<2x16x16xf32>
    %99 = arith.subf %95, %98 : vector<2x16x16xf32>
    %100 = math.exp %99 : vector<2x16x16xf32>
    %cst_39 = arith.constant dense<0.000000e+00> : vector<2x16xf32>
    %101 = vector.multi_reduction <add>, %100, %cst_39 [2] : vector<2x16x16xf32> to vector<2x16xf32>
    %102 = vector.shape_cast %101 : vector<2x16xf32> to vector<2x16x1xf32>
    %103 = tpu.reciprocal %102 {approx = true} : vector<2x16x1xf32> -> vector<2x16x1xf32>
    %104 = vector.broadcast %103 : vector<2x16x1xf32> to vector<2x16x16xf32>
    %105 = arith.mulf %100, %104 : vector<2x16x16xf32>
    %106 = arith.truncf %105 : vector<2x16x16xf32> to vector<2x16x16xbf16>
    "tpu.trace_start"() <{level = 10 : i32, message = "bnm,bmd->bnd"}> : () -> ()
    %cst_40 = arith.constant dense<0.000000e+00> : vector<2x16x8xf32>
    %107 = tpu.matmul %106, %93, %cst_40 {dimension_numbers = #tpu.dot_dimension_numbers<[2], [1], [1], [2], [0, 0, 0, 1, 1, 2], [0], [0]>} : vector<2x16x16xbf16>, vector<2x16x8xbf16>, vector<2x16x8xf32> -> vector<2x16x8xf32>
    "tpu.trace_stop"() : () -> ()
    %108 = arith.truncf %107 : vector<2x16x8xf32> to vector<2x16x8xbf16>
    %c0_41 = arith.constant 0 : index
    %c0_42 = arith.constant 0 : index
    %c32 = arith.constant 32 : index
    %109 = vector.load %arg8[%c0_41, %c0_42, %c32] : memref<2x16x64xbf16, #tpu.memory_space<vmem>>, vector<2x16x8xbf16>
    tpu.vector_store %arg8[%c0_41, %c0_42, %c32], %108 {strides = array<i32>} : memref<2x16x64xbf16, #tpu.memory_space<vmem>>, vector<2x16x8xbf16>,
    %110 = vector.extract_strided_slice %5 {offsets = [0, 0, 40], sizes = [2, 16, 8], strides = [1, 1, 1]} : vector<2x16x192xbf16> to vector<2x16x8xbf16>
    %111 = vector.extract_strided_slice %5 {offsets = [0, 0, 104], sizes = [2, 16, 8], strides = [1, 1, 1]} : vector<2x16x192xbf16> to vector<2x16x8xbf16>
    %112 = vector.extract_strided_slice %5 {offsets = [0, 0, 168], sizes = [2, 16, 8], strides = [1, 1, 1]} : vector<2x16x192xbf16> to vector<2x16x8xbf16>
    "tpu.trace_start"() <{level = 10 : i32, message = "bnd,bmd->bnm"}> : () -> ()
    %cst_43 = arith.constant dense<0.000000e+00> : vector<2x16x16xf32>
    %113 = tpu.matmul %110, %111, %cst_43 {dimension_numbers = #tpu.dot_dimension_numbers<[2], [2], [1], [1], [0, 0, 0, 1, 1, 1], [0], [0]>} : vector<2x16x8xbf16>, vector<2x16x8xbf16>, vector<2x16x16xf32> -> vector<2x16x16xf32>
    "tpu.trace_stop"() : () -> ()
    %114 = arith.addf %113, %14 : vector<2x16x16xf32>
    %cst_44 = arith.constant dense<0xFF800000> : vector<2x16xf32>
    %115 = vector.multi_reduction <maximumf>, %114, %cst_44 [2] : vector<2x16x16xf32> to vector<2x16xf32>
    %116 = vector.shape_cast %115 : vector<2x16xf32> to vector<2x16x1xf32>
    %117 = vector.broadcast %116 : vector<2x16x1xf32> to vector<2x16x16xf32>
    %118 = arith.subf %114, %117 : vector<2x16x16xf32>
    %119 = math.exp %118 : vector<2x16x16xf32>
    %cst_45 = arith.constant dense<0.000000e+00> : vector<2x16xf32>
    %120 = vector.multi_reduction <add>, %119, %cst_45 [2] : vector<2x16x16xf32> to vector<2x16xf32>
    %121 = vector.shape_cast %120 : vector<2x16xf32> to vector<2x16x1xf32>
    %122 = tpu.reciprocal %121 {approx = true} : vector<2x16x1xf32> -> vector<2x16x1xf32>
    %123 = vector.broadcast %122 : vector<2x16x1xf32> to vector<2x16x16xf32>
    %124 = arith.mulf %119, %123 : vector<2x16x16xf32>
    %125 = arith.truncf %124 : vector<2x16x16xf32> to vector<2x16x16xbf16>
    "tpu.trace_start"() <{level = 10 : i32, message = "bnm,bmd->bnd"}> : () -> ()
    %cst_46 = arith.constant dense<0.000000e+00> : vector<2x16x8xf32>
    %126 = tpu.matmul %125, %112, %cst_46 {dimension_numbers = #tpu.dot_dimension_numbers<[2], [1], [1], [2], [0, 0, 0, 1, 1, 2], [0], [0]>} : vector<2x16x16xbf16>, vector<2x16x8xbf16>, vector<2x16x8xf32> -> vector<2x16x8xf32>
    "tpu.trace_stop"() : () -> ()
    %127 = arith.truncf %126 : vector<2x16x8xf32> to vector<2x16x8xbf16>
    %c0_47 = arith.constant 0 : index
    %c0_48 = arith.constant 0 : index
    %c40 = arith.constant 40 : index
    %128 = vector.load %arg8[%c0_47, %c0_48, %c40] : memref<2x16x64xbf16, #tpu.memory_space<vmem>>, vector<2x16x8xbf16>
    tpu.vector_store %arg8[%c0_47, %c0_48, %c40], %127 {strides = array<i32>} : memref<2x16x64xbf16, #tpu.memory_space<vmem>>, vector<2x16x8xbf16>,
    %129 = vector.extract_strided_slice %5 {offsets = [0, 0, 48], sizes = [2, 16, 8], strides = [1, 1, 1]} : vector<2x16x192xbf16> to vector<2x16x8xbf16>
    %130 = vector.extract_strided_slice %5 {offsets = [0, 0, 112], sizes = [2, 16, 8], strides = [1, 1, 1]} : vector<2x16x192xbf16> to vector<2x16x8xbf16>
    %131 = vector.extract_strided_slice %5 {offsets = [0, 0, 176], sizes = [2, 16, 8], strides = [1, 1, 1]} : vector<2x16x192xbf16> to vector<2x16x8xbf16>
    "tpu.trace_start"() <{level = 10 : i32, message = "bnd,bmd->bnm"}> : () -> ()
    %cst_49 = arith.constant dense<0.000000e+00> : vector<2x16x16xf32>
    %132 = tpu.matmul %129, %130, %cst_49 {dimension_numbers = #tpu.dot_dimension_numbers<[2], [2], [1], [1], [0, 0, 0, 1, 1, 1], [0], [0]>} : vector<2x16x8xbf16>, vector<2x16x8xbf16>, vector<2x16x16xf32> -> vector<2x16x16xf32>
    "tpu.trace_stop"() : () -> ()
    %133 = arith.addf %132, %14 : vector<2x16x16xf32>
    %cst_50 = arith.constant dense<0xFF800000> : vector<2x16xf32>
    %134 = vector.multi_reduction <maximumf>, %133, %cst_50 [2] : vector<2x16x16xf32> to vector<2x16xf32>
    %135 = vector.shape_cast %134 : vector<2x16xf32> to vector<2x16x1xf32>
    %136 = vector.broadcast %135 : vector<2x16x1xf32> to vector<2x16x16xf32>
    %137 = arith.subf %133, %136 : vector<2x16x16xf32>
    %138 = math.exp %137 : vector<2x16x16xf32>
    %cst_51 = arith.constant dense<0.000000e+00> : vector<2x16xf32>
    %139 = vector.multi_reduction <add>, %138, %cst_51 [2] : vector<2x16x16xf32> to vector<2x16xf32>
    %140 = vector.shape_cast %139 : vector<2x16xf32> to vector<2x16x1xf32>
    %141 = tpu.reciprocal %140 {approx = true} : vector<2x16x1xf32> -> vector<2x16x1xf32>
    %142 = vector.broadcast %141 : vector<2x16x1xf32> to vector<2x16x16xf32>
    %143 = arith.mulf %138, %142 : vector<2x16x16xf32>
    %144 = arith.truncf %143 : vector<2x16x16xf32> to vector<2x16x16xbf16>
    "tpu.trace_start"() <{level = 10 : i32, message = "bnm,bmd->bnd"}> : () -> ()
    %cst_52 = arith.constant dense<0.000000e+00> : vector<2x16x8xf32>
    %145 = tpu.matmul %144, %131, %cst_52 {dimension_numbers = #tpu.dot_dimension_numbers<[2], [1], [1], [2], [0, 0, 0, 1, 1, 2], [0], [0]>} : vector<2x16x16xbf16>, vector<2x16x8xbf16>, vector<2x16x8xf32> -> vector<2x16x8xf32>
    "tpu.trace_stop"() : () -> ()
    %146 = arith.truncf %145 : vector<2x16x8xf32> to vector<2x16x8xbf16>
    %c0_53 = arith.constant 0 : index
    %c0_54 = arith.constant 0 : index
    %c48 = arith.constant 48 : index
    %147 = vector.load %arg8[%c0_53, %c0_54, %c48] : memref<2x16x64xbf16, #tpu.memory_space<vmem>>, vector<2x16x8xbf16>
    tpu.vector_store %arg8[%c0_53, %c0_54, %c48], %146 {strides = array<i32>} : memref<2x16x64xbf16, #tpu.memory_space<vmem>>, vector<2x16x8xbf16>,
    %148 = vector.extract_strided_slice %5 {offsets = [0, 0, 56], sizes = [2, 16, 8], strides = [1, 1, 1]} : vector<2x16x192xbf16> to vector<2x16x8xbf16>
    %149 = vector.extract_strided_slice %5 {offsets = [0, 0, 120], sizes = [2, 16, 8], strides = [1, 1, 1]} : vector<2x16x192xbf16> to vector<2x16x8xbf16>
    %150 = vector.extract_strided_slice %5 {offsets = [0, 0, 184], sizes = [2, 16, 8], strides = [1, 1, 1]} : vector<2x16x192xbf16> to vector<2x16x8xbf16>
    "tpu.trace_start"() <{level = 10 : i32, message = "bnd,bmd->bnm"}> : () -> ()
    %cst_55 = arith.constant dense<0.000000e+00> : vector<2x16x16xf32>
    %151 = tpu.matmul %148, %149, %cst_55 {dimension_numbers = #tpu.dot_dimension_numbers<[2], [2], [1], [1], [0, 0, 0, 1, 1, 1], [0], [0]>} : vector<2x16x8xbf16>, vector<2x16x8xbf16>, vector<2x16x16xf32> -> vector<2x16x16xf32>
    "tpu.trace_stop"() : () -> ()
    %152 = arith.addf %151, %14 : vector<2x16x16xf32>
    %cst_56 = arith.constant dense<0xFF800000> : vector<2x16xf32>
    %153 = vector.multi_reduction <maximumf>, %152, %cst_56 [2] : vector<2x16x16xf32> to vector<2x16xf32>
    %154 = vector.shape_cast %153 : vector<2x16xf32> to vector<2x16x1xf32>
    %155 = vector.broadcast %154 : vector<2x16x1xf32> to vector<2x16x16xf32>
    %156 = arith.subf %152, %155 : vector<2x16x16xf32>
    %157 = math.exp %156 : vector<2x16x16xf32>
    %cst_57 = arith.constant dense<0.000000e+00> : vector<2x16xf32>
    %158 = vector.multi_reduction <add>, %157, %cst_57 [2] : vector<2x16x16xf32> to vector<2x16xf32>
    %159 = vector.shape_cast %158 : vector<2x16xf32> to vector<2x16x1xf32>
    %160 = tpu.reciprocal %159 {approx = true} : vector<2x16x1xf32> -> vector<2x16x1xf32>
    %161 = vector.broadcast %160 : vector<2x16x1xf32> to vector<2x16x16xf32>
    %162 = arith.mulf %157, %161 : vector<2x16x16xf32>
    %163 = arith.truncf %162 : vector<2x16x16xf32> to vector<2x16x16xbf16>
    "tpu.trace_start"() <{level = 10 : i32, message = "bnm,bmd->bnd"}> : () -> ()
    %cst_58 = arith.constant dense<0.000000e+00> : vector<2x16x8xf32>
    %164 = tpu.matmul %163, %150, %cst_58 {dimension_numbers = #tpu.dot_dimension_numbers<[2], [1], [1], [2], [0, 0, 0, 1, 1, 2], [0], [0]>} : vector<2x16x16xbf16>, vector<2x16x8xbf16>, vector<2x16x8xf32> -> vector<2x16x8xf32>
    "tpu.trace_stop"() : () -> ()
    %165 = arith.truncf %164 : vector<2x16x8xf32> to vector<2x16x8xbf16>
    %c0_59 = arith.constant 0 : index
    %c0_60 = arith.constant 0 : index
    %c56 = arith.constant 56 : index
    %166 = vector.load %arg8[%c0_59, %c0_60, %c56] : memref<2x16x64xbf16, #tpu.memory_space<vmem>>, vector<2x16x8xbf16>
    tpu.vector_store %arg8[%c0_59, %c0_60, %c56], %165 {strides = array<i32>} : memref<2x16x64xbf16, #tpu.memory_space<vmem>>, vector<2x16x8xbf16>,
    %c0_61 = arith.constant 0 : index
    %c0_62 = arith.constant 0 : index
    %c0_63 = arith.constant 0 : index
    %167 = vector.load %arg8[%c0_61, %c0_62, %c0_63] : memref<2x16x64xbf16, #tpu.memory_space<vmem>>, vector<2x16x64xbf16>
    %168 = vector.shape_cast %167 : vector<2x16x64xbf16> to vector<32x64xbf16>
    %c0_64 = arith.constant 0 : index
    %c0_65 = arith.constant 0 : index
    %169 = vector.load %arg5[%c0_64, %c0_65] : memref<64x64xbf16, #tpu.memory_space<vmem>>, vector<64x64xbf16>
    %cst_66 = arith.constant dense<0.000000e+00> : vector<32x64xf32>
    %170 = tpu.matmul %168, %169, %cst_66 {dimension_numbers = #tpu.dot_dimension_numbers<[1], [0], [0], [1], [0, 0, 1, 1], [], []>} : vector<32x64xbf16>, vector<64x64xbf16>, vector<32x64xf32> -> vector<32x64xf32>
    %c0_67 = arith.constant 0 : index
    %c0_68 = arith.constant 0 : index
    %171 = vector.load %arg6[%c0_67, %c0_68] : memref<1x64xf32, #tpu.memory_space<vmem>>, vector<1x64xf32>
    %172 = vector.broadcast %171 : vector<1x64xf32> to vector<32x64xf32>
    %173 = arith.addf %170, %172 : vector<32x64xf32>
    %174 = vector.shape_cast %173 : vector<32x64xf32> to vector<2x16x64xf32>
    %c0_69 = arith.constant 0 : index
    %c0_70 = arith.constant 0 : index
    %c0_71 = arith.constant 0 : index
    %175 = vector.load %arg7[%c0_69, %c0_70, %c0_71] : memref<2x16x64xf32, #tpu.memory_space<vmem>>, vector<2x16x64xf32>
    tpu.vector_store %arg7[%c0_69, %c0_70, %c0_71], %174 {strides = array<i32>} : memref<2x16x64xf32, #tpu.memory_space<vmem>>, vector<2x16x64xf32>,
    return
  }
  func.func @transform_0(%arg0: i32) -> (i32, i32, i32) {
    %c0_i32 = arith.constant 0 : i32
    %c0_i32_0 = arith.constant 0 : i32
    %c0_i32_1 = arith.constant 0 : i32
    return %arg0, %c0_i32, %c0_i32_0 : i32, i32, i32
  }
  func.func @transform_1(%arg0: i32) -> (i32, i32, i32) {
    %c0_i32 = arith.constant 0 : i32
    %c0_i32_0 = arith.constant 0 : i32
    %c0_i32_1 = arith.constant 0 : i32
    return %arg0, %c0_i32, %c0_i32_0 : i32, i32, i32
  }
  func.func @transform_2(%arg0: i32) -> (i32, i32, i32) {
    %c0_i32 = arith.constant 0 : i32
    %c0_i32_0 = arith.constant 0 : i32
    %c0_i32_1 = arith.constant 0 : i32
    return %arg0, %c0_i32, %c0_i32_0 : i32, i32, i32
  }
  func.func @transform_3(%arg0: i32) -> (i32, i32) {
    %c0_i32 = arith.constant 0 : i32
    %c0_i32_0 = arith.constant 0 : i32
    %c0_i32_1 = arith.constant 0 : i32
    return %c0_i32, %c0_i32_0 : i32, i32
  }
  func.func @transform_4(%arg0: i32) -> (i32, i32) {
    %c0_i32 = arith.constant 0 : i32
    %c0_i32_0 = arith.constant 0 : i32
    %c0_i32_1 = arith.constant 0 : i32
    return %c0_i32, %c0_i32_0 : i32, i32
  }
  func.func @transform_5(%arg0: i32) -> (i32, i32) {
    %c0_i32 = arith.constant 0 : i32
    %c0_i32_0 = arith.constant 0 : i32
    %c0_i32_1 = arith.constant 0 : i32
    return %c0_i32, %c0_i32_0 : i32, i32
  }
  func.func @transform_6(%arg0: i32) -> (i32, i32, i32) {
    %c0_i32 = arith.constant 0 : i32
    %c0_i32_0 = arith.constant 0 : i32
    %c0_i32_1 = arith.constant 0 : i32
    return %arg0, %c0_i32, %c0_i32_0 : i32, i32, i32
  }
}

module attributes {stable_mosaic.version = 11 : i64} {
  func.func @_attn_kernel(%arg0: i32, %arg1: memref<2x16x1xf32, #tpu.memory_space<vmem>>, %arg2: memref<2x1x16xf32, #tpu.memory_space<vmem>>, %arg3: memref<2x16x64xbf16, #tpu.memory_space<vmem>>, %arg4: memref<64x192xbf16, #tpu.memory_space<vmem>>, %arg5: memref<64x64xbf16, #tpu.memory_space<vmem>>, %arg6: memref<1x64xf32, #tpu.memory_space<vmem>>, %arg7: memref<2x16x64xf32, #tpu.memory_space<vmem>>, %arg8: memref<2x16x64xbf16, #tpu.memory_space<vmem>>) attributes {dimension_semantics = [#tpu.dimension_semantics<parallel>], iteration_bounds = array<i64: 1>, scalar_prefetch = 0 : i64, scratch_operands = 1 : i64, tpu.core_type = #tpu.core_type<tc>, window_params = [{transform_indices = @transform_0, window_bounds = array<i64: 2, 16, 1>}, {transform_indices = @transform_1, window_bounds = array<i64: 2, 1, 16>}, {transform_indices = @transform_2, window_bounds = array<i64: 2, 16, 64>}, {pipeline_mode = #tpu.pipeline_mode<synchronous>, transform_indices = @transform_3, window_bounds = array<i64: 64, 192>}, {pipeline_mode = #tpu.pipeline_mode<synchronous>, transform_indices = @transform_4, window_bounds = array<i64: 64, 64>}, {pipeline_mode = #tpu.pipeline_mode<synchronous>, transform_indices = @transform_5, window_bounds = array<i64: 1, 64>}, {transform_indices = @transform_6, window_bounds = array<i64: 2, 16, 64>}]} {
    %c0 = arith.constant 0 : index
    %c0_0 = arith.constant 0 : index
    %c0_1 = arith.constant 0 : index
    %0 = vector.load %arg3[%c0, %c0_0, %c0_1] : memref<2x16x64xbf16, #tpu.memory_space<vmem>>, vector<2x16x64xbf16>
    %1 = vector.shape_cast %0 : vector<2x16x64xbf16> to vector<32x64xbf16>
    %c0_2 = arith.constant 0 : index
    %c0_3 = arith.constant 0 : index
    %2 = vector.load %arg4[%c0_2, %c0_3] : memref<64x192xbf16, #tpu.memory_space<vmem>>, vector<64x192xbf16>
    %cst = arith.constant dense<0.000000e+00> : vector<32x192xf32>
    %3 = tpu.matmul %1, %2, %cst {dimension_numbers = #tpu.dot_dimension_numbers<[1], [0], [0], [1], [0, 0, 1, 1], [], []>} : vector<32x64xbf16>, vector<64x192xbf16>, vector<32x192xf32> -> vector<32x192xf32>
    %4 = arith.truncf %3 : vector<32x192xf32> to vector<32x192xbf16>
    %5 = vector.shape_cast %4 : vector<32x192xbf16> to vector<2x16x192xbf16>
    %c0_4 = arith.constant 0 : index
    %c0_5 = arith.constant 0 : index
    %c0_6 = arith.constant 0 : index
    %6 = vector.load %arg1[%c0_4, %c0_5, %c0_6] : memref<2x16x1xf32, #tpu.memory_space<vmem>>, vector<2x16x1xf32>
    %c0_7 = arith.constant 0 : index
    %c0_8 = arith.constant 0 : index
    %c0_9 = arith.constant 0 : index
    %7 = vector.load %arg2[%c0_7, %c0_8, %c0_9] : memref<2x1x16xf32, #tpu.memory_space<vmem>>, vector<2x1x16xf32>
    %cst_10 = arith.constant 1.000000e+00 : f32
    %8 = vector.broadcast %cst_10 : f32 to vector<2x1x16xf32>
    %9 = arith.subf %8, %7 : vector<2x1x16xf32>
    %10 = vector.broadcast %6 : vector<2x16x1xf32> to vector<2x16x16xf32>
    %11 = vector.broadcast %9 : vector<2x1x16xf32> to vector<2x16x16xf32>
    %12 = arith.mulf %10, %11 : vector<2x16x16xf32>
    %cst_11 = arith.constant -1.000000e+30 : f32
    %13 = vector.broadcast %cst_11 : f32 to vector<2x16x16xf32>
    %14 = arith.mulf %12, %13 : vector<2x16x16xf32>
    %15 = vector.extract_strided_slice %5 {offsets = [0, 0, 0], sizes = [2, 16, 8], strides = [1, 1, 1]} : vector<2x16x192xbf16> to vector<2x16x8xbf16>
    %16 = vector.extract_strided_slice %5 {offsets = [0, 0, 64], sizes = [2, 16, 8], strides = [1, 1, 1]} : vector<2x16x192xbf16> to vector<2x16x8xbf16>
    %17 = vector.extract_strided_slice %5 {offsets = [0, 0, 128], sizes = [2, 16, 8], strides = [1, 1, 1]} : vector<2x16x192xbf16> to vector<2x16x8xbf16>
    "tpu.trace_start"() <{level = 10 : i32, message = "bnd,bmd->bnm"}> : () -> ()
    %cst_12 = arith.constant dense<0.000000e+00> : vector<2x16x16xf32>
    %18 = tpu.matmul %15, %16, %cst_12 {dimension_numbers = #tpu.dot_dimension_numbers<[2], [2], [1], [1], [0, 0, 0, 1, 1, 1], [0], [0]>} : vector<2x16x8xbf16>, vector<2x16x8xbf16>, vector<2x16x16xf32> -> vector<2x16x16xf32>
    "tpu.trace_stop"() : () -> ()
    %19 = arith.addf %18, %14 : vector<2x16x16xf32>
    %cst_13 = arith.constant dense<0xFF800000> : vector<2x16xf32>
    %20 = vector.multi_reduction <maximumf>, %19, %cst_13 [2] : vector<2x16x16xf32> to vector<2x16xf32>
    %21 = vector.shape_cast %20 : vector<2x16xf32> to vector<2x16x1xf32>
    %22 = vector.broadcast %21 : vector<2x16x1xf32> to vector<2x16x16xf32>
    %23 = arith.subf %19, %22 : vector<2x16x16xf32>
    %24 = math.exp %23 : vector<2x16x16xf32>
    %cst_14 = arith.constant dense<0.000000e+00> : vector<2x16xf32>
    %25 = vector.multi_reduction <add>, %24, %cst_14 [2] : vector<2x16x16xf32> to vector<2x16xf32>
    %26 = vector.shape_cast %25 : vector<2x16xf32> to vector<2x16x1xf32>
    %27 = tpu.reciprocal %26 {approx = true} : vector<2x16x1xf32> -> vector<2x16x1xf32>
    %28 = vector.broadcast %27 : vector<2x16x1xf32> to vector<2x16x16xf32>
    %29 = arith.mulf %24, %28 : vector<2x16x16xf32>
    %30 = arith.truncf %29 : vector<2x16x16xf32> to vector<2x16x16xbf16>
    "tpu.trace_start"() <{level = 10 : i32, message = "bnm,bmd->bnd"}> : () -> ()
    %cst_15 = arith.constant dense<0.000000e+00> : vector<2x16x8xf32>
    %31 = tpu.matmul %30, %17, %cst_15 {dimension_numbers = #tpu.dot_dimension_numbers<[2], [1], [1], [2], [0, 0, 0, 1, 1, 2], [0], [0]>} : vector<2x16x16xbf16>, vector<2x16x8xbf16>, vector<2x16x8xf32> -> vector<2x16x8xf32>
    "tpu.trace_stop"() : () -> ()
    %32 = arith.truncf %31 : vector<2x16x8xf32> to vector<2x16x8xbf16>
    %c0_16 = arith.constant 0 : index
    %c0_17 = arith.constant 0 : index
    %c0_18 = arith.constant 0 : index
    %33 = vector.load %arg8[%c0_16, %c0_17, %c0_18] : memref<2x16x64xbf16, #tpu.memory_space<vmem>>, vector<2x16x8xbf16>
    tpu.vector_store %arg8[%c0_16, %c0_17, %c0_18], %32 {strides = array<i32>} : memref<2x16x64xbf16, #tpu.memory_space<vmem>>, vector<2x16x8xbf16>,
    %34 = vector.extract_strided_slice %5 {offsets = [0, 0, 8], sizes = [2, 16, 8], strides = [1, 1, 1]} : vector<2x16x192xbf16> to vector<2x16x8xbf16>
    %35 = vector.extract_strided_slice %5 {offsets = [0, 0, 72], sizes = [2, 16, 8], strides = [1, 1, 1]} : vector<2x16x192xbf16> to vector<2x16x8xbf16>
    %36 = vector.extract_strided_slice %5 {offsets = [0, 0, 136], sizes = [2, 16, 8], strides = [1, 1, 1]} : vector<2x16x192xbf16> to vector<2x16x8xbf16>
    "tpu.trace_start"() <{level = 10 : i32, message = "bnd,bmd->bnm"}> : () -> ()
    %cst_19 = arith.constant dense<0.000000e+00> : vector<2x16x16xf32>
    %37 = tpu.matmul %34, %35, %cst_19 {dimension_numbers = #tpu.dot_dimension_numbers<[2], [2], [1], [1], [0, 0, 0, 1, 1, 1], [0], [0]>} : vector<2x16x8xbf16>, vector<2x16x8xbf16>, vector<2x16x16xf32> -> vector<2x16x16xf32>
    "tpu.trace_stop"() : () -> ()
    %38 = arith.addf %37, %14 : vector<2x16x16xf32>
    %cst_20 = arith.constant dense<0xFF800000> : vector<2x16xf32>
    %39 = vector.multi_reduction <maximumf>, %38, %cst_20 [2] : vector<2x16x16xf32> to vector<2x16xf32>
    %40 = vector.shape_cast %39 : vector<2x16xf32> to vector<2x16x1xf32>
    %41 = vector.broadcast %40 : vector<2x16x1xf32> to vector<2x16x16xf32>
    %42 = arith.subf %38, %41 : vector<2x16x16xf32>
    %43 = math.exp %42 : vector<2x16x16xf32>
    %cst_21 = arith.constant dense<0.000000e+00> : vector<2x16xf32>
    %44 = vector.multi_reduction <add>, %43, %cst_21 [2] : vector<2x16x16xf32> to vector<2x16xf32>
    %45 = vector.shape_cast %44 : vector<2x16xf32> to vector<2x16x1xf32>
    %46 = tpu.reciprocal %45 {approx = true} : vector<2x16x1xf32> -> vector<2x16x1xf32>
    %47 = vector.broadcast %46 : vector<2x16x1xf32> to vector<2x16x16xf32>
    %48 = arith.mulf %43, %47 : vector<2x16x16xf32>
    %49 = arith.truncf %48 : vector<2x16x16xf32> to vector<2x16x16xbf16>
    "tpu.trace_start"() <{level = 10 : i32, message = "bnm,bmd->bnd"}> : () -> ()
    %cst_22 = arith.constant dense<0.000000e+00> : vector<2x16x8xf32>
    %50 = tpu.matmul %49, %36, %cst_22 {dimension_numbers = #tpu.dot_dimension_numbers<[2], [1], [1], [2], [0, 0, 0, 1, 1, 2], [0], [0]>} : vector<2x16x16xbf16>, vector<2x16x8xbf16>, vector<2x16x8xf32> -> vector<2x16x8xf32>
    "tpu.trace_stop"() : () -> ()
    %51 = arith.truncf %50 : vector<2x16x8xf32> to vector<2x16x8xbf16>
    %c0_23 = arith.constant 0 : index
    %c0_24 = arith.constant 0 : index
    %c8 = arith.constant 8 : index
    %52 = vector.load %arg8[%c0_23, %c0_24, %c8] : memref<2x16x64xbf16, #tpu.memory_space<vmem>>, vector<2x16x8xbf16>
    tpu.vector_store %arg8[%c0_23, %c0_24, %c8], %51 {strides = array<i32>} : memref<2x16x64xbf16, #tpu.memory_space<vmem>>, vector<2x16x8xbf16>,
    %53 = vector.extract_strided_slice %5 {offsets = [0, 0, 16], sizes = [2, 16, 8], strides = [1, 1, 1]} : vector<2x16x192xbf16> to vector<2x16x8xbf16>
    %54 = vector.extract_strided_slice %5 {offsets = [0, 0, 80], sizes = [2, 16, 8], strides = [1, 1, 1]} : vector<2x16x192xbf16> to vector<2x16x8xbf16>
    %55 = vector.extract_strided_slice %5 {offsets = [0, 0, 144], sizes = [2, 16, 8], strides = [1, 1, 1]} : vector<2x16x192xbf16> to vector<2x16x8xbf16>
    "tpu.trace_start"() <{level = 10 : i32, message = "bnd,bmd->bnm"}> : () -> ()
    %cst_25 = arith.constant dense<0.000000e+00> : vector<2x16x16xf32>
    %56 = tpu.matmul %53, %54, %cst_25 {dimension_numbers = #tpu.dot_dimension_numbers<[2], [2], [1], [1], [0, 0, 0, 1, 1, 1], [0], [0]>} : vector<2x16x8xbf16>, vector<2x16x8xbf16>, vector<2x16x16xf32> -> vector<2x16x16xf32>
    "tpu.trace_stop"() : () -> ()
    %57 = arith.addf %56, %14 : vector<2x16x16xf32>
    %cst_26 = arith.constant dense<0xFF800000> : vector<2x16xf32>
    %58 = vector.multi_reduction <maximumf>, %57, %cst_26 [2] : vector<2x16x16xf32> to vector<2x16xf32>
    %59 = vector.shape_cast %58 : vector<2x16xf32> to vector<2x16x1xf32>
    %60 = vector.broadcast %59 : vector<2x16x1xf32> to vector<2x16x16xf32>
    %61 = arith.subf %57, %60 : vector<2x16x16xf32>
    %62 = math.exp %61 : vector<2x16x16xf32>
    %cst_27 = arith.constant dense<0.000000e+00> : vector<2x16xf32>
    %63 = vector.multi_reduction <add>, %62, %cst_27 [2] : vector<2x16x16xf32> to vector<2x16xf32>
    %64 = vector.shape_cast %63 : vector<2x16xf32> to vector<2x16x1xf32>
    %65 = tpu.reciprocal %64 {approx = true} : vector<2x16x1xf32> -> vector<2x16x1xf32>
    %66 = vector.broadcast %65 : vector<2x16x1xf32> to vector<2x16x16xf32>
    %67 = arith.mulf %62, %66 : vector<2x16x16xf32>
    %68 = arith.truncf %67 : vector<2x16x16xf32> to vector<2x16x16xbf16>
    "tpu.trace_start"() <{level = 10 : i32, message = "bnm,bmd->bnd"}> : () -> ()
    %cst_28 = arith.constant dense<0.000000e+00> : vector<2x16x8xf32>
    %69 = tpu.matmul %68, %55, %cst_28 {dimension_numbers = #tpu.dot_dimension_numbers<[2], [1], [1], [2], [0, 0, 0, 1, 1, 2], [0], [0]>} : vector<2x16x16xbf16>, vector<2x16x8xbf16>, vector<2x16x8xf32> -> vector<2x16x8xf32>
    "tpu.trace_stop"() : () -> ()
    %70 = arith.truncf %69 : vector<2x16x8xf32> to vector<2x16x8xbf16>
    %c0_29 = arith.constant 0 : index
    %c0_30 = arith.constant 0 : index
    %c16 = arith.constant 16 : index
    %71 = vector.load %arg8[%c0_29, %c0_30, %c16] : memref<2x16x64xbf16, #tpu.memory_space<vmem>>, vector<2x16x8xbf16>
    tpu.vector_store %arg8[%c0_29, %c0_30, %c16], %70 {strides = array<i32>} : memref<2x16x64xbf16, #tpu.memory_space<vmem>>, vector<2x16x8xbf16>,
    %72 = vector.extract_strided_slice %5 {offsets = [0, 0, 24], sizes = [2, 16, 8], strides = [1, 1, 1]} : vector<2x16x192xbf16> to vector<2x16x8xbf16>
    %73 = vector.extract_strided_slice %5 {offsets = [0, 0, 88], sizes = [2, 16, 8], strides = [1, 1, 1]} : vector<2x16x192xbf16> to vector<2x16x8xbf16>
    %74 = vector.extract_strided_slice %5 {offsets = [0, 0, 152], sizes = [2, 16, 8], strides = [1, 1, 1]} : vector<2x16x192xbf16> to vector<2x16x8xbf16>
    "tpu.trace_start"() <{level = 10 : i32, message = "bnd,bmd->bnm"}> : () -> ()
    %cst_31 = arith.constant dense<0.000000e+00> : vector<2x16x16xf32>
    %75 = tpu.matmul %72, %73, %cst_31 {dimension_numbers = #tpu.dot_dimension_numbers<[2], [2], [1], [1], [0, 0, 0, 1, 1, 1], [0], [0]>} : vector<2x16x8xbf16>, vector<2x16x8xbf16>, vector<2x16x16xf32> -> vector<2x16x16xf32>
    "tpu.trace_stop"() : () -> ()
    %76 = arith.addf %75, %14 : vector<2x16x16xf32>
    %cst_32 = arith.constant dense<0xFF800000> : vector<2x16xf32>
    %77 = vector.multi_reduction <maximumf>, %76, %cst_32 [2] : vector<2x16x16xf32> to vector<2x16xf32>
    %78 = vector.shape_cast %77 : vector<2x16xf32> to vector<2x16x1xf32>
    %79 = vector.broadcast %78 : vector<2x16x1xf32> to vector<2x16x16xf32>
    %80 = arith.subf %76, %79 : vector<2x16x16xf32>
    %81 = math.exp %80 : vector<2x16x16xf32>
    %cst_33 = arith.constant dense<0.000000e+00> : vector<2x16xf32>
    %82 = vector.multi_reduction <add>, %81, %cst_33 [2] : vector<2x16x16xf32> to vector<2x16xf32>
    %83 = vector.shape_cast %82 : vector<2x16xf32> to vector<2x16x1xf32>
    %84 = tpu.reciprocal %83 {approx = true} : vector<2x16x1xf32> -> vector<2x16x1xf32>
    %85 = vector.broadcast %84 : vector<2x16x1xf32> to vector<2x16x16xf32>
    %86 = arith.mulf %81, %85 : vector<2x16x16xf32>
    %87 = arith.truncf %86 : vector<2x16x16xf32> to vector<2x16x16xbf16>
    "tpu.trace_start"() <{level = 10 : i32, message = "bnm,bmd->bnd"}> : () -> ()
    %cst_34 = arith.constant dense<0.000000e+00> : vector<2x16x8xf32>
    %88 = tpu.matmul %87, %74, %cst_34 {dimension_numbers = #tpu.dot_dimension_numbers<[2], [1], [1], [2], [0, 0, 0, 1, 1, 2], [0], [0]>} : vector<2x16x16xbf16>, vector<2x16x8xbf16>, vector<2x16x8xf32> -> vector<2x16x8xf32>
    "tpu.trace_stop"() : () -> ()
    %89 = arith.truncf %88 : vector<2x16x8xf32> to vector<2x16x8xbf16>
    %c0_35 = arith.constant 0 : index
    %c0_36 = arith.constant 0 : index
    %c24 = arith.constant 24 : index
    %90 = vector.load %arg8[%c0_35, %c0_36, %c24] : memref<2x16x64xbf16, #tpu.memory_space<vmem>>, vector<2x16x8xbf16>
    tpu.vector_store %arg8[%c0_35, %c0_36, %c24], %89 {strides = array<i32>} : memref<2x16x64xbf16, #tpu.memory_space<vmem>>, vector<2x16x8xbf16>,
    %91 = vector.extract_strided_slice %5 {offsets = [0, 0, 32], sizes = [2, 16, 8], strides = [1, 1, 1]} : vector<2x16x192xbf16> to vector<2x16x8xbf16>
    %92 = vector.extract_strided_slice %5 {offsets = [0, 0, 96], sizes = [2, 16, 8], strides = [1, 1, 1]} : vector<2x16x192xbf16> to vector<2x16x8xbf16>
    %93 = vector.extract_strided_slice %5 {offsets = [0, 0, 160], sizes = [2, 16, 8], strides = [1, 1, 1]} : vector<2x16x192xbf16> to vector<2x16x8xbf16>
    "tpu.trace_start"() <{level = 10 : i32, message = "bnd,bmd->bnm"}> : () -> ()
    %cst_37 = arith.constant dense<0.000000e+00> : vector<2x16x16xf32>
    %94 = tpu.matmul %91, %92, %cst_37 {dimension_numbers = #tpu.dot_dimension_numbers<[2], [2], [1], [1], [0, 0, 0, 1, 1, 1], [0], [0]>} : vector<2x16x8xbf16>, vector<2x16x8xbf16>, vector<2x16x16xf32> -> vector<2x16x16xf32>
    "tpu.trace_stop"() : () -> ()
    %95 = arith.addf %94, %14 : vector<2x16x16xf32>
    %cst_38 = arith.constant dense<0xFF800000> : vector<2x16xf32>
    %96 = vector.multi_reduction <maximumf>, %95, %cst_38 [2] : vector<2x16x16xf32> to vector<2x16xf32>
    %97 = vector.shape_cast %96 : vector<2x16xf32> to vector<2x16x1xf32>
    %98 = vector.broadcast %97 : vector<2x16x1xf32> to vector<2x16x16xf32>
    %99 = arith.subf %95, %98 : vector<2x16x16xf32>
    %100 = math.exp %99 : vector<2x16x16xf32>
    %cst_39 = arith.constant dense<0.000000e+00> : vector<2x16xf32>
    %101 = vector.multi_reduction <add>, %100, %cst_39 [2] : vector<2x16x16xf32> to vector<2x16xf32>
    %102 = vector.shape_cast %101 : vector<2x16xf32> to vector<2x16x1xf32>
    %103 = tpu.reciprocal %102 {approx = true} : vector<2x16x1xf32> -> vector<2x16x1xf32>
    %104 = vector.broadcast %103 : vector<2x16x1xf32> to vector<2x16x16xf32>
    %105 = arith.mulf %100, %104 : vector<2x16x16xf32>
    %106 = arith.truncf %105 : vector<2x16x16xf32> to vector<2x16x16xbf16>
    "tpu.trace_start"() <{level = 10 : i32, message = "bnm,bmd->bnd"}> : () -> ()
    %cst_40 = arith.constant dense<0.000000e+00> : vector<2x16x8xf32>
    %107 = tpu.matmul %106, %93, %cst_40 {dimension_numbers = #tpu.dot_dimension_numbers<[2], [1], [1], [2], [0, 0, 0, 1, 1, 2], [0], [0]>} : vector<2x16x16xbf16>, vector<2x16x8xbf16>, vector<2x16x8xf32> -> vector<2x16x8xf32>
    "tpu.trace_stop"() : () -> ()
    %108 = arith.truncf %107 : vector<2x16x8xf32> to vector<2x16x8xbf16>
    %c0_41 = arith.constant 0 : index
    %c0_42 = arith.constant 0 : index
    %c32 = arith.constant 32 : index
    %109 = vector.load %arg8[%c0_41, %c0_42, %c32] : memref<2x16x64xbf16, #tpu.memory_space<vmem>>, vector<2x16x8xbf16>
    tpu.vector_store %arg8[%c0_41, %c0_42, %c32], %108 {strides = array<i32>} : memref<2x16x64xbf16, #tpu.memory_space<vmem>>, vector<2x16x8xbf16>,
    %110 = vector.extract_strided_slice %5 {offsets = [0, 0, 40], sizes = [2, 16, 8], strides = [1, 1, 1]} : vector<2x16x192xbf16> to vector<2x16x8xbf16>
    %111 = vector.extract_strided_slice %5 {offsets = [0, 0, 104], sizes = [2, 16, 8], strides = [1, 1, 1]} : vector<2x16x192xbf16> to vector<2x16x8xbf16>
    %112 = vector.extract_strided_slice %5 {offsets = [0, 0, 168], sizes = [2, 16, 8], strides = [1, 1, 1]} : vector<2x16x192xbf16> to vector<2x16x8xbf16>
    "tpu.trace_start"() <{level = 10 : i32, message = "bnd,bmd->bnm"}> : () -> ()
    %cst_43 = arith.constant dense<0.000000e+00> : vector<2x16x16xf32>
    %113 = tpu.matmul %110, %111, %cst_43 {dimension_numbers = #tpu.dot_dimension_numbers<[2], [2], [1], [1], [0, 0, 0, 1, 1, 1], [0], [0]>} : vector<2x16x8xbf16>, vector<2x16x8xbf16>, vector<2x16x16xf32> -> vector<2x16x16xf32>
    "tpu.trace_stop"() : () -> ()
    %114 = arith.addf %113, %14 : vector<2x16x16xf32>
    %cst_44 = arith.constant dense<0xFF800000> : vector<2x16xf32>
    %115 = vector.multi_reduction <maximumf>, %114, %cst_44 [2] : vector<2x16x16xf32> to vector<2x16xf32>
    %116 = vector.shape_cast %115 : vector<2x16xf32> to vector<2x16x1xf32>
    %117 = vector.broadcast %116 : vector<2x16x1xf32> to vector<2x16x16xf32>
    %118 = arith.subf %114, %117 : vector<2x16x16xf32>
    %119 = math.exp %118 : vector<2x16x16xf32>
    %cst_45 = arith.constant dense<0.000000e+00> : vector<2x16xf32>
    %120 = vector.multi_reduction <add>, %119, %cst_45 [2] : vector<2x16x16xf32> to vector<2x16xf32>
    %121 = vector.shape_cast %120 : vector<2x16xf32> to vector<2x16x1xf32>
    %122 = tpu.reciprocal %121 {approx = true} : vector<2x16x1xf32> -> vector<2x16x1xf32>
    %123 = vector.broadcast %122 : vector<2x16x1xf32> to vector<2x16x16xf32>
    %124 = arith.mulf %119, %123 : vector<2x16x16xf32>
    %125 = arith.truncf %124 : vector<2x16x16xf32> to vector<2x16x16xbf16>
    "tpu.trace_start"() <{level = 10 : i32, message = "bnm,bmd->bnd"}> : () -> ()
    %cst_46 = arith.constant dense<0.000000e+00> : vector<2x16x8xf32>
    %126 = tpu.matmul %125, %112, %cst_46 {dimension_numbers = #tpu.dot_dimension_numbers<[2], [1], [1], [2], [0, 0, 0, 1, 1, 2], [0], [0]>} : vector<2x16x16xbf16>, vector<2x16x8xbf16>, vector<2x16x8xf32> -> vector<2x16x8xf32>
    "tpu.trace_stop"() : () -> ()
    %127 = arith.truncf %126 : vector<2x16x8xf32> to vector<2x16x8xbf16>
    %c0_47 = arith.constant 0 : index
    %c0_48 = arith.constant 0 : index
    %c40 = arith.constant 40 : index
    %128 = vector.load %arg8[%c0_47, %c0_48, %c40] : memref<2x16x64xbf16, #tpu.memory_space<vmem>>, vector<2x16x8xbf16>
    tpu.vector_store %arg8[%c0_47, %c0_48, %c40], %127 {strides = array<i32>} : memref<2x16x64xbf16, #tpu.memory_space<vmem>>, vector<2x16x8xbf16>,
    %129 = vector.extract_strided_slice %5 {offsets = [0, 0, 48], sizes = [2, 16, 8], strides = [1, 1, 1]} : vector<2x16x192xbf16> to vector<2x16x8xbf16>
    %130 = vector.extract_strided_slice %5 {offsets = [0, 0, 112], sizes = [2, 16, 8], strides = [1, 1, 1]} : vector<2x16x192xbf16> to vector<2x16x8xbf16>
    %131 = vector.extract_strided_slice %5 {offsets = [0, 0, 176], sizes = [2, 16, 8], strides = [1, 1, 1]} : vector<2x16x192xbf16> to vector<2x16x8xbf16>
    "tpu.trace_start"() <{level = 10 : i32, message = "bnd,bmd->bnm"}> : () -> ()
    %cst_49 = arith.constant dense<0.000000e+00> : vector<2x16x16xf32>
    %132 = tpu.matmul %129, %130, %cst_49 {dimension_numbers = #tpu.dot_dimension_numbers<[2], [2], [1], [1], [0, 0, 0, 1, 1, 1], [0], [0]>} : vector<2x16x8xbf16>, vector<2x16x8xbf16>, vector<2x16x16xf32> -> vector<2x16x16xf32>
    "tpu.trace_stop"() : () -> ()
    %133 = arith.addf %132, %14 : vector<2x16x16xf32>
    %cst_50 = arith.constant dense<0xFF800000> : vector<2x16xf32>
    %134 = vector.multi_reduction <maximumf>, %133, %cst_50 [2] : vector<2x16x16xf32> to vector<2x16xf32>
    %135 = vector.shape_cast %134 : vector<2x16xf32> to vector<2x16x1xf32>
    %136 = vector.broadcast %135 : vector<2x16x1xf32> to vector<2x16x16xf32>
    %137 = arith.subf %133, %136 : vector<2x16x16xf32>
    %138 = math.exp %137 : vector<2x16x16xf32>
    %cst_51 = arith.constant dense<0.000000e+00> : vector<2x16xf32>
    %139 = vector.multi_reduction <add>, %138, %cst_51 [2] : vector<2x16x16xf32> to vector<2x16xf32>
    %140 = vector.shape_cast %139 : vector<2x16xf32> to vector<2x16x1xf32>
    %141 = tpu.reciprocal %140 {approx = true} : vector<2x16x1xf32> -> vector<2x16x1xf32>
    %142 = vector.broadcast %141 : vector<2x16x1xf32> to vector<2x16x16xf32>
    %143 = arith.mulf %138, %142 : vector<2x16x16xf32>
    %144 = arith.truncf %143 : vector<2x16x16xf32> to vector<2x16x16xbf16>
    "tpu.trace_start"() <{level = 10 : i32, message = "bnm,bmd->bnd"}> : () -> ()
    %cst_52 = arith.constant dense<0.000000e+00> : vector<2x16x8xf32>
    %145 = tpu.matmul %144, %131, %cst_52 {dimension_numbers = #tpu.dot_dimension_numbers<[2], [1], [1], [2], [0, 0, 0, 1, 1, 2], [0], [0]>} : vector<2x16x16xbf16>, vector<2x16x8xbf16>, vector<2x16x8xf32> -> vector<2x16x8xf32>
    "tpu.trace_stop"() : () -> ()
    %146 = arith.truncf %145 : vector<2x16x8xf32> to vector<2x16x8xbf16>
    %c0_53 = arith.constant 0 : index
    %c0_54 = arith.constant 0 : index
    %c48 = arith.constant 48 : index
    %147 = vector.load %arg8[%c0_53, %c0_54, %c48] : memref<2x16x64xbf16, #tpu.memory_space<vmem>>, vector<2x16x8xbf16>
    tpu.vector_store %arg8[%c0_53, %c0_54, %c48], %146 {strides = array<i32>} : memref<2x16x64xbf16, #tpu.memory_space<vmem>>, vector<2x16x8xbf16>,
    %148 = vector.extract_strided_slice %5 {offsets = [0, 0, 56], sizes = [2, 16, 8], strides = [1, 1, 1]} : vector<2x16x192xbf16> to vector<2x16x8xbf16>
    %149 = vector.extract_strided_slice %5 {offsets = [0, 0, 120], sizes = [2, 16, 8], strides = [1, 1, 1]} : vector<2x16x192xbf16> to vector<2x16x8xbf16>
    %150 = vector.extract_strided_slice %5 {offsets = [0, 0, 184], sizes = [2, 16, 8], strides = [1, 1, 1]} : vector<2x16x192xbf16> to vector<2x16x8xbf16>
    "tpu.trace_start"() <{level = 10 : i32, message = "bnd,bmd->bnm"}> : () -> ()
    %cst_55 = arith.constant dense<0.000000e+00> : vector<2x16x16xf32>
    %151 = tpu.matmul %148, %149, %cst_55 {dimension_numbers = #tpu.dot_dimension_numbers<[2], [2], [1], [1], [0, 0, 0, 1, 1, 1], [0], [0]>} : vector<2x16x8xbf16>, vector<2x16x8xbf16>, vector<2x16x16xf32> -> vector<2x16x16xf32>
    "tpu.trace_stop"() : () -> ()
    %152 = arith.addf %151, %14 : vector<2x16x16xf32>
    %cst_56 = arith.constant dense<0xFF800000> : vector<2x16xf32>
    %153 = vector.multi_reduction <maximumf>, %152, %cst_56 [2] : vector<2x16x16xf32> to vector<2x16xf32>
    %154 = vector.shape_cast %153 : vector<2x16xf32> to vector<2x16x1xf32>
    %155 = vector.broadcast %154 : vector<2x16x1xf32> to vector<2x16x16xf32>
    %156 = arith.subf %152, %155 : vector<2x16x16xf32>
    %157 = math.exp %156 : vector<2x16x16xf32>
    %cst_57 = arith.constant dense<0.000000e+00> : vector<2x16xf32>
    %158 = vector.multi_reduction <add>, %157, %cst_57 [2] : vector<2x16x16xf32> to vector<2x16xf32>
    %159 = vector.shape_cast %158 : vector<2x16xf32> to vector<2x16x1xf32>
    %160 = tpu.reciprocal %159 {approx = true} : vector<2x16x1xf32> -> vector<2x16x1xf32>
    %161 = vector.broadcast %160 : vector<2x16x1xf32> to vector<2x16x16xf32>
    %162 = arith.mulf %157, %161 : vector<2x16x16xf32>
    %163 = arith.truncf %162 : vector<2x16x16xf32> to vector<2x16x16xbf16>
    "tpu.trace_start"() <{level = 10 : i32, message = "bnm,bmd->bnd"}> : () -> ()
    %cst_58 = arith.constant dense<0.000000e+00> : vector<2x16x8xf32>
    %164 = tpu.matmul %163, %150, %cst_58 {dimension_numbers = #tpu.dot_dimension_numbers<[2], [1], [1], [2], [0, 0, 0, 1, 1, 2], [0], [0]>} : vector<2x16x16xbf16>, vector<2x16x8xbf16>, vector<2x16x8xf32> -> vector<2x16x8xf32>
    "tpu.trace_stop"() : () -> ()
    %165 = arith.truncf %164 : vector<2x16x8xf32> to vector<2x16x8xbf16>
    %c0_59 = arith.constant 0 : index
    %c0_60 = arith.constant 0 : index
    %c56 = arith.constant 56 : index
    %166 = vector.load %arg8[%c0_59, %c0_60, %c56] : memref<2x16x64xbf16, #tpu.memory_space<vmem>>, vector<2x16x8xbf16>
    tpu.vector_store %arg8[%c0_59, %c0_60, %c56], %165 {strides = array<i32>} : memref<2x16x64xbf16, #tpu.memory_space<vmem>>, vector<2x16x8xbf16>,
    %c0_61 = arith.constant 0 : index
    %c0_62 = arith.constant 0 : index
    %c0_63 = arith.constant 0 : index
    %167 = vector.load %arg8[%c0_61, %c0_62, %c0_63] : memref<2x16x64xbf16, #tpu.memory_space<vmem>>, vector<2x16x64xbf16>
    %168 = vector.shape_cast %167 : vector<2x16x64xbf16> to vector<32x64xbf16>
    %c0_64 = arith.constant 0 : index
    %c0_65 = arith.constant 0 : index
    %169 = vector.load %arg5[%c0_64, %c0_65] : memref<64x64xbf16, #tpu.memory_space<vmem>>, vector<64x64xbf16>
    %cst_66 = arith.constant dense<0.000000e+00> : vector<32x64xf32>
    %170 = tpu.matmul %168, %169, %cst_66 {dimension_numbers = #tpu.dot_dimension_numbers<[1], [0], [0], [1], [0, 0, 1, 1], [], []>} : vector<32x64xbf16>, vector<64x64xbf16>, vector<32x64xf32> -> vector<32x64xf32>
    %c0_67 = arith.constant 0 : index
    %c0_68 = arith.constant 0 : index
    %171 = vector.load %arg6[%c0_67, %c0_68] : memref<1x64xf32, #tpu.memory_space<vmem>>, vector<1x64xf32>
    %172 = vector.broadcast %171 : vector<1x64xf32> to vector<32x64xf32>
    %173 = arith.addf %170, %172 : vector<32x64xf32>
    %174 = vector.shape_cast %173 : vector<32x64xf32> to vector<2x16x64xf32>
    %c0_69 = arith.constant 0 : index
    %c0_70 = arith.constant 0 : index
    %c0_71 = arith.constant 0 : index
    %175 = vector.load %arg7[%c0_69, %c0_70, %c0_71] : memref<2x16x64xf32, #tpu.memory_space<vmem>>, vector<2x16x64xf32>
    tpu.vector_store %arg7[%c0_69, %c0_70, %c0_71], %174 {strides = array<i32>} : memref<2x16x64xf32, #tpu.memory_space<vmem>>, vector<2x16x64xf32>,
    return
  }
  func.func @transform_0(%arg0: i32) -> (i32, i32, i32) {
    %c0_i32 = arith.constant 0 : i32
    %c0_i32_0 = arith.constant 0 : i32
    %c0_i32_1 = arith.constant 0 : i32
    return %arg0, %c0_i32, %c0_i32_0 : i32, i32, i32
  }
  func.func @transform_1(%arg0: i32) -> (i32, i32, i32) {
    %c0_i32 = arith.constant 0 : i32
    %c0_i32_0 = arith.constant 0 : i32
    %c0_i32_1 = arith.constant 0 : i32
    return %arg0, %c0_i32, %c0_i32_0 : i32, i32, i32
  }
  func.func @transform_2(%arg0: i32) -> (i32, i32, i32) {
    %c0_i32 = arith.constant 0 : i32
    %c0_i32_0 = arith.constant 0 : i32
    %c0_i32_1 = arith.constant 0 : i32
    return %arg0, %c0_i32, %c0_i32_0 : i32, i32, i32
  }
  func.func @transform_3(%arg0: i32) -> (i32, i32) {
    %c0_i32 = arith.constant 0 : i32
    %c0_i32_0 = arith.constant 0 : i32
    %c0_i32_1 = arith.constant 0 : i32
    return %c0_i32, %c0_i32_0 : i32, i32
  }
  func.func @transform_4(%arg0: i32) -> (i32, i32) {
    %c0_i32 = arith.constant 0 : i32
    %c0_i32_0 = arith.constant 0 : i32
    %c0_i32_1 = arith.constant 0 : i32
    return %c0_i32, %c0_i32_0 : i32, i32
  }
  func.func @transform_5(%arg0: i32) -> (i32, i32) {
    %c0_i32 = arith.constant 0 : i32
    %c0_i32_0 = arith.constant 0 : i32
    %c0_i32_1 = arith.constant 0 : i32
    return %c0_i32, %c0_i32_0 : i32, i32
  }
  func.func @transform_6(%arg0: i32) -> (i32, i32, i32) {
    %c0_i32 = arith.constant 0 : i32
    %c0_i32_0 = arith.constant 0 : i32
    %c0_i32_1 = arith.constant 0 : i32
    return %arg0, %c0_i32, %c0_i32_0 : i32, i32, i32
  }
}

</mosaic_0001>

<bundles_post_ra>
// kernel: tpu_custom_call.1
= control target key start
LH: loop header
LB: loop body
LE: loop exit
PB: predicated region body
PF: predicated region fallthrough
CT: control target
= control target key end

     0   :  { %11 = vsyncpa [#allocation4], 0  ;;  %s3724_s0 = inlined_call_operand.hbm [shape: f32[2,16,1], index: 0, kind: input, shape index: {}]   ;;  %s3725_s1 = inlined_call_operand.hbm [shape: f32[2,1,16], index: 1, kind: input, shape index: {}]   ;;  %s3726_s2 = inlined_call_operand.hbm [shape: bf16[2,16,64], index: 2, kind: input, shape index: {}]   ;;  %s3727_s3 = inlined_call_operand.hbm [shape: bf16[64,192], index: 3, kind: input, shape index: {}]   ;;  %s3728_s4 = inlined_call_operand.hbm [shape: bf16[64,64], index: 4, kind: input, shape index: {}]   ;;  %s3729_s5 = inlined_call_operand.hbm [shape: f32[1,64], index: 5, kind: input, shape index: {}]   ;;  %s3730_s6 = inlined_call_operand.hbm [shape: f32[2,16,64], index: 6, kind: output, shape index: {}]  }
   0x1   :  { %12 = vsyncpa [#allocation7], 0 }
   0x2   :  { %13 = vsyncpa [#allocation10], 0 }
   0x3   :  { %14 = vsyncpa [#allocation13], 0 }
   0x4   :  { %15 = vsyncpa [#allocation5], 0  ;;  %s3091_s21 = smov [#allocation6]   ;;  %s2927_s25 = scalar_lea.hbm %s3725_s1, 32 }
   0x5   :  { %s33_s22 = sshll.u32 %s3091_s21, 4  ;;  %p2928_p0 = scmp.ne.s32.totalorder %s3725_s1, %s2927_s25  ;;  %s34_s22 = int_to_ptr.vmem [resolvable:$true] %s33_s22 }
   0x6   :  { %p2931_p1 = scmp.lt.u32.totalorder %s2927_s25, %s3725_s1 }
   0x8   :  { %p2933_p2 = pnand %p2931_p1, %p2928_p0 }
   0xa   :  { %2936 = shalt.err (!%p2933_p2)
}
   0xb   :  { %s2937_s30 = scalar_lea.vmem %s34_s22, 32  ;;  %p2942_p4 = scmp.lt.s32.totalorder %s34_s22, %s34_s22 }
   0xc   :  { %p2938_p3 = scmp.ne.s32.totalorder %s34_s22, %s2937_s30  ;;  %p2943_p5 = scmp.lt.s32.totalorder %s2937_s30, %s2937_s30 }
   0xe   :  { %p2944_p6 = por %p2943_p5, %p2942_p4 }
  0x10   :  { %p2945_p7 = pnand %p2944_p6, %p2938_p3 }
  0x12   :  { %2948 = shalt.err (!%p2945_p7)
}
  0x13   :  { %s3092_s7 = smov 16   ;;  %s3093_s8 = smov 1  }
  0x14   :  { %39 = dma.hbm_to_vmem [thread:$0]  %s3725_s1, 32, %s34_s22, [#allocation7], %s3092_s7, %s3092_s7, %s3093_s8  }
  0x15   :  { %s3094_s11 = smov [#allocation9]   ;;  %s3095_s13 = smov [#allocation3]  }
  0x16   :  { %s57_s12 = sshll.u32 %s3094_s11, 4  ;;  %s21_s14 = sshll.u32 %s3095_s13, 4  ;;  %s58_s12 = int_to_ptr.vmem [resolvable:$true] %s57_s12  ;;  %s22_s14 = int_to_ptr.vmem [resolvable:$true] %s21_s14 }
  0x17   :  { %s2949_s17 = scalar_lea.hbm %s3727_s3, 1024 }
  0x18   :  { %p2950_p8 = scmp.ne.s32.totalorder %s3727_s3, %s2949_s17  ;;  %p2953_p9 = scmp.lt.u32.totalorder %s2949_s17, %s3727_s3 }
  0x1a   :  { %p2955_p10 = pnand %p2953_p9, %p2950_p8 }
  0x1c   :  { %2958 = shalt.err (!%p2955_p10)
}
  0x1d   :  { %s2959_s1 = scalar_lea.vmem %s58_s12, 1024  ;;  %p2964_p12 = scmp.lt.s32.totalorder %s58_s12, %s58_s12 }
  0x1e   :  { %p2960_p11 = scmp.ne.s32.totalorder %s58_s12, %s2959_s1  ;;  %p2965_p13 = scmp.lt.s32.totalorder %s2959_s1, %s2959_s1 }
  0x20   :  { %p2966_p0 = por %p2965_p13, %p2964_p12 }
  0x22   :  { %p2967_p1 = pnand %p2966_p0, %p2960_p11 }
  0x24   :  { %2970 = shalt.err (!%p2967_p1)
}
  0x25   :  { %s3096_s22 = smov 128   ;;  %s3097_s23 = smov 8  }
  0x26   :  { %63 = dma.hbm_to_vmem [thread:$0]  %s3727_s3, 1024, %s58_s12, [#allocation10], %s3096_s22, %s3096_s22, %s3097_s23  }
  0x27   :  { %s2971_s28 = scalar_lea.hbm %s3724_s0, 512 }
  0x28   :  { %p2972_p2 = scmp.ne.s32.totalorder %s3724_s0, %s2971_s28  ;;  %p2975_p3 = scmp.lt.u32.totalorder %s2971_s28, %s3724_s0 }
  0x2a   :  { %p2977_p4 = pnand %p2975_p3, %p2972_p2 }
  0x2c   :  { %2980 = shalt.err (!%p2977_p4)
}
  0x2d   :  { %s2981_s10 = scalar_lea.vmem %s22_s14, 512  ;;  %p2986_p6 = scmp.lt.s32.totalorder %s22_s14, %s22_s14 }
  0x2e   :  { %p2982_p5 = scmp.ne.s32.totalorder %s22_s14, %s2981_s10  ;;  %p2987_p7 = scmp.lt.s32.totalorder %s2981_s10, %s2981_s10 }
  0x30   :  { %p2988_p8 = por %p2987_p7, %p2986_p6 }
  0x32   :  { %p2989_p9 = pnand %p2988_p8, %p2982_p5 }
  0x34   :  { %2992 = shalt.err (!%p2989_p9)
}
  0x35   :  { %27 = dma.hbm_to_vmem [thread:$0]  %s3724_s0, 512, %s22_s14, [#allocation4], %s3096_s22, %s3096_s22, %s3097_s23  }
  0x36   :  { %s3098_s12 = smov [#allocation8]   ;;  %s2993_s17 = scalar_lea.hbm %s3726_s2, 256 }
  0x37   :  { %s45_s13 = sshll.u32 %s3098_s12, 4  ;;  %p2994_p10 = scmp.ne.s32.totalorder %s3726_s2, %s2993_s17  ;;  %s46_s13 = int_to_ptr.vmem [resolvable:$true] %s45_s13 }
  0x38   :  { %p2997_p11 = scmp.lt.u32.totalorder %s2993_s17, %s3726_s2 }
  0x3a   :  { %p2999_p12 = pnand %p2997_p11, %p2994_p10 }
  0x3c   :  { %3002 = shalt.err (!%p2999_p12)
}
  0x3d   :  { %s3003_s1 = scalar_lea.vmem %s46_s13, 256  ;;  %p3008_p0 = scmp.lt.s32.totalorder %s46_s13, %s46_s13 }
  0x3e   :  { %p3004_p13 = scmp.ne.s32.totalorder %s46_s13, %s3003_s1  ;;  %p3009_p1 = scmp.lt.s32.totalorder %s3003_s1, %s3003_s1 }
  0x40   :  { %p3010_p2 = por %p3009_p1, %p3008_p0 }
  0x42   :  { %p3011_p3 = pnand %p3010_p2, %p3004_p13 }
  0x44   :  { %3014 = shalt.err (!%p3011_p3)
}
  0x45   :  { %s3099_s0 = smov 64   ;;  %s3100_s14 = smov 4  }
  0x46   :  { %51 = dma.hbm_to_vmem [thread:$0]  %s3726_s2, 256, %s46_s13, [#allocation7], %s3099_s0, %s3099_s0, %s3100_s14  }
  0x47   :  { %s3101_s26 = smov [#allocation11]   ;;  %s3102_s28 = smov [#allocation12]  }
  0x48   :  { %s69_s27 = sshll.u32 %s3101_s26, 4  ;;  %s82_s29 = sshll.u32 %s3102_s28, 4  ;;  %s70_s27 = int_to_ptr.vmem [resolvable:$true] %s69_s27  ;;  %s83_s29 = int_to_ptr.vmem [resolvable:$true] %s82_s29 }
  0x49   :  { %s3015_s9 = scalar_lea.hbm %s3728_s4, 512 }
  0x4a   :  { %p3016_p4 = scmp.ne.s32.totalorder %s3728_s4, %s3015_s9  ;;  %p3019_p5 = scmp.lt.u32.totalorder %s3015_s9, %s3728_s4 }
  0x4c   :  { %p3021_p6 = pnand %p3019_p5, %p3016_p4 }
  0x4e   :  { %3024 = shalt.err (!%p3021_p6)
}
  0x4f   :  { %s3025_s2 = scalar_lea.vmem %s70_s27, 512  ;;  %p3030_p8 = scmp.lt.s32.totalorder %s70_s27, %s70_s27 }
  0x50   :  { %p3026_p7 = scmp.ne.s32.totalorder %s70_s27, %s3025_s2  ;;  %p3031_p9 = scmp.lt.s32.totalorder %s3025_s2, %s3025_s2 }
  0x52   :  { %p3032_p10 = por %p3031_p9, %p3030_p8 }
  0x54   :  { %p3033_p11 = pnand %p3032_p10, %p3026_p7 }
  0x56   :  { %3036 = shalt.err (!%p3033_p11)
}
  0x57   :  { %75 = dma.hbm_to_vmem [thread:$0]  %s3728_s4, 512, %s70_s27, [#allocation10], %s3099_s0, %s3099_s0, %s3100_s14  }
  0x58   :  { %s3037_s18 = scalar_lea.hbm %s3729_s5, 16 }
  0x59   :  { %p3038_p12 = scmp.ne.s32.totalorder %s3729_s5, %s3037_s18  ;;  %p3041_p13 = scmp.lt.u32.totalorder %s3037_s18, %s3729_s5 }
  0x5b   :  { %p3043_p0 = pnand %p3041_p13, %p3038_p12 }
  0x5d   :  { %3046 = shalt.err (!%p3043_p0)
}
  0x5e   :  { %s3047_s24 = scalar_lea.vmem %s83_s29, 16  ;;  %s3051_s25 = scalar_lea.vmem %s83_s29, 32 }
  0x5f   :  { %p3048_p1 = scmp.ne.s32.totalorder %s83_s29, %s3047_s24  ;;  %p3052_p2 = scmp.lt.s32.totalorder %s83_s29, %s83_s29 }
  0x60   :  { %p3053_p3 = scmp.lt.s32.totalorder %s3051_s25, %s3047_s24 }
  0x62   :  { %p3054_p4 = por %p3053_p3, %p3052_p2 }
  0x64   :  { %p3055_p5 = pnand %p3054_p4, %p3048_p1 }
  0x66   :  { %3058 = shalt.err (!%p3055_p5)
}
  0x67   :  { %85 = dma.hbm_to_vmem [thread:$0]  %s3729_s5, 16, %s83_s29, [#allocation13]  }
  0x68   :  { %3081 = dma.done.wait [#allocation4], 512  }
  0x69   :  { %3082 = vsyncadd [#allocation4], 4294966784 }
  0x6a   :  { %3083 = dma.done.wait [#allocation7], 288  }
  0x6b   :  { %3084 = vsyncadd [#allocation7], 4294967008 }
  0x6c   :  { %3085 = dma.done.wait [#allocation10], 1536  }
  0x6d   :  { %3086 = vsyncadd [#allocation10], 4294965760 }
  0x6e   :  { %3087 = dma.done.wait [#allocation13], 16  }
  0x6f   :  { %3088 = vsyncadd [#allocation13], 4294967280  ;;  %v3103_v0 = vmov 0   ;;  %v2781_v1 = vld [vmem:[#allocation9 + $0x4] ss:$8 sps:$4 sm:$0xff]   ;;  %v2793_v9 = vld [vmem:[#allocation8] sm:$0xff]   ;;  %v261_v32 = vlaneseq }
  0x70   :  { %206 = vmatprep.mubr.bf16.mxu0 %v3103_v0  ;;  %2779 = vset.pattern.permute.xlu1 %v3103_v0  ;;  %v2783_v2 = vld [vmem:[#allocation9] ss:$8 sps:$4 sm:$0xff]   ;;  %v2784_v3 = vld [vmem:[#allocation9 + $0x14] ss:$8 sps:$4 sm:$0xff]   ;;  %v2786_v4 = vld [vmem:[#allocation9 + $0x10] ss:$8 sps:$4 sm:$0xff]  }
  0x71   :  { %2780 = vset.pattern.permute.xlu0 %v3103_v0  ;;  %174 = vmatprep.subr.bf16.mxu0 %v2781_v1  ;;  %v2787_v5 = vld [vmem:[#allocation9 + $0x24] ss:$8 sps:$4 sm:$0xff]   ;;  %v2789_v6 = vld [vmem:[#allocation9 + $0x20] ss:$8 sps:$4 sm:$0xff]   ;;  %v2790_v7 = vld [vmem:[#allocation9 + $0x34] ss:$8 sps:$4 sm:$0xff]  }
  0x72   :  { %175 = vmatpush1.bf16.msra.mxu0 %v2783_v2  ;;  %v2792_v8 = vld [vmem:[#allocation9 + $0x30] ss:$8 sps:$4 sm:$0xff]   ;;  %vm167_vm0 = vcmask 523264   ;;  %v3104_v11 = vmov 0.0   ;;  %vm3105_vm1 = vmmov 0   ;;  %v233_v26 = vld [vmem:[#allocation3 + $0x10] sm:$0xff] }
  0x73   :  { %176 = vmatprep.subr.bf16.mxu0 %v2784_v3  ;;  %v2794_v10 = vld [vmem:[#allocation8 + $0x8] sm:$0xff]   ;;  %2547 = vmatprep.subr.bf16.mxu1 %v3104_v11  ;;  %v231_v20 = vld [vmem:[#allocation3] sm:$0xff]  ;;  %v234_v27 = vld [vmem:[#allocation3 + $0x18] sm:$0xff]  ;;  %vm282_vm2 = vcmask 64512   ;;  %v262_v33 = vshrl.u32 %v261_v32, 7  ;;  %vm380_vm3 = vcmask 130048  }
  0x74   :  { %2549 = vmatprep.mubr.msk.bf16.mxu1 %vm3105_vm1, %v3104_v11  ;;  %241 = vperm.xlu1 %2779, %v231_v20   ;;  %v232_v24 = vld [vmem:[#allocation3 + $0x8] sm:$0xff]  ;;  %v235_v34 = vld [vmem:[#allocation6] sm:$0x1]  ;;  %v236_v39 = vld [vmem:[#allocation6 + $0x1] sm:$0x1]  ;;  %s3106_s5 = smov 56  }
  0x75   :  { %v237_v35 = vsub.f32 1.0, %v235_v34  ;;  %v263_v36 = vsub.s32 0, %v262_v33  ;;  %v238_v41 = vsub.f32 1.0, %v236_v39  ;;  %s3108_s26 = smov 48   ;;  %s3109_s27 = smov 112   ;;  %vm773_vm4 = vcmask 130112  }
  0x76   :  { %177 = vmatpush1.bf16.msra.mxu0 %v2786_v4  ;;  %s3110_s28 = smov 40   ;;  %s3111_s29 = smov 104   ;;  %vm1028_vm5 = vcmask 195712   ;;  %vm1283_vm6 = vcmask 261312   ;;  %vm1538_vm7 = vcmask 326912   ;;  %vm1793_vm8 = vcmask 392512  }
  0x77   :  { %178 = vmatprep.subr.bf16.mxu0 %v2787_v5  ;;  %v264_v38 = vrot.slane %v237_v35, %v263_v36  ;;  %v268_v46 = vrot.slane %v238_v41, %v263_v36  ;;  %s3112_s30 = smov 32   ;;  %s3113_s8 = smov 96   ;;  %vm2048_vm9 = vcmask 458112   ;;  %vm2303_vm10 = vcmask 523712  }
  0x78   :  { %246 = vperm.xlu1 %2779, %v232_v24   ;;  %s3114_s9 = smov 24   ;;  %s3115_s10 = smov 88  }
  0x79   :  { %s3116_s3 = smov 80   ;;  %s3117_s11 = smov 72  }
  0x7a   :  { %179 = vmatpush1.bf16.msra.mxu0 %v2789_v6 }
  0x7b   :  { %180 = vmatprep.subr.bf16.mxu0 %v2790_v7 }
  0x7c   :  { %256 = vperm.xlu1 %2779, %v234_v27  }
  0x7e   :  { %181 = vmatpush1.bf16.msra.mxu0 %v2792_v8 }
  0x7f   :  { %2565 = vmatprep.subr.bf16.mxu0 %v3104_v11 }
  0x81   :  { %2436 = vmatmul.mubr.msk.bf16.vlgmr.msra.gmra.mrb[0].mxu0 %vm167_vm0, %v2793_v9 }
  0x82   :  { %216 = vmatprep.mubr.bf16.mxu0 %v3103_v0 }
  0x89   :  { %2437 = vmatmul.mubr.msk.bf16.gmra.mrb[4].mxu0 %vm167_vm0, %v2794_v10 }
  0x8a   :  { %2567 = vmatprep.mubr.msk.bf16.mxu0 %vm3105_vm1, %v3104_v11 }
  0xf3   :  { %v242_v37 = vpop.permute.xlu1 %241 }
  0xf4   :  { %v271_v40 = vmul.f32 %v264_v38, %v242_v37 }
  0xf6   :  { %v3274_v45 = vmul.f32 -1e+30, %v271_v40 }
  0xf7   :  { %v247_v42 = vpop.permute.xlu1 %246 }
  0xf8   :  { %v272_v43 = vmul.f32 %v264_v38, %v247_v42 }
  0xfa   :  { %v3276_v48 = vmul.f32 -1e+30, %v272_v43 }
  0xfb   :  { %v257_v52 = vpop.permute.xlu1 %256 }
  0xfc   :  { %v274_v57 = vmul.f32 %v268_v46, %v257_v52 }
  0xfe   :  { %v3284_v61 = vmul.f32 -1e+30, %v274_v57 }
 0x154   :  { %v208_v12 = vpop.f32.mrb[0].mxu0 }
 0x155   :  { %v210_v13 = vpop.f32.mrb[1].mxu0 }
 0x156   :  { %v212_v14 = vpop.f32.mrb[2].mxu0 }
 0x157   :  { %v3246_v15 = vpack.c.bf16 %v212_v14, %v208_v12  ;;  %v214_v16 = vpop.f32.mrb[3].mxu0 }
 0x158   :  { %v3248_v17 = vpack.c.bf16 %v214_v16, %v210_v13 }
 0x159   :  { %280 = vrot.lane.b32.xlu0 %v3246_v15, %s3099_s0 }
 0x15c   :  { %v218_v18 = vpop.f32.mrb[4].mxu0 }
 0x15d   :  { %v220_v19 = vpop.f32.mrb[5].mxu0 }
 0x15e   :  { %v222_v21 = vpop.f32.mrb[6].mxu0 }
 0x15f   :  { %v3252_v22 = vpack.c.bf16 %v222_v21, %v218_v18  ;;  %v224_v23 = vpop.f32.mrb[7].mxu0 }
 0x160   :  { %v3254_v25 = vpack.c.bf16 %v224_v23, %v220_v19 }
 0x161   :  { %331 = vrot.lane.b32.xlu0 %v3252_v22, %s3099_s0  ;;  %s3107_s0 = smov 120  }
 0x162   :  { %2566 = vmatpush3.bf16.msra.mxu0 %v3254_v25 }
 0x163   :  { %2577 = vmatprep.subr.bf16.mxu0 %v3104_v11 }
 0x165   :  { %251 = vperm.xlu0 %2780, %v233_v26  }
 0x1cb   :  { %v281_v28 = vpop.permute.xlu0 %280 }
 0x1cc   :  { %v287_v29 = vsel %vm282_vm2, %v281_v28, 0 }
 0x1cd   :  { %2548 = vmatpush3.bf16.xpose.msra.mxu1 %v287_v29 }
 0x1ce   :  { %2553 = vmatprep.subr.bf16.mxu1 %v3104_v11 }
 0x1d3   :  { %v332_v30 = vpop.permute.xlu0 %331 }
 0x1d4   :  { %v337_v31 = vsel %vm282_vm2, %v332_v30, 0  ;;  %2550 = vmatmul.mubr.msk.bf16.vlgmr.msra.gmra.mrb[0].mxu1 %vm282_vm2, %v3246_v15 }
 0x1d5   :  { %2554 = vmatpush3.bf16.xpose.msra.mxu1 %v337_v31  ;;  %2555 = vmatprep.mubr.msk.bf16.mxu1 %vm3105_vm1, %v3104_v11 }
 0x1d6   :  { %2559 = vmatprep.subr.bf16.mxu1 %v3104_v11 }
 0x1dc   :  { %2556 = vmatmul.mubr.msk.bf16.vlgmr.msra.gmra.mrb[4].mxu1 %vm282_vm2, %v3252_v22 }
 0x1dd   :  { %2560 = vmatpush3.bf16.msra.mxu1 %v3248_v17  ;;  %2561 = vmatprep.mubr.msk.bf16.mxu1 %vm3105_vm1, %v3104_v11 }
 0x1de   :  { %2571 = vmatprep.subr.bf16.mxu1 %v3104_v11 }
 0x1e4   :  { %v252_v44 = vpop.permute.xlu0 %251 }
 0x1e5   :  { %v273_v51 = vmul.f32 %v268_v46, %v252_v44 }
 0x1e7   :  { %v3281_v58 = vmul.f32 -1e+30, %v273_v51 }
 0x2a7   :  { %v323_v47 = vpop.f32.mrb[0].mxu1 }
 0x2a8   :  { %v324_v49 = vadd.f32 %v323_v47, %v3274_v45  ;;  %v2551_v50 = vpop.f32.mrb[1].mxu1 }
 0x2a9   :  { %v326_v53 = vpop.f32.mrb[2].mxu1 }
 0x2aa   :  { %v327_v54 = vadd.f32 %v326_v53, %v3276_v48  ;;  %v2552_v55 = vpop.f32.mrb[3].mxu1  ;;  %v381_v56 = vsel %vm380_vm3, %v324_v49, -inf }
 0x2ab   :  { %382 = vmax.xlane.f32.xlu1 %v381_v56 }
 0x2ac   :  { %v384_v59 = vsel %vm380_vm3, %v327_v54, -inf }
 0x2ad   :  { %385 = vmax.xlane.f32.xlu0 %v384_v59 }
 0x2af   :  { %v373_v60 = vpop.f32.mrb[4].mxu1 }
 0x2b0   :  { %v374_v62 = vadd.f32 %v373_v60, %v3281_v58  ;;  %v2557_v63 = vpop.f32.mrb[5].mxu1 }
 0x2b1   :  { %v376_v0 = vpop.f32.mrb[6].mxu1 }
 0x2b2   :  { %v377_v1 = vadd.f32 %v376_v0, %v3284_v61  ;;  %v2558_v2 = vpop.f32.mrb[7].mxu1  ;;  %v387_v3 = vsel %vm380_vm3, %v374_v62, -inf }
 0x2b3   :  { %388 = vmax.xlane.f32.xlu0 %v387_v3 }
 0x2b4   :  { %v390_v4 = vsel %vm380_vm3, %v377_v1, -inf }
 0x2b5   :  { %391 = vmax.xlane.f32.xlu1 %v390_v4 }
 0x338   :  { %v383_v5 = vpop.xlane.xlu1 %382 }
 0x339   :  { %v393_v6 = vsub.f32 %v324_v49, %v383_v5 }
 0x33a   :  { %v386_v7 = vpop.xlane.xlu0 %385 }
 0x33b   :  { %v397_v8 = vmul.f32 1.442695, %v393_v6  ;;  %v394_v9 = vsub.f32 %v327_v54, %v386_v7 }
 0x33d   :  { %2799 = vpow2.f32 %v397_v8  ;;  %v399_v10 = vmul.f32 1.442695, %v394_v9 }
 0x33f   :  { %2801 = vpow2.f32 %v399_v10 }
 0x340   :  { %v389_v12 = vpop.xlane.xlu0 %388 }
 0x341   :  { %v395_v13 = vsub.f32 %v374_v62, %v389_v12 }
 0x342   :  { %v392_v24 = vpop.xlane.xlu1 %391 }
 0x343   :  { %v401_v14 = vmul.f32 1.442695, %v395_v13  ;;  %v396_v26 = vsub.f32 %v377_v1, %v392_v24 }
 0x345   :  { %2803 = vpow2.f32 %v401_v14  ;;  %v403_v27 = vmul.f32 1.442695, %v396_v26 }
 0x347   :  { %v2800_v16 = vpop.eup %2799  ;;  %2805 = vpow2.f32 %v403_v27 }
 0x348   :  { %v405_v18 = vsel %vm380_vm3, %v2800_v16, 0.0 }
 0x349   :  { %v2802_v19 = vpop.eup %2801  ;;  %406 = vadd.xlane.f32.xlu0 %v405_v18 }
 0x34a   :  { %v408_v20 = vsel %vm380_vm3, %v2802_v19, 0.0 }
 0x34b   :  { %409 = vadd.xlane.f32.xlu1 %v408_v20 }
 0x34f   :  { %v2804_v21 = vpop.eup %2803 }
 0x350   :  { %v411_v23 = vsel %vm380_vm3, %v2804_v21, 0.0 }
 0x351   :  { %412 = vadd.xlane.f32.xlu0 %v411_v23  ;;  %v2806_v28 = vpop.eup %2805 }
 0x352   :  { %v414_v29 = vsel %vm380_vm3, %v2806_v28, 0.0 }
 0x35c   :  { %572 = vrot.lane.b32.xlu1 %v3252_v22, %s3106_s5 }
 0x367   :  { %521 = vrot.lane.b32.xlu0 %v3246_v15, %s3106_s5 }
 0x36b   :  { %570 = vrot.lane.b32.xlu0 %v3252_v22, %s3107_s0 }
 0x380   :  { %415 = vadd.xlane.f32.xlu1 %v414_v29 }
 0x391   :  { %519 = vrot.lane.b32.xlu1 %v3246_v15, %s3107_s0 }
 0x3d6   :  { %v407_v30 = vpop.xlane.xlu0 %406 }
 0x3d7   :  { %2807 = vrcp.f32 %v407_v30 }
 0x3d8   :  { %v410_v31 = vpop.xlane.xlu1 %409 }
 0x3d9   :  { %2809 = vrcp.f32 %v410_v31 }
 0x3dc   :  { %v573_v40 = vpop.permute.xlu1 %572 }
 0x3dd   :  { %v578_v50 = vsel %vm282_vm2, %v573_v40, 0 }
 0x3de   :  { %v413_v32 = vpop.xlane.xlu0 %412 }
 0x3df   :  { %2811 = vrcp.f32 %v413_v32 }
 0x3e1   :  { %v2808_v33 = vpop.eup %2807 }
 0x3e2   :  { %v421_v35 = vmul.f32 %v2808_v33, %v2800_v16  ;;  %v522_v37 = vpop.permute.xlu0 %521 }
 0x3e3   :  { %v2810_v34 = vpop.eup %2809  ;;  %v527_v39 = vsel %vm282_vm2, %v522_v37, 0 }
 0x3e4   :  { %v422_v36 = vmul.f32 %v2810_v34, %v2802_v19 }
 0x3e6   :  { %v425_v38 = vpack.c.bf16 %v422_v36, %v421_v35  ;;  %v571_v51 = vpop.permute.xlu0 %570 }
 0x3e8   :  { %2562 = vmatmul.mubr.msk.bf16.vlgmr.msra.gmra.mrb[8].mxu1 %vm380_vm3, %v425_v38 }
 0x3e9   :  { %2572 = vmatpush3.bf16.xpose.msra.mxu1 %v527_v39  ;;  %2573 = vmatprep.mubr.msk.bf16.mxu1 %vm3105_vm1, %v3104_v11  ;;  %v2812_v43 = vpop.eup %2811 }
 0x3ea   :  { %2583 = vmatprep.subr.bf16.mxu1 %v3104_v11  ;;  %v423_v46 = vmul.f32 %v2812_v43, %v2804_v21 }
 0x40d   :  { %v416_v41 = vpop.xlane.xlu1 %415 }
 0x40e   :  { %2813 = vrcp.f32 %v416_v41 }
 0x411   :  { %v520_v42 = vpop.permute.xlu1 %519 }
 0x412   :  { %2574 = vmatmul.mubr.msk.bf16.vlgmr.msra.gmra.mrb[12].mxu1 %vm282_vm2, %v520_v42 }
 0x413   :  { %2585 = vmatprep.mubr.msk.bf16.mxu1 %vm3105_vm1, %v3104_v11 }
 0x418   :  { %v2814_v44 = vpop.eup %2813 }
 0x419   :  { %v424_v47 = vmul.f32 %v2814_v44, %v2806_v28 }
 0x41b   :  { %v426_v49 = vpack.c.bf16 %v424_v47, %v423_v46 }
 0x41d   :  { %2568 = vmatmul.mubr.msk.bf16.vlgmr.msra.gmra.mrb[8].mxu0 %vm380_vm3, %v426_v49 }
 0x41e   :  { %2578 = vmatpush3.bf16.xpose.msra.mxu0 %v578_v50  ;;  %2579 = vmatprep.mubr.msk.bf16.mxu0 %vm3105_vm1, %v3104_v11 }
 0x41f   :  { %2589 = vmatprep.subr.bf16.mxu0 %v3104_v11 }
 0x425   :  { %2580 = vmatmul.mubr.msk.bf16.vlgmr.msra.gmra.mrb[12].mxu0 %vm282_vm2, %v571_v51 }
 0x426   :  { %2591 = vmatprep.mubr.msk.bf16.mxu0 %vm3105_vm1, %v3104_v11 }
 0x4bb   :  { %v464_v52 = vpop.f32.mrb[8].mxu1 }
 0x4bc   :  { %v2563_v53 = vpop.f32.mrb[9].mxu1 }
 0x4bd   :  { %v467_v54 = vpop.f32.mrb[10].mxu1 }
 0x4be   :  { %v515_v55 = vpack.c.bf16 %v467_v54, %v464_v52  ;;  %v2564_v56 = vpop.f32.mrb[11].mxu1 }
 0x4c0   :  { %517 = vst.msk [vmem:[#allocation2] sm:$0xff] %vm282_vm2, %v515_v55 }
 0x4e5   :  { %v563_v57 = vpop.f32.mrb[12].mxu1 }
 0x4e6   :  { %v564_v59 = vadd.f32 %v563_v57, %v3274_v45  ;;  %v2575_v60 = vpop.f32.mrb[13].mxu1 }
 0x4e7   :  { %v566_v62 = vpop.f32.mrb[14].mxu1 }
 0x4e8   :  { %v567_v63 = vadd.f32 %v566_v62, %v3276_v48  ;;  %v2576_v0 = vpop.f32.mrb[15].mxu1  ;;  %v621_v1 = vsel %vm380_vm3, %v564_v59, -inf }
 0x4e9   :  { %622 = vmax.xlane.f32.xlu1 %v621_v1 }
 0x4ea   :  { %v624_v2 = vsel %vm380_vm3, %v567_v63, -inf }
 0x4eb   :  { %625 = vmax.xlane.f32.xlu0 %v624_v2 }
 0x4f0   :  { %v508_v3 = vpop.f32.mrb[8].mxu0 }
 0x4f1   :  { %v2569_v4 = vpop.f32.mrb[9].mxu0 }
 0x4f2   :  { %v511_v5 = vpop.f32.mrb[10].mxu0 }
 0x4f3   :  { %v516_v6 = vpack.c.bf16 %v511_v5, %v508_v3  ;;  %v2570_v7 = vpop.f32.mrb[11].mxu0 }
 0x4f5   :  { %518 = vst.msk [vmem:[#allocation2 + $0x8] sm:$0xff] %vm282_vm2, %v516_v6 }
 0x4f8   :  { %v614_v8 = vpop.f32.mrb[12].mxu0 }
 0x4f9   :  { %v615_v9 = vadd.f32 %v614_v8, %v3281_v58  ;;  %v2581_v10 = vpop.f32.mrb[13].mxu0 }
 0x4fa   :  { %v617_v12 = vpop.f32.mrb[14].mxu0 }
 0x4fb   :  { %v618_v13 = vadd.f32 %v617_v12, %v3284_v61  ;;  %v2582_v14 = vpop.f32.mrb[15].mxu0  ;;  %v627_v16 = vsel %vm380_vm3, %v615_v9, -inf }
 0x4fc   :  { %628 = vmax.xlane.f32.xlu0 %v627_v16 }
 0x4fd   :  { %v630_v18 = vsel %vm380_vm3, %v618_v13, -inf }
 0x4fe   :  { %631 = vmax.xlane.f32.xlu1 %v630_v18 }
 0x50f   :  { %716 = vrot.lane.b32.xlu1 %v3254_v25, %s3107_s0 }
 0x512   :  { %668 = vrot.lane.b32.xlu0 %v3248_v17, %s3107_s0 }
 0x513   :  { %778 = vrot.lane.b32.xlu1 %v3246_v15, %s3108_s26 }
 0x576   :  { %v623_v19 = vpop.xlane.xlu1 %622 }
 0x577   :  { %v633_v20 = vsub.f32 %v564_v59, %v623_v19 }
 0x578   :  { %v626_v21 = vpop.xlane.xlu0 %625 }
 0x579   :  { %v637_v23 = vmul.f32 1.442695, %v633_v20  ;;  %v634_v24 = vsub.f32 %v567_v63, %v626_v21 }
 0x57b   :  { %2815 = vpow2.f32 %v637_v23  ;;  %v639_v26 = vmul.f32 1.442695, %v634_v24 }
 0x57d   :  { %2817 = vpow2.f32 %v639_v26 }
 0x585   :  { %v2816_v27 = vpop.eup %2815 }
 0x586   :  { %v645_v28 = vsel %vm380_vm3, %v2816_v27, 0.0 }
 0x587   :  { %v2818_v29 = vpop.eup %2817  ;;  %646 = vadd.xlane.f32.xlu0 %v645_v28 }
 0x588   :  { %v648_v30 = vsel %vm380_vm3, %v2818_v29, 0.0 }
 0x589   :  { %v629_v31 = vpop.xlane.xlu0 %628  ;;  %649 = vadd.xlane.f32.xlu1 %v648_v30 }
 0x58a   :  { %v635_v32 = vsub.f32 %v615_v9, %v629_v31 }
 0x58b   :  { %v632_v33 = vpop.xlane.xlu1 %631 }
 0x58c   :  { %v641_v34 = vmul.f32 1.442695, %v635_v32  ;;  %v636_v35 = vsub.f32 %v618_v13, %v632_v33 }
 0x58d   :  { %v669_v36 = vpop.permute.xlu0 %668 }
 0x58e   :  { %2819 = vpow2.f32 %v641_v34  ;;  %v643_v37 = vmul.f32 1.442695, %v636_v35  ;;  %2584 = vmatpush3.bf16.msra.mxu1 %v669_v36 }
 0x58f   :  { %v717_v38 = vpop.permute.xlu1 %716  ;;  %2595 = vmatprep.subr.bf16.mxu1 %v3104_v11 }
 0x590   :  { %2821 = vpow2.f32 %v643_v37  ;;  %2590 = vmatpush3.bf16.msra.mxu0 %v717_v38 }
 0x591   :  { %2601 = vmatprep.subr.bf16.mxu0 %v3104_v11 }
 0x593   :  { %v779_v43 = vpop.permute.xlu1 %778 }
 0x594   :  { %v784_v53 = vsel %vm282_vm2, %v779_v43, 0 }
 0x598   :  { %v2820_v39 = vpop.eup %2819 }
 0x599   :  { %v651_v40 = vsel %vm380_vm3, %v2820_v39, 0.0 }
 0x59a   :  { %v2822_v41 = vpop.eup %2821  ;;  %652 = vadd.xlane.f32.xlu0 %v651_v40 }
 0x59b   :  { %v654_v42 = vsel %vm380_vm3, %v2822_v41, 0.0 }
 0x59c   :  { %655 = vadd.xlane.f32.xlu1 %v654_v42 }
 0x5ad   :  { %776 = vrot.lane.b32.xlu1 %v3246_v15, %s3109_s27 }
 0x5b0   :  { %829 = vrot.lane.b32.xlu0 %v3252_v22, %s3108_s26 }
 0x5b4   :  { %827 = vrot.lane.b32.xlu0 %v3252_v22, %s3109_s27 }
 0x614   :  { %v647_v44 = vpop.xlane.xlu0 %646 }
 0x615   :  { %2823 = vrcp.f32 %v647_v44 }
 0x616   :  { %v650_v46 = vpop.xlane.xlu1 %649 }
 0x617   :  { %2825 = vrcp.f32 %v650_v46 }
 0x61f   :  { %v2824_v47 = vpop.eup %2823 }
 0x620   :  { %v661_v50 = vmul.f32 %v2824_v47, %v2816_v27 }
 0x621   :  { %v2826_v49 = vpop.eup %2825 }
 0x622   :  { %v662_v51 = vmul.f32 %v2826_v49, %v2818_v29 }
 0x624   :  { %v665_v52 = vpack.c.bf16 %v662_v51, %v661_v50 }
 0x626   :  { %2586 = vmatmul.mubr.msk.bf16.vlgmr.msra.gmra.mrb[16].mxu1 %vm380_vm3, %v665_v52 }
 0x627   :  { %2596 = vmatpush3.bf16.xpose.msra.mxu1 %v784_v53  ;;  %v653_v54 = vpop.xlane.xlu0 %652  ;;  %2597 = vmatprep.mubr.msk.bf16.mxu1 %vm3105_vm1, %v3104_v11 }
 0x628   :  { %2827 = vrcp.f32 %v653_v54  ;;  %2607 = vmatprep.subr.bf16.mxu1 %v3104_v11 }
 0x629   :  { %v656_v55 = vpop.xlane.xlu1 %655 }
 0x62a   :  { %2829 = vrcp.f32 %v656_v55 }
 0x62b   :  { %v830_v63 = vpop.permute.xlu0 %829 }
 0x62c   :  { %v835_v1 = vsel %vm282_vm2, %v830_v63, 0 }
 0x62d   :  { %v777_v56 = vpop.permute.xlu1 %776 }
 0x62e   :  { %2598 = vmatmul.mubr.msk.bf16.vlgmr.msra.gmra.mrb[20].mxu1 %vm282_vm2, %v777_v56 }
 0x62f   :  { %2609 = vmatprep.mubr.msk.bf16.mxu1 %vm3105_vm1, %v3104_v11  ;;  %v828_v2 = vpop.permute.xlu0 %827 }
 0x632   :  { %v2828_v57 = vpop.eup %2827 }
 0x633   :  { %v663_v60 = vmul.f32 %v2828_v57, %v2820_v39 }
 0x634   :  { %v2830_v59 = vpop.eup %2829 }
 0x635   :  { %v664_v62 = vmul.f32 %v2830_v59, %v2822_v41 }
 0x637   :  { %v666_v0 = vpack.c.bf16 %v664_v62, %v663_v60 }
 0x639   :  { %2592 = vmatmul.mubr.msk.bf16.vlgmr.msra.gmra.mrb[16].mxu0 %vm380_vm3, %v666_v0 }
 0x63a   :  { %2602 = vmatpush3.bf16.xpose.msra.mxu0 %v835_v1  ;;  %2603 = vmatprep.mubr.msk.bf16.mxu0 %vm3105_vm1, %v3104_v11 }
 0x63b   :  { %2613 = vmatprep.subr.bf16.mxu0 %v3104_v11 }
 0x641   :  { %2604 = vmatmul.mubr.msk.bf16.vlgmr.msra.gmra.mrb[20].mxu0 %vm282_vm2, %v828_v2 }
 0x642   :  { %2615 = vmatprep.mubr.msk.bf16.mxu0 %vm3105_vm1, %v3104_v11 }
 0x6f9   :  { %v3362_v3 = vpop.f32.mrb[16].mxu1 }
 0x6fa   :  { %v2587_v4 = vpop.f32.mrb[17].mxu1 }
 0x6fb   :  { %v3364_v5 = vpop.f32.mrb[18].mxu1 }
 0x6fc   :  { %v763_v6 = vpack.c.bf16 %v3364_v5, %v3362_v3  ;;  %v2588_v7 = vpop.f32.mrb[19].mxu1 }
 0x701   :  { %v820_v8 = vpop.f32.mrb[20].mxu1 }
 0x702   :  { %v821_v9 = vadd.f32 %v820_v8, %v3274_v45  ;;  %v2599_v10 = vpop.f32.mrb[21].mxu1 }
 0x703   :  { %v823_v12 = vpop.f32.mrb[22].mxu1 }
 0x704   :  { %v824_v13 = vadd.f32 %v823_v12, %v3276_v48  ;;  %v2600_v14 = vpop.f32.mrb[23].mxu1  ;;  %v878_v16 = vsel %vm380_vm3, %v821_v9, -inf }
 0x705   :  { %879 = vmax.xlane.f32.xlu1 %v878_v16 }
 0x706   :  { %v881_v18 = vsel %vm380_vm3, %v824_v13, -inf }
 0x707   :  { %882 = vmax.xlane.f32.xlu0 %v881_v18 }
 0x70c   :  { %v3372_v19 = vpop.f32.mrb[16].mxu0 }
 0x70d   :  { %v2593_v20 = vpop.f32.mrb[17].mxu0 }
 0x70e   :  { %v3374_v21 = vpop.f32.mrb[18].mxu0 }
 0x70f   :  { %v764_v23 = vpack.c.bf16 %v3374_v21, %v3372_v19  ;;  %v2594_v24 = vpop.f32.mrb[19].mxu0 }
 0x714   :  { %v871_v26 = vpop.f32.mrb[20].mxu0 }
 0x715   :  { %v872_v27 = vadd.f32 %v871_v26, %v3281_v58  ;;  %v2605_v28 = vpop.f32.mrb[21].mxu0 }
 0x716   :  { %v874_v29 = vpop.f32.mrb[22].mxu0 }
 0x717   :  { %v875_v30 = vadd.f32 %v874_v29, %v3284_v61  ;;  %v2606_v31 = vpop.f32.mrb[23].mxu0  ;;  %v884_v32 = vsel %vm380_vm3, %v872_v27, -inf }
 0x718   :  { %885 = vmax.xlane.f32.xlu0 %v884_v32 }
 0x719   :  { %v887_v33 = vsel %vm380_vm3, %v875_v30, -inf }
 0x71a   :  { %888 = vmax.xlane.f32.xlu1 %v887_v33 }
 0x72b   :  { %971 = vrot.lane.b32.xlu1 %v3254_v25, %s3109_s27 }
 0x72e   :  { %924 = vrot.lane.b32.xlu0 %v3248_v17, %s3109_s27 }
 0x72f   :  { %1033 = vrot.lane.b32.xlu1 %v3246_v15, %s3110_s28 }
 0x792   :  { %v880_v34 = vpop.xlane.xlu1 %879 }
 0x793   :  { %v890_v35 = vsub.f32 %v821_v9, %v880_v34 }
 0x794   :  { %v883_v36 = vpop.xlane.xlu0 %882 }
 0x795   :  { %v894_v37 = vmul.f32 1.442695, %v890_v35  ;;  %v891_v38 = vsub.f32 %v824_v13, %v883_v36 }
 0x797   :  { %2831 = vpow2.f32 %v894_v37  ;;  %v896_v39 = vmul.f32 1.442695, %v891_v38 }
 0x799   :  { %2833 = vpow2.f32 %v896_v39 }
 0x7a1   :  { %v2832_v40 = vpop.eup %2831 }
 0x7a2   :  { %v902_v41 = vsel %vm380_vm3, %v2832_v40, 0.0 }
 0x7a3   :  { %v2834_v42 = vpop.eup %2833  ;;  %903 = vadd.xlane.f32.xlu0 %v902_v41 }
 0x7a4   :  { %v905_v43 = vsel %vm380_vm3, %v2834_v42, 0.0 }
 0x7a5   :  { %v886_v44 = vpop.xlane.xlu0 %885  ;;  %906 = vadd.xlane.f32.xlu1 %v905_v43 }
 0x7a6   :  { %v892_v46 = vsub.f32 %v872_v27, %v886_v44 }
 0x7a7   :  { %v889_v47 = vpop.xlane.xlu1 %888 }
 0x7a8   :  { %v898_v49 = vmul.f32 1.442695, %v892_v46  ;;  %v893_v50 = vsub.f32 %v875_v30, %v889_v47 }
 0x7a9   :  { %v925_v51 = vpop.permute.xlu0 %924 }
 0x7aa   :  { %2835 = vpow2.f32 %v898_v49  ;;  %v900_v52 = vmul.f32 1.442695, %v893_v50  ;;  %2608 = vmatpush3.bf16.msra.mxu1 %v925_v51 }
 0x7ab   :  { %v972_v53 = vpop.permute.xlu1 %971  ;;  %2619 = vmatprep.subr.bf16.mxu1 %v3104_v11 }
 0x7ac   :  { %2837 = vpow2.f32 %v900_v52  ;;  %2614 = vmatpush3.bf16.msra.mxu0 %v972_v53 }
 0x7ad   :  { %2625 = vmatprep.subr.bf16.mxu0 %v3104_v11 }
 0x7af   :  { %v1034_v59 = vpop.permute.xlu1 %1033 }
 0x7b0   :  { %v1039_v7 = vsel %vm282_vm2, %v1034_v59, 0 }
 0x7b4   :  { %v2836_v54 = vpop.eup %2835 }
 0x7b5   :  { %v908_v55 = vsel %vm380_vm3, %v2836_v54, 0.0 }
 0x7b6   :  { %v2838_v56 = vpop.eup %2837  ;;  %909 = vadd.xlane.f32.xlu0 %v908_v55 }
 0x7b7   :  { %v911_v57 = vsel %vm380_vm3, %v2838_v56, 0.0 }
 0x7b8   :  { %912 = vadd.xlane.f32.xlu1 %v911_v57 }
 0x7c9   :  { %1031 = vrot.lane.b32.xlu1 %v3246_v15, %s3111_s29 }
 0x7cc   :  { %1084 = vrot.lane.b32.xlu0 %v3252_v22, %s3110_s28 }
 0x7d0   :  { %1082 = vrot.lane.b32.xlu0 %v3252_v22, %s3111_s29 }
 0x830   :  { %v904_v60 = vpop.xlane.xlu0 %903 }
 0x831   :  { %2839 = vrcp.f32 %v904_v60 }
 0x832   :  { %v907_v62 = vpop.xlane.xlu1 %906 }
 0x833   :  { %2841 = vrcp.f32 %v907_v62 }
 0x83b   :  { %v2840_v63 = vpop.eup %2839 }
 0x83c   :  { %v918_v1 = vmul.f32 %v2840_v63, %v2832_v40 }
 0x83d   :  { %v2842_v0 = vpop.eup %2841 }
 0x83e   :  { %v919_v2 = vmul.f32 %v2842_v0, %v2834_v42 }
 0x840   :  { %v922_v4 = vpack.c.bf16 %v919_v2, %v918_v1 }
 0x842   :  { %2610 = vmatmul.mubr.msk.bf16.vlgmr.msra.gmra.mrb[24].mxu1 %vm380_vm3, %v922_v4 }
 0x843   :  { %2620 = vmatpush3.bf16.xpose.msra.mxu1 %v1039_v7  ;;  %v910_v8 = vpop.xlane.xlu0 %909  ;;  %2621 = vmatprep.mubr.msk.bf16.mxu1 %vm3105_vm1, %v3104_v11 }
 0x844   :  { %2843 = vrcp.f32 %v910_v8  ;;  %2631 = vmatprep.subr.bf16.mxu1 %v3104_v11 }
 0x845   :  { %v913_v9 = vpop.xlane.xlu1 %912 }
 0x846   :  { %2845 = vrcp.f32 %v913_v9 }
 0x847   :  { %v1085_v18 = vpop.permute.xlu0 %1084 }
 0x848   :  { %v1090_v24 = vsel %vm282_vm2, %v1085_v18, 0 }
 0x849   :  { %v1032_v10 = vpop.permute.xlu1 %1031 }
 0x84a   :  { %2622 = vmatmul.mubr.msk.bf16.vlgmr.msra.gmra.mrb[28].mxu1 %vm282_vm2, %v1032_v10 }
 0x84b   :  { %2633 = vmatprep.mubr.msk.bf16.mxu1 %vm3105_vm1, %v3104_v11  ;;  %v1083_v26 = vpop.permute.xlu0 %1082 }
 0x84e   :  { %v2844_v12 = vpop.eup %2843 }
 0x84f   :  { %v920_v14 = vmul.f32 %v2844_v12, %v2836_v54 }
 0x850   :  { %v2846_v13 = vpop.eup %2845 }
 0x851   :  { %v921_v16 = vmul.f32 %v2846_v13, %v2838_v56 }
 0x853   :  { %v923_v20 = vpack.c.bf16 %v921_v16, %v920_v14 }
 0x855   :  { %2616 = vmatmul.mubr.msk.bf16.vlgmr.msra.gmra.mrb[24].mxu0 %vm380_vm3, %v923_v20 }
 0x856   :  { %2626 = vmatpush3.bf16.xpose.msra.mxu0 %v1090_v24  ;;  %2627 = vmatprep.mubr.msk.bf16.mxu0 %vm3105_vm1, %v3104_v11 }
 0x857   :  { %2637 = vmatprep.subr.bf16.mxu0 %v3104_v11 }
 0x85d   :  { %2628 = vmatmul.mubr.msk.bf16.vlgmr.msra.gmra.mrb[28].mxu0 %vm282_vm2, %v1083_v26 }
 0x85e   :  { %2639 = vmatprep.mubr.msk.bf16.mxu0 %vm3105_vm1, %v3104_v11 }
 0x915   :  { %v3416_v27 = vpop.f32.mrb[24].mxu1 }
 0x916   :  { %v2611_v28 = vpop.f32.mrb[25].mxu1 }
 0x917   :  { %v3418_v29 = vpop.f32.mrb[26].mxu1 }
 0x918   :  { %v1018_v30 = vpack.c.bf16 %v3418_v29, %v3416_v27  ;;  %v2612_v31 = vpop.f32.mrb[27].mxu1 }
 0x91d   :  { %v1075_v32 = vpop.f32.mrb[28].mxu1 }
 0x91e   :  { %v1076_v33 = vadd.f32 %v1075_v32, %v3274_v45  ;;  %v2623_v34 = vpop.f32.mrb[29].mxu1 }
 0x91f   :  { %v1078_v35 = vpop.f32.mrb[30].mxu1 }
 0x920   :  { %v1079_v36 = vadd.f32 %v1078_v35, %v3276_v48  ;;  %v2624_v37 = vpop.f32.mrb[31].mxu1  ;;  %v1133_v38 = vsel %vm380_vm3, %v1076_v33, -inf }
 0x921   :  { %1134 = vmax.xlane.f32.xlu1 %v1133_v38 }
 0x922   :  { %v1136_v39 = vsel %vm380_vm3, %v1079_v36, -inf }
 0x923   :  { %1137 = vmax.xlane.f32.xlu0 %v1136_v39 }
 0x928   :  { %v3426_v40 = vpop.f32.mrb[24].mxu0 }
 0x929   :  { %v2617_v41 = vpop.f32.mrb[25].mxu0 }
 0x92a   :  { %v3428_v42 = vpop.f32.mrb[26].mxu0 }
 0x92b   :  { %v1019_v43 = vpack.c.bf16 %v3428_v42, %v3426_v40  ;;  %v2618_v44 = vpop.f32.mrb[27].mxu0 }
 0x930   :  { %v1126_v46 = vpop.f32.mrb[28].mxu0 }
 0x931   :  { %v1127_v47 = vadd.f32 %v1126_v46, %v3281_v58  ;;  %v2629_v49 = vpop.f32.mrb[29].mxu0 }
 0x932   :  { %v1129_v50 = vpop.f32.mrb[30].mxu0 }
 0x933   :  { %v1130_v51 = vadd.f32 %v1129_v50, %v3284_v61  ;;  %v2630_v52 = vpop.f32.mrb[31].mxu0  ;;  %v1139_v53 = vsel %vm380_vm3, %v1127_v47, -inf }
 0x934   :  { %1140 = vmax.xlane.f32.xlu0 %v1139_v53 }
 0x935   :  { %v1142_v54 = vsel %vm380_vm3, %v1130_v51, -inf }
 0x936   :  { %1143 = vmax.xlane.f32.xlu1 %v1142_v54 }
 0x947   :  { %1226 = vrot.lane.b32.xlu1 %v3254_v25, %s3111_s29 }
 0x94a   :  { %1179 = vrot.lane.b32.xlu0 %v3248_v17, %s3111_s29 }
 0x94b   :  { %1288 = vrot.lane.b32.xlu1 %v3246_v15, %s3112_s30 }
 0x9ae   :  { %v1135_v55 = vpop.xlane.xlu1 %1134 }
 0x9af   :  { %v1145_v56 = vsub.f32 %v1076_v33, %v1135_v55 }
 0x9b0   :  { %v1138_v57 = vpop.xlane.xlu0 %1137 }
 0x9b1   :  { %v1149_v59 = vmul.f32 1.442695, %v1145_v56  ;;  %v1146_v60 = vsub.f32 %v1079_v36, %v1138_v57 }
 0x9b3   :  { %2847 = vpow2.f32 %v1149_v59  ;;  %v1151_v62 = vmul.f32 1.442695, %v1146_v60 }
 0x9b5   :  { %2849 = vpow2.f32 %v1151_v62 }
 0x9bd   :  { %v2848_v63 = vpop.eup %2847 }
 0x9be   :  { %v1157_v0 = vsel %vm380_vm3, %v2848_v63, 0.0 }
 0x9bf   :  { %v2850_v1 = vpop.eup %2849  ;;  %1158 = vadd.xlane.f32.xlu0 %v1157_v0 }
 0x9c0   :  { %v1160_v2 = vsel %vm380_vm3, %v2850_v1, 0.0 }
 0x9c1   :  { %v1141_v4 = vpop.xlane.xlu0 %1140  ;;  %1161 = vadd.xlane.f32.xlu1 %v1160_v2 }
 0x9c2   :  { %v1147_v7 = vsub.f32 %v1127_v47, %v1141_v4 }
 0x9c3   :  { %v1144_v8 = vpop.xlane.xlu1 %1143 }
 0x9c4   :  { %v1153_v9 = vmul.f32 1.442695, %v1147_v7  ;;  %v1148_v10 = vsub.f32 %v1130_v51, %v1144_v8 }
 0x9c5   :  { %v1180_v12 = vpop.permute.xlu0 %1179 }
 0x9c6   :  { %2851 = vpow2.f32 %v1153_v9  ;;  %v1155_v13 = vmul.f32 1.442695, %v1148_v10  ;;  %2632 = vmatpush3.bf16.msra.mxu1 %v1180_v12 }
 0x9c7   :  { %v1227_v14 = vpop.permute.xlu1 %1226  ;;  %2643 = vmatprep.subr.bf16.mxu1 %v3104_v11 }
 0x9c8   :  { %2853 = vpow2.f32 %v1155_v13  ;;  %2638 = vmatpush3.bf16.msra.mxu0 %v1227_v14 }
 0x9c9   :  { %2649 = vmatprep.subr.bf16.mxu0 %v3104_v11 }
 0x9cb   :  { %v1289_v26 = vpop.permute.xlu1 %1288 }
 0x9cc   :  { %v1294_v37 = vsel %vm282_vm2, %v1289_v26, 0 }
 0x9d0   :  { %v2852_v16 = vpop.eup %2851 }
 0x9d1   :  { %v1163_v18 = vsel %vm380_vm3, %v2852_v16, 0.0 }
 0x9d2   :  { %v2854_v20 = vpop.eup %2853  ;;  %1164 = vadd.xlane.f32.xlu0 %v1163_v18 }
 0x9d3   :  { %v1166_v24 = vsel %vm380_vm3, %v2854_v20, 0.0 }
 0x9d4   :  { %1167 = vadd.xlane.f32.xlu1 %v1166_v24 }
 0x9e5   :  { %1286 = vrot.lane.b32.xlu1 %v3246_v15, %s3113_s8 }
 0x9e8   :  { %1339 = vrot.lane.b32.xlu0 %v3252_v22, %s3112_s30 }
 0x9ec   :  { %1337 = vrot.lane.b32.xlu0 %v3252_v22, %s3113_s8 }
 0xa4c   :  { %v1159_v28 = vpop.xlane.xlu0 %1158 }
 0xa4d   :  { %2855 = vrcp.f32 %v1159_v28 }
 0xa4e   :  { %v1162_v31 = vpop.xlane.xlu1 %1161 }
 0xa4f   :  { %2857 = vrcp.f32 %v1162_v31 }
 0xa57   :  { %v2856_v32 = vpop.eup %2855 }
 0xa58   :  { %v1173_v34 = vmul.f32 %v2856_v32, %v2848_v63 }
 0xa59   :  { %v2858_v33 = vpop.eup %2857 }
 0xa5a   :  { %v1174_v35 = vmul.f32 %v2858_v33, %v2850_v1 }
 0xa5c   :  { %v1177_v36 = vpack.c.bf16 %v1174_v35, %v1173_v34 }
 0xa5e   :  { %2634 = vmatmul.mubr.msk.bf16.vlgmr.msra.gmra.mrb[32].mxu1 %vm380_vm3, %v1177_v36 }
 0xa5f   :  { %2644 = vmatpush3.bf16.xpose.msra.mxu1 %v1294_v37  ;;  %v1165_v38 = vpop.xlane.xlu0 %1164  ;;  %2645 = vmatprep.mubr.msk.bf16.mxu1 %vm3105_vm1, %v3104_v11 }
 0xa60   :  { %2859 = vrcp.f32 %v1165_v38  ;;  %2655 = vmatprep.subr.bf16.mxu1 %v3104_v11 }
 0xa61   :  { %v1168_v39 = vpop.xlane.xlu1 %1167 }
 0xa62   :  { %2861 = vrcp.f32 %v1168_v39 }
 0xa63   :  { %v1340_v50 = vpop.permute.xlu0 %1339 }
 0xa64   :  { %v1345_v52 = vsel %vm282_vm2, %v1340_v50, 0 }
 0xa65   :  { %v1287_v41 = vpop.permute.xlu1 %1286 }
 0xa66   :  { %2646 = vmatmul.mubr.msk.bf16.vlgmr.msra.gmra.mrb[36].mxu1 %vm282_vm2, %v1287_v41 }
 0xa67   :  { %2657 = vmatprep.mubr.msk.bf16.mxu1 %vm3105_vm1, %v3104_v11  ;;  %v1338_v53 = vpop.permute.xlu0 %1337 }
 0xa6a   :  { %v2860_v44 = vpop.eup %2859 }
 0xa6b   :  { %v1175_v47 = vmul.f32 %v2860_v44, %v2852_v16 }
 0xa6c   :  { %v2862_v46 = vpop.eup %2861 }
 0xa6d   :  { %v1176_v49 = vmul.f32 %v2862_v46, %v2854_v20 }
 0xa6f   :  { %v1178_v51 = vpack.c.bf16 %v1176_v49, %v1175_v47 }
 0xa71   :  { %2640 = vmatmul.mubr.msk.bf16.vlgmr.msra.gmra.mrb[32].mxu0 %vm380_vm3, %v1178_v51 }
 0xa72   :  { %2650 = vmatpush3.bf16.xpose.msra.mxu0 %v1345_v52  ;;  %2651 = vmatprep.mubr.msk.bf16.mxu0 %vm3105_vm1, %v3104_v11 }
 0xa73   :  { %2661 = vmatprep.subr.bf16.mxu0 %v3104_v11 }
 0xa79   :  { %2652 = vmatmul.mubr.msk.bf16.vlgmr.msra.gmra.mrb[36].mxu0 %vm282_vm2, %v1338_v53 }
 0xa7a   :  { %2663 = vmatprep.mubr.msk.bf16.mxu0 %vm3105_vm1, %v3104_v11 }
 0xb31   :  { %v3470_v54 = vpop.f32.mrb[32].mxu1 }
 0xb32   :  { %v2635_v55 = vpop.f32.mrb[33].mxu1 }
 0xb33   :  { %v3472_v56 = vpop.f32.mrb[34].mxu1 }
 0xb34   :  { %v1273_v57 = vpack.c.bf16 %v3472_v56, %v3470_v54  ;;  %v2636_v59 = vpop.f32.mrb[35].mxu1 }
 0xb39   :  { %v1330_v60 = vpop.f32.mrb[36].mxu1 }
 0xb3a   :  { %v1331_v62 = vadd.f32 %v1330_v60, %v3274_v45  ;;  %v2647_v63 = vpop.f32.mrb[37].mxu1 }
 0xb3b   :  { %v1333_v0 = vpop.f32.mrb[38].mxu1 }
 0xb3c   :  { %v1334_v1 = vadd.f32 %v1333_v0, %v3276_v48  ;;  %v2648_v2 = vpop.f32.mrb[39].mxu1  ;;  %v1388_v4 = vsel %vm380_vm3, %v1331_v62, -inf }
 0xb3d   :  { %1389 = vmax.xlane.f32.xlu1 %v1388_v4 }
 0xb3e   :  { %v1391_v7 = vsel %vm380_vm3, %v1334_v1, -inf }
 0xb3f   :  { %1392 = vmax.xlane.f32.xlu0 %v1391_v7 }
 0xb44   :  { %v3480_v8 = vpop.f32.mrb[32].mxu0 }
 0xb45   :  { %v2641_v9 = vpop.f32.mrb[33].mxu0 }
 0xb46   :  { %v3482_v10 = vpop.f32.mrb[34].mxu0 }
 0xb47   :  { %v1274_v12 = vpack.c.bf16 %v3482_v10, %v3480_v8  ;;  %v2642_v13 = vpop.f32.mrb[35].mxu0 }
 0xb4c   :  { %v1381_v14 = vpop.f32.mrb[36].mxu0 }
 0xb4d   :  { %v1382_v16 = vadd.f32 %v1381_v14, %v3281_v58  ;;  %v2653_v18 = vpop.f32.mrb[37].mxu0 }
 0xb4e   :  { %v1384_v20 = vpop.f32.mrb[38].mxu0 }
 0xb4f   :  { %v1385_v24 = vadd.f32 %v1384_v20, %v3284_v61  ;;  %v2654_v26 = vpop.f32.mrb[39].mxu0  ;;  %v1394_v28 = vsel %vm380_vm3, %v1382_v16, -inf }
 0xb50   :  { %1395 = vmax.xlane.f32.xlu0 %v1394_v28 }
 0xb51   :  { %v1397_v31 = vsel %vm380_vm3, %v1385_v24, -inf }
 0xb52   :  { %1398 = vmax.xlane.f32.xlu1 %v1397_v31 }
 0xb63   :  { %1481 = vrot.lane.b32.xlu1 %v3254_v25, %s3113_s8 }
 0xb66   :  { %1434 = vrot.lane.b32.xlu0 %v3248_v17, %s3113_s8 }
 0xb67   :  { %1543 = vrot.lane.b32.xlu1 %v3246_v15, %s3114_s9 }
 0xbca   :  { %v1390_v32 = vpop.xlane.xlu1 %1389 }
 0xbcb   :  { %v1400_v33 = vsub.f32 %v1331_v62, %v1390_v32 }
 0xbcc   :  { %v1393_v34 = vpop.xlane.xlu0 %1392 }
 0xbcd   :  { %v1404_v35 = vmul.f32 1.442695, %v1400_v33  ;;  %v1401_v36 = vsub.f32 %v1334_v1, %v1393_v34 }
 0xbcf   :  { %2863 = vpow2.f32 %v1404_v35  ;;  %v1406_v37 = vmul.f32 1.442695, %v1401_v36 }
 0xbd1   :  { %2865 = vpow2.f32 %v1406_v37 }
 0xbd9   :  { %v2864_v38 = vpop.eup %2863 }
 0xbda   :  { %v1412_v39 = vsel %vm380_vm3, %v2864_v38, 0.0 }
 0xbdb   :  { %v2866_v41 = vpop.eup %2865  ;;  %1413 = vadd.xlane.f32.xlu0 %v1412_v39 }
 0xbdc   :  { %v1415_v44 = vsel %vm380_vm3, %v2866_v41, 0.0 }
 0xbdd   :  { %v1396_v46 = vpop.xlane.xlu0 %1395  ;;  %1416 = vadd.xlane.f32.xlu1 %v1415_v44 }
 0xbde   :  { %v1402_v47 = vsub.f32 %v1382_v16, %v1396_v46 }
 0xbdf   :  { %v1399_v49 = vpop.xlane.xlu1 %1398 }
 0xbe0   :  { %v1408_v50 = vmul.f32 1.442695, %v1402_v47  ;;  %v1403_v51 = vsub.f32 %v1385_v24, %v1399_v49 }
 0xbe1   :  { %v1435_v52 = vpop.permute.xlu0 %1434 }
 0xbe2   :  { %2867 = vpow2.f32 %v1408_v50  ;;  %v1410_v53 = vmul.f32 1.442695, %v1403_v51  ;;  %2656 = vmatpush3.bf16.msra.mxu1 %v1435_v52 }
 0xbe3   :  { %v1482_v55 = vpop.permute.xlu1 %1481  ;;  %2667 = vmatprep.subr.bf16.mxu1 %v3104_v11 }
 0xbe4   :  { %2869 = vpow2.f32 %v1410_v53  ;;  %2662 = vmatpush3.bf16.msra.mxu0 %v1482_v55 }
 0xbe5   :  { %2673 = vmatprep.subr.bf16.mxu0 %v3104_v11 }
 0xbe7   :  { %v1544_v0 = vpop.permute.xlu1 %1543 }
 0xbe8   :  { %v1549_v16 = vsel %vm282_vm2, %v1544_v0, 0 }
 0xbec   :  { %v2868_v59 = vpop.eup %2867 }
 0xbed   :  { %v1418_v60 = vsel %vm380_vm3, %v2868_v59, 0.0 }
 0xbee   :  { %v2870_v62 = vpop.eup %2869  ;;  %1419 = vadd.xlane.f32.xlu0 %v1418_v60 }
 0xbef   :  { %v1421_v63 = vsel %vm380_vm3, %v2870_v62, 0.0 }
 0xbf0   :  { %1422 = vadd.xlane.f32.xlu1 %v1421_v63 }
 0xc01   :  { %1541 = vrot.lane.b32.xlu1 %v3246_v15, %s3115_s10 }
 0xc04   :  { %1594 = vrot.lane.b32.xlu0 %v3252_v22, %s3114_s9 }
 0xc08   :  { %1592 = vrot.lane.b32.xlu0 %v3252_v22, %s3115_s10 }
 0xc68   :  { %v1414_v1 = vpop.xlane.xlu0 %1413 }
 0xc69   :  { %2871 = vrcp.f32 %v1414_v1 }
 0xc6a   :  { %v1417_v2 = vpop.xlane.xlu1 %1416 }
 0xc6b   :  { %2873 = vrcp.f32 %v1417_v2 }
 0xc73   :  { %v2872_v4 = vpop.eup %2871 }
 0xc74   :  { %v1428_v9 = vmul.f32 %v2872_v4, %v2864_v38 }
 0xc75   :  { %v2874_v7 = vpop.eup %2873 }
 0xc76   :  { %v1429_v13 = vmul.f32 %v2874_v7, %v2866_v41 }
 0xc78   :  { %v1432_v14 = vpack.c.bf16 %v1429_v13, %v1428_v9 }
 0xc7a   :  { %2658 = vmatmul.mubr.msk.bf16.vlgmr.msra.gmra.mrb[40].mxu1 %vm380_vm3, %v1432_v14 }
 0xc7b   :  { %2668 = vmatpush3.bf16.xpose.msra.mxu1 %v1549_v16  ;;  %v1420_v18 = vpop.xlane.xlu0 %1419  ;;  %2669 = vmatprep.mubr.msk.bf16.mxu1 %vm3105_vm1, %v3104_v11 }
 0xc7c   :  { %2875 = vrcp.f32 %v1420_v18  ;;  %2679 = vmatprep.subr.bf16.mxu1 %v3104_v11 }
 0xc7d   :  { %v1423_v20 = vpop.xlane.xlu1 %1422 }
 0xc7e   :  { %2877 = vrcp.f32 %v1423_v20 }
 0xc7f   :  { %v1595_v33 = vpop.permute.xlu0 %1594 }
 0xc80   :  { %v1600_v35 = vsel %vm282_vm2, %v1595_v33, 0 }
 0xc81   :  { %v1542_v24 = vpop.permute.xlu1 %1541 }
 0xc82   :  { %2670 = vmatmul.mubr.msk.bf16.vlgmr.msra.gmra.mrb[44].mxu1 %vm282_vm2, %v1542_v24 }
 0xc83   :  { %2681 = vmatprep.mubr.msk.bf16.mxu1 %vm3105_vm1, %v3104_v11  ;;  %v1593_v36 = vpop.permute.xlu0 %1592 }
 0xc86   :  { %v2876_v26 = vpop.eup %2875 }
 0xc87   :  { %v1430_v31 = vmul.f32 %v2876_v26, %v2868_v59 }
 0xc88   :  { %v2878_v28 = vpop.eup %2877 }
 0xc89   :  { %v1431_v32 = vmul.f32 %v2878_v28, %v2870_v62 }
 0xc8b   :  { %v1433_v34 = vpack.c.bf16 %v1431_v32, %v1430_v31 }
 0xc8d   :  { %2664 = vmatmul.mubr.msk.bf16.vlgmr.msra.gmra.mrb[40].mxu0 %vm380_vm3, %v1433_v34 }
 0xc8e   :  { %2674 = vmatpush3.bf16.xpose.msra.mxu0 %v1600_v35  ;;  %2675 = vmatprep.mubr.msk.bf16.mxu0 %vm3105_vm1, %v3104_v11 }
 0xc8f   :  { %2685 = vmatprep.subr.bf16.mxu0 %v3104_v11 }
 0xc95   :  { %2676 = vmatmul.mubr.msk.bf16.vlgmr.msra.gmra.mrb[44].mxu0 %vm282_vm2, %v1593_v36 }
 0xc96   :  { %2687 = vmatprep.mubr.msk.bf16.mxu0 %vm3105_vm1, %v3104_v11 }
 0xd4d   :  { %v3524_v37 = vpop.f32.mrb[40].mxu1 }
 0xd4e   :  { %v2659_v38 = vpop.f32.mrb[41].mxu1 }
 0xd4f   :  { %v3526_v39 = vpop.f32.mrb[42].mxu1 }
 0xd50   :  { %v1528_v41 = vpack.c.bf16 %v3526_v39, %v3524_v37  ;;  %v2660_v44 = vpop.f32.mrb[43].mxu1 }
 0xd55   :  { %v1585_v46 = vpop.f32.mrb[44].mxu1 }
 0xd56   :  { %v1586_v47 = vadd.f32 %v1585_v46, %v3274_v45  ;;  %v2671_v49 = vpop.f32.mrb[45].mxu1 }
 0xd57   :  { %v1588_v50 = vpop.f32.mrb[46].mxu1 }
 0xd58   :  { %v1589_v51 = vadd.f32 %v1588_v50, %v3276_v48  ;;  %v2672_v52 = vpop.f32.mrb[47].mxu1  ;;  %v1643_v53 = vsel %vm380_vm3, %v1586_v47, -inf }
 0xd59   :  { %1644 = vmax.xlane.f32.xlu1 %v1643_v53 }
 0xd5a   :  { %v1646_v55 = vsel %vm380_vm3, %v1589_v51, -inf }
 0xd5b   :  { %1647 = vmax.xlane.f32.xlu0 %v1646_v55 }
 0xd60   :  { %v3534_v59 = vpop.f32.mrb[40].mxu0 }
 0xd61   :  { %v2665_v60 = vpop.f32.mrb[41].mxu0 }
 0xd62   :  { %v3536_v62 = vpop.f32.mrb[42].mxu0 }
 0xd63   :  { %v1529_v63 = vpack.c.bf16 %v3536_v62, %v3534_v59  ;;  %v2666_v0 = vpop.f32.mrb[43].mxu0 }
 0xd68   :  { %v1636_v1 = vpop.f32.mrb[44].mxu0 }
 0xd69   :  { %v1637_v2 = vadd.f32 %v1636_v1, %v3281_v58  ;;  %v2677_v4 = vpop.f32.mrb[45].mxu0 }
 0xd6a   :  { %v1639_v7 = vpop.f32.mrb[46].mxu0 }
 0xd6b   :  { %v1640_v9 = vadd.f32 %v1639_v7, %v3284_v61  ;;  %v2678_v13 = vpop.f32.mrb[47].mxu0  ;;  %v1649_v14 = vsel %vm380_vm3, %v1637_v2, -inf }
 0xd6c   :  { %1650 = vmax.xlane.f32.xlu0 %v1649_v14 }
 0xd6d   :  { %v1652_v16 = vsel %vm380_vm3, %v1640_v9, -inf }
 0xd6e   :  { %1653 = vmax.xlane.f32.xlu1 %v1652_v16 }
 0xd7f   :  { %1736 = vrot.lane.b32.xlu1 %v3254_v25, %s3115_s10 }
 0xd82   :  { %1689 = vrot.lane.b32.xlu0 %v3248_v17, %s3115_s10 }
 0xd83   :  { %1798 = vrot.lane.b32.xlu1 %v3246_v15, %s3092_s7 }
 0xde6   :  { %v1645_v18 = vpop.xlane.xlu1 %1644 }
 0xde7   :  { %v1655_v20 = vsub.f32 %v1586_v47, %v1645_v18 }
 0xde8   :  { %v1648_v24 = vpop.xlane.xlu0 %1647 }
 0xde9   :  { %v1659_v26 = vmul.f32 1.442695, %v1655_v20  ;;  %v1656_v28 = vsub.f32 %v1589_v51, %v1648_v24 }
 0xdeb   :  { %2879 = vpow2.f32 %v1659_v26  ;;  %v1661_v31 = vmul.f32 1.442695, %v1656_v28 }
 0xded   :  { %2881 = vpow2.f32 %v1661_v31 }
 0xdf5   :  { %v2880_v32 = vpop.eup %2879 }
 0xdf6   :  { %v1667_v33 = vsel %vm380_vm3, %v2880_v32, 0.0 }
 0xdf7   :  { %v2882_v34 = vpop.eup %2881  ;;  %1668 = vadd.xlane.f32.xlu0 %v1667_v33 }
 0xdf8   :  { %v1670_v35 = vsel %vm380_vm3, %v2882_v34, 0.0 }
 0xdf9   :  { %v1651_v36 = vpop.xlane.xlu0 %1650  ;;  %1671 = vadd.xlane.f32.xlu1 %v1670_v35 }
 0xdfa   :  { %v1657_v38 = vsub.f32 %v1637_v2, %v1651_v36 }
 0xdfb   :  { %v1654_v44 = vpop.xlane.xlu1 %1653 }
 0xdfc   :  { %v1663_v46 = vmul.f32 1.442695, %v1657_v38  ;;  %v1658_v49 = vsub.f32 %v1640_v9, %v1654_v44 }
 0xdfd   :  { %v1690_v47 = vpop.permute.xlu0 %1689 }
 0xdfe   :  { %2883 = vpow2.f32 %v1663_v46  ;;  %v1665_v50 = vmul.f32 1.442695, %v1658_v49  ;;  %2680 = vmatpush3.bf16.msra.mxu1 %v1690_v47 }
 0xdff   :  { %v1737_v51 = vpop.permute.xlu1 %1736  ;;  %2691 = vmatprep.subr.bf16.mxu1 %v3104_v11 }
 0xe00   :  { %2885 = vpow2.f32 %v1665_v50  ;;  %2686 = vmatpush3.bf16.msra.mxu0 %v1737_v51 }
 0xe01   :  { %2697 = vmatprep.subr.bf16.mxu0 %v3104_v11 }
 0xe03   :  { %v1799_v0 = vpop.permute.xlu1 %1798 }
 0xe04   :  { %v1804_v16 = vsel %vm282_vm2, %v1799_v0, 0 }
 0xe08   :  { %v2884_v52 = vpop.eup %2883 }
 0xe09   :  { %v1673_v53 = vsel %vm380_vm3, %v2884_v52, 0.0 }
 0xe0a   :  { %v2886_v55 = vpop.eup %2885  ;;  %1674 = vadd.xlane.f32.xlu0 %v1673_v53 }
 0xe0b   :  { %v1676_v60 = vsel %vm380_vm3, %v2886_v55, 0.0 }
 0xe0c   :  { %1677 = vadd.xlane.f32.xlu1 %v1676_v60 }
 0xe1d   :  { %1796 = vrot.lane.b32.xlu1 %v3246_v15, %s3116_s3 }
 0xe20   :  { %1849 = vrot.lane.b32.xlu0 %v3252_v22, %s3092_s7 }
 0xe24   :  { %1847 = vrot.lane.b32.xlu0 %v3252_v22, %s3116_s3 }
 0xe84   :  { %v1669_v1 = vpop.xlane.xlu0 %1668 }
 0xe85   :  { %2887 = vrcp.f32 %v1669_v1 }
 0xe86   :  { %v1672_v2 = vpop.xlane.xlu1 %1671 }
 0xe87   :  { %2889 = vrcp.f32 %v1672_v2 }
 0xe8f   :  { %v2888_v4 = vpop.eup %2887 }
 0xe90   :  { %v1683_v9 = vmul.f32 %v2888_v4, %v2880_v32 }
 0xe91   :  { %v2890_v7 = vpop.eup %2889 }
 0xe92   :  { %v1684_v13 = vmul.f32 %v2890_v7, %v2882_v34 }
 0xe94   :  { %v1687_v14 = vpack.c.bf16 %v1684_v13, %v1683_v9 }
 0xe96   :  { %2682 = vmatmul.mubr.msk.bf16.vlgmr.msra.gmra.mrb[48].mxu1 %vm380_vm3, %v1687_v14 }
 0xe97   :  { %2692 = vmatpush3.bf16.xpose.msra.mxu1 %v1804_v16  ;;  %v1675_v18 = vpop.xlane.xlu0 %1674  ;;  %2693 = vmatprep.mubr.msk.bf16.mxu1 %vm3105_vm1, %v3104_v11 }
 0xe98   :  { %2891 = vrcp.f32 %v1675_v18  ;;  %2703 = vmatprep.subr.bf16.mxu1 %v3104_v11 }
 0xe99   :  { %v1678_v20 = vpop.xlane.xlu1 %1677 }
 0xe9a   :  { %2893 = vrcp.f32 %v1678_v20 }
 0xe9b   :  { %v1850_v33 = vpop.permute.xlu0 %1849 }
 0xe9c   :  { %v1855_v35 = vsel %vm282_vm2, %v1850_v33, 0 }
 0xe9d   :  { %v1797_v24 = vpop.permute.xlu1 %1796 }
 0xe9e   :  { %2694 = vmatmul.mubr.msk.bf16.vlgmr.msra.gmra.mrb[52].mxu1 %vm282_vm2, %v1797_v24 }
 0xe9f   :  { %2705 = vmatprep.mubr.msk.bf16.mxu1 %vm3105_vm1, %v3104_v11  ;;  %v1848_v36 = vpop.permute.xlu0 %1847 }
 0xea2   :  { %v2892_v26 = vpop.eup %2891 }
 0xea3   :  { %v1685_v31 = vmul.f32 %v2892_v26, %v2884_v52 }
 0xea4   :  { %v2894_v28 = vpop.eup %2893 }
 0xea5   :  { %v1686_v32 = vmul.f32 %v2894_v28, %v2886_v55 }
 0xea7   :  { %v1688_v34 = vpack.c.bf16 %v1686_v32, %v1685_v31 }
 0xea9   :  { %2688 = vmatmul.mubr.msk.bf16.vlgmr.msra.gmra.mrb[48].mxu0 %vm380_vm3, %v1688_v34 }
 0xeaa   :  { %2698 = vmatpush3.bf16.xpose.msra.mxu0 %v1855_v35  ;;  %2699 = vmatprep.mubr.msk.bf16.mxu0 %vm3105_vm1, %v3104_v11 }
 0xeab   :  { %2709 = vmatprep.subr.bf16.mxu0 %v3104_v11 }
 0xeb1   :  { %2700 = vmatmul.mubr.msk.bf16.vlgmr.msra.gmra.mrb[52].mxu0 %vm282_vm2, %v1848_v36 }
 0xeb2   :  { %2711 = vmatprep.mubr.msk.bf16.mxu0 %vm3105_vm1, %v3104_v11 }
 0xf69   :  { %v3578_v38 = vpop.f32.mrb[48].mxu1 }
 0xf6a   :  { %v2683_v44 = vpop.f32.mrb[49].mxu1 }
 0xf6b   :  { %v3580_v46 = vpop.f32.mrb[50].mxu1 }
 0xf6c   :  { %v1783_v49 = vpack.c.bf16 %v3580_v46, %v3578_v38  ;;  %v2684_v47 = vpop.f32.mrb[51].mxu1 }
 0xf71   :  { %v1840_v50 = vpop.f32.mrb[52].mxu1 }
 0xf72   :  { %v1841_v51 = vadd.f32 %v1840_v50, %v3274_v45  ;;  %v2695_v52 = vpop.f32.mrb[53].mxu1 }
 0xf73   :  { %v1843_v53 = vpop.f32.mrb[54].mxu1 }
 0xf74   :  { %v1844_v55 = vadd.f32 %v1843_v53, %v3276_v48  ;;  %v2696_v60 = vpop.f32.mrb[55].mxu1  ;;  %v1898_v0 = vsel %vm380_vm3, %v1841_v51, -inf }
 0xf75   :  { %1899 = vmax.xlane.f32.xlu1 %v1898_v0 }
 0xf76   :  { %v1901_v1 = vsel %vm380_vm3, %v1844_v55, -inf }
 0xf77   :  { %1902 = vmax.xlane.f32.xlu0 %v1901_v1 }
 0xf7c   :  { %v3588_v2 = vpop.f32.mrb[48].mxu0 }
 0xf7d   :  { %v2689_v4 = vpop.f32.mrb[49].mxu0 }
 0xf7e   :  { %v3590_v7 = vpop.f32.mrb[50].mxu0 }
 0xf7f   :  { %v1784_v9 = vpack.c.bf16 %v3590_v7, %v3588_v2  ;;  %v2690_v13 = vpop.f32.mrb[51].mxu0  ;;  %v2796_v2 = vld [vmem:[#allocation11 + $0x8] sm:$0xff]  }
 0xf84   :  { %v1891_v14 = vpop.f32.mrb[52].mxu0 }
 0xf85   :  { %v1892_v16 = vadd.f32 %v1891_v14, %v3281_v58  ;;  %v2701_v18 = vpop.f32.mrb[53].mxu0 }
 0xf86   :  { %v1894_v20 = vpop.f32.mrb[54].mxu0 }
 0xf87   :  { %v1895_v24 = vadd.f32 %v1894_v20, %v3284_v61  ;;  %v2702_v26 = vpop.f32.mrb[55].mxu0  ;;  %v1904_v28 = vsel %vm380_vm3, %v1892_v16, -inf }
 0xf88   :  { %1905 = vmax.xlane.f32.xlu0 %v1904_v28 }
 0xf89   :  { %v1907_v31 = vsel %vm380_vm3, %v1895_v24, -inf }
 0xf8a   :  { %1908 = vmax.xlane.f32.xlu1 %v1907_v31 }
 0xf9b   :  { %1991 = vrot.lane.b32.xlu1 %v3254_v25, %s3116_s3 }
 0xf9e   :  { %1944 = vrot.lane.b32.xlu0 %v3248_v17, %s3116_s3 }
 0xf9f   :  { %2053 = vrot.lane.b32.xlu1 %v3246_v15, %s3097_s23 }
0x1002   :  { %v1900_v32 = vpop.xlane.xlu1 %1899 }
0x1003   :  { %v1910_v33 = vsub.f32 %v1841_v51, %v1900_v32 }
0x1004   :  { %v1903_v34 = vpop.xlane.xlu0 %1902 }
0x1005   :  { %v1914_v35 = vmul.f32 1.442695, %v1910_v33  ;;  %v1911_v36 = vsub.f32 %v1844_v55, %v1903_v34 }
0x1007   :  { %2895 = vpow2.f32 %v1914_v35  ;;  %v1916_v44 = vmul.f32 1.442695, %v1911_v36 }
0x1009   :  { %2897 = vpow2.f32 %v1916_v44 }
0x1011   :  { %v2896_v47 = vpop.eup %2895 }
0x1012   :  { %v1922_v50 = vsel %vm380_vm3, %v2896_v47, 0.0 }
0x1013   :  { %v2898_v52 = vpop.eup %2897  ;;  %1923 = vadd.xlane.f32.xlu0 %v1922_v50 }
0x1014   :  { %v1925_v53 = vsel %vm380_vm3, %v2898_v52, 0.0 }
0x1015   :  { %v1906_v60 = vpop.xlane.xlu0 %1905  ;;  %1926 = vadd.xlane.f32.xlu1 %v1925_v53 }
0x1016   :  { %v1912_v0 = vsub.f32 %v1892_v16, %v1906_v60 }
0x1017   :  { %v1909_v1 = vpop.xlane.xlu1 %1908 }
0x1018   :  { %v1918_v4 = vmul.f32 1.442695, %v1912_v0  ;;  %v1913_v13 = vsub.f32 %v1895_v24, %v1909_v1 }
0x1019   :  { %v1945_v51 = vpop.permute.xlu0 %1944 }
0x101a   :  { %2899 = vpow2.f32 %v1918_v4  ;;  %v1920_v14 = vmul.f32 1.442695, %v1913_v13  ;;  %2704 = vmatpush3.bf16.msra.mxu1 %v1945_v51 }
0x101b   :  { %v1992_v55 = vpop.permute.xlu1 %1991  ;;  %2715 = vmatprep.subr.bf16.mxu1 %v3104_v11 }
0x101c   :  { %2901 = vpow2.f32 %v1920_v14  ;;  %2710 = vmatpush3.bf16.msra.mxu0 %v1992_v55 }
0x101d   :  { %2721 = vmatprep.subr.bf16.mxu0 %v3104_v11 }
0x101f   :  { %v2054_v24 = vpop.permute.xlu1 %2053 }
0x1020   :  { %v2059_v44 = vsel %vm282_vm2, %v2054_v24, 0 }
0x1024   :  { %v2900_v18 = vpop.eup %2899 }
0x1025   :  { %v1928_v20 = vsel %vm380_vm3, %v2900_v18, 0.0 }
0x1026   :  { %v2902_v26 = vpop.eup %2901  ;;  %1929 = vadd.xlane.f32.xlu0 %v1928_v20 }
0x1027   :  { %v1931_v16 = vsel %vm380_vm3, %v2902_v26, 0.0 }
0x1028   :  { %1932 = vadd.xlane.f32.xlu1 %v1931_v16 }
0x1039   :  { %2051 = vrot.lane.b32.xlu1 %v3246_v15, %s3117_s11 }
0x103c   :  { %2104 = vrot.lane.b32.xlu0 %v3252_v22, %s3097_s23 }
0x1040   :  { %2102 = vrot.lane.b32.xlu0 %v3252_v22, %s3117_s11 }
0x10a0   :  { %v1924_v28 = vpop.xlane.xlu0 %1923 }
0x10a1   :  { %2903 = vrcp.f32 %v1924_v28 }
0x10a2   :  { %v1927_v31 = vpop.xlane.xlu1 %1926 }
0x10a3   :  { %2905 = vrcp.f32 %v1927_v31 }
0x10ab   :  { %v2904_v32 = vpop.eup %2903 }
0x10ac   :  { %v1938_v34 = vmul.f32 %v2904_v32, %v2896_v47 }
0x10ad   :  { %v2906_v33 = vpop.eup %2905 }
0x10ae   :  { %v1939_v35 = vmul.f32 %v2906_v33, %v2898_v52 }
0x10b0   :  { %v1942_v36 = vpack.c.bf16 %v1939_v35, %v1938_v34 }
0x10b2   :  { %2706 = vmatmul.mubr.msk.bf16.vlgmr.msra.gmra.mrb[56].mxu1 %vm380_vm3, %v1942_v36 }
0x10b3   :  { %2716 = vmatpush3.bf16.xpose.msra.mxu1 %v2059_v44  ;;  %v1930_v15 = vpop.xlane.xlu0 %1929  ;;  %2717 = vmatprep.mubr.msk.bf16.mxu1 %vm3105_vm1, %v3104_v11 }
0x10b4   :  { %2907 = vrcp.f32 %v1930_v15  ;;  %2727 = vmatprep.subr.bf16.mxu1 %v3104_v11 }
0x10b5   :  { %v1933_v22 = vpop.xlane.xlu1 %1932 }
0x10b6   :  { %2909 = vrcp.f32 %v1933_v22 }
0x10b7   :  { %v2105_v0 = vpop.permute.xlu0 %2104 }
0x10b8   :  { %v2110_v4 = vsel %vm282_vm2, %v2105_v0, 0 }
0x10b9   :  { %v2052_v50 = vpop.permute.xlu1 %2051 }
0x10ba   :  { %2718 = vmatmul.mubr.msk.bf16.vlgmr.msra.gmra.mrb[60].mxu1 %vm282_vm2, %v2052_v50 }
0x10bb   :  { %2729 = vmatprep.mubr.msk.bf16.mxu1 %vm3105_vm1, %v3104_v11  ;;  %v2103_v13 = vpop.permute.xlu0 %2102 }
0x10be   :  { %v2908_v47 = vpop.eup %2907 }
0x10bf   :  { %v1940_v53 = vmul.f32 %v2908_v47, %v2900_v18 }
0x10c0   :  { %v2910_v52 = vpop.eup %2909 }
0x10c1   :  { %v1941_v60 = vmul.f32 %v2910_v52, %v2902_v26 }
0x10c3   :  { %v1943_v1 = vpack.c.bf16 %v1941_v60, %v1940_v53 }
0x10c5   :  { %2712 = vmatmul.mubr.msk.bf16.vlgmr.msra.gmra.mrb[56].mxu0 %vm380_vm3, %v1943_v1 }
0x10c6   :  { %2722 = vmatpush3.bf16.xpose.msra.mxu0 %v2110_v4  ;;  %2723 = vmatprep.mubr.msk.bf16.mxu0 %vm3105_vm1, %v3104_v11 }
0x10c7   :  { %2733 = vmatprep.subr.bf16.mxu0 %v3104_v11 }
0x10cd   :  { %2724 = vmatmul.mubr.msk.bf16.vlgmr.msra.gmra.mrb[60].mxu0 %vm282_vm2, %v2103_v13 }
0x10ce   :  { %2735 = vmatprep.mubr.msk.bf16.mxu0 %vm3105_vm1, %v3104_v11 }
0x1185   :  { %v3632_v51 = vpop.f32.mrb[56].mxu1 }
0x1186   :  { %v2707_v14 = vpop.f32.mrb[57].mxu1 }
0x1187   :  { %v3634_v55 = vpop.f32.mrb[58].mxu1 }
0x1188   :  { %v2038_v18 = vpack.c.bf16 %v3634_v55, %v3632_v51  ;;  %v2708_v20 = vpop.f32.mrb[59].mxu1  ;;  %v2797_v51 = vld [vmem:[#allocation11 + $0x10] sm:$0xff]  }
0x118d   :  { %v2095_v26 = vpop.f32.mrb[60].mxu1 }
0x118e   :  { %v2096_v16 = vadd.f32 %v2095_v26, %v3274_v45  ;;  %v2719_v24 = vpop.f32.mrb[61].mxu1 }
0x118f   :  { %v2098_v28 = vpop.f32.mrb[62].mxu1 }
0x1190   :  { %v2099_v31 = vadd.f32 %v2098_v28, %v3276_v48  ;;  %v2720_v32 = vpop.f32.mrb[63].mxu1  ;;  %v2153_v33 = vsel %vm380_vm3, %v2096_v16, -inf }
0x1191   :  { %2154 = vmax.xlane.f32.xlu1 %v2153_v33 }
0x1192   :  { %v2156_v11 = vsel %vm380_vm3, %v2099_v31, -inf }
0x1193   :  { %2157 = vmax.xlane.f32.xlu0 %v2156_v11 }
0x1198   :  { %v2031_v34 = vpop.f32.mrb[56].mxu0 }
0x1199   :  { %v2713_v35 = vpop.f32.mrb[57].mxu0 }
0x119a   :  { %v2034_v36 = vpop.f32.mrb[58].mxu0 }
0x119b   :  { %v2039_v44 = vpack.c.bf16 %v2034_v36, %v2031_v34  ;;  %v2714_v15 = vpop.f32.mrb[59].mxu0 }
0x11a0   :  { %v2146_v22 = vpop.f32.mrb[60].mxu0 }
0x11a1   :  { %v2147_v50 = vadd.f32 %v2146_v22, %v3281_v58  ;;  %v2725_v45 = vpop.f32.mrb[61].mxu0 }
0x11a2   :  { %v2149_v47 = vpop.f32.mrb[62].mxu0 }
0x11a3   :  { %v2150_v52 = vadd.f32 %v2149_v47, %v3284_v61  ;;  %v2726_v48 = vpop.f32.mrb[63].mxu0  ;;  %v2159_v53 = vsel %vm380_vm3, %v2147_v50, -inf }
0x11a4   :  { %2160 = vmax.xlane.f32.xlu0 %v2159_v53 }
0x11a5   :  { %v2162_v60 = vsel %vm380_vm3, %v2150_v52, -inf }
0x11a6   :  { %2163 = vmax.xlane.f32.xlu1 %v2162_v60 }
0x121e   :  { %v2155_v0 = vpop.xlane.xlu1 %2154 }
0x121f   :  { %v2165_v1 = vsub.f32 %v2096_v16, %v2155_v0 }
0x1220   :  { %v2158_v4 = vpop.xlane.xlu0 %2157 }
0x1221   :  { %v2169_v13 = vmul.f32 1.442695, %v2165_v1  ;;  %v2166_v14 = vsub.f32 %v2099_v31, %v2158_v4  ;;  %v2470_v4 = vld [vmem:[#allocation12] ss:$0 sm:$0xff] }
0x1223   :  { %2911 = vpow2.f32 %v2169_v13  ;;  %v2171_v20 = vmul.f32 1.442695, %v2166_v14 }
0x1225   :  { %2913 = vpow2.f32 %v2171_v20 }
0x122d   :  { %v2912_v58 = vpop.eup %2911 }
0x122e   :  { %v2177_v26 = vsel %vm380_vm3, %v2912_v58, 0.0 }
0x122f   :  { %v2914_v24 = vpop.eup %2913  ;;  %2178 = vadd.xlane.f32.xlu0 %v2177_v26 }
0x1230   :  { %v2180_v61 = vsel %vm380_vm3, %v2914_v24, 0.0 }
0x1231   :  { %v2161_v28 = vpop.xlane.xlu0 %2160  ;;  %2181 = vadd.xlane.f32.xlu1 %v2180_v61 }
0x1232   :  { %v2167_v32 = vsub.f32 %v2147_v50, %v2161_v28 }
0x1233   :  { %v2164_v33 = vpop.xlane.xlu1 %2163 }
0x1234   :  { %v2173_v11 = vmul.f32 1.442695, %v2167_v32  ;;  %v2168_v34 = vsub.f32 %v2150_v52, %v2164_v33 }
0x1236   :  { %2915 = vpow2.f32 %v2173_v11  ;;  %v2175_v16 = vmul.f32 1.442695, %v2168_v34 }
0x1238   :  { %2917 = vpow2.f32 %v2175_v16 }
0x1240   :  { %v2916_v31 = vpop.eup %2915 }
0x1241   :  { %v2183_v35 = vsel %vm380_vm3, %v2916_v31, 0.0 }
0x1242   :  { %v2918_v36 = vpop.eup %2917  ;;  %2184 = vadd.xlane.f32.xlu0 %v2183_v35 }
0x1243   :  { %v2186_v15 = vsel %vm380_vm3, %v2918_v36, 0.0 }
0x1244   :  { %2187 = vadd.xlane.f32.xlu1 %v2186_v15 }
0x1255   :  { %2246 = vrot.lane.b32.xlu1 %v3254_v25, %s3117_s11 }
0x1258   :  { %2199 = vrot.lane.b32.xlu0 %v3248_v17, %s3117_s11 }
0x1259   :  { %767 = vrot.lane.b32.xlu1 %v763_v6, %s3097_s23 }
0x125c   :  { %769 = vrot.lane.b32.xlu0 %v764_v23, %s3097_s23 }
0x125d   :  { %1022 = vrot.lane.b32.xlu1 %v1018_v30, %s3092_s7 }
0x1260   :  { %1024 = vrot.lane.b32.xlu0 %v1019_v43, %s3092_s7  ;;  %s3118_s7 = smov [#allocation14]  }
0x1261   :  { %1277 = vrot.lane.b32.xlu1 %v1273_v57, %s3114_s9  ;;  %s2411_s12 = sshll.u32 %s3118_s7, 4  ;;  %s2412_s12 = int_to_ptr.vmem [resolvable:$true] %s2411_s12 }
0x1262   :  { %s3059_s2 = scalar_lea.vmem %s2412_s12, 512  ;;  %p3064_p7 = scmp.lt.s32.totalorder %s2412_s12, %s2412_s12 }
0x1263   :  { %p3060_p6 = scmp.ne.s32.totalorder %s2412_s12, %s3059_s2  ;;  %p3065_p8 = scmp.lt.s32.totalorder %s3059_s2, %s3059_s2 }
0x1264   :  { %1279 = vrot.lane.b32.xlu0 %v1274_v12, %s3114_s9 }
0x1265   :  { %1532 = vrot.lane.b32.xlu1 %v1528_v41, %s3112_s30  ;;  %p3066_p9 = por %p3065_p8, %p3064_p7 }
0x1267   :  { %p3067_p10 = pnand %p3066_p9, %p3060_p6 }
0x1268   :  { %1534 = vrot.lane.b32.xlu0 %v1529_v63, %s3112_s30 }
0x1269   :  { %1787 = vrot.lane.b32.xlu1 %v1783_v49, %s3110_s28  ;;  %v2795_v49 = vld [vmem:[#allocation11] sm:$0xff]  }
0x126c   :  { %1789 = vrot.lane.b32.xlu0 %v1784_v9, %s3110_s28 }
0x126d   :  { %2042 = vrot.lane.b32.xlu1 %v2038_v18, %s3108_s26  ;;  %v2798_v18 = vld [vmem:[#allocation11 + $0x18] sm:$0xff]  }
0x1270   :  { %2044 = vrot.lane.b32.xlu0 %v2039_v44, %s3108_s26 }
0x12bc   :  { %v2179_v25 = vpop.xlane.xlu0 %2178 }
0x12be   :  { %v2182_v17 = vpop.xlane.xlu1 %2181 }
0x12bf   :  { %2919 = vrcp.f32 %v2182_v17 }
0x12c0   :  { %2921 = vrcp.f32 %v2179_v25 }
0x12c9   :  { %v2920_v3 = vpop.eup %2919 }
0x12ca   :  { %v2922_v6 = vpop.eup %2921  ;;  %v2194_v19 = vmul.f32 %v2920_v3, %v2914_v24 }
0x12cb   :  { %v2193_v23 = vmul.f32 %v2922_v6, %v2912_v58 }
0x12cd   :  { %v2197_v30 = vpack.c.bf16 %v2194_v19, %v2193_v23 }
0x12cf   :  { %v2185_v5 = vpop.xlane.xlu0 %2184 }
0x12d0   :  { %2923 = vrcp.f32 %v2185_v5 }
0x12d1   :  { %v2188_v21 = vpop.xlane.xlu1 %2187 }
0x12d2   :  { %2925 = vrcp.f32 %v2188_v21 }
0x12d3   :  { %v2200_v27 = vpop.permute.xlu0 %2199 }
0x12d4   :  { %2728 = vmatpush3.bf16.msra.mxu1 %v2200_v27 }
0x12d5   :  { %v2247_v29 = vpop.permute.xlu1 %2246  ;;  %2739 = vmatprep.subr.bf16.mxu1 %v2795_v49 }
0x12d6   :  { %2734 = vmatpush3.bf16.msra.mxu0 %v2247_v29 }
0x12d7   :  { %v770_v40 = vpop.permute.xlu0 %769  ;;  %2730 = vmatmul.mubr.msk.bf16.vlgmr.msra.gmra.mrb[64].mxu1 %vm380_vm3, %v2197_v30 }
0x12d8   :  { %775 = vst.msk [vmem:[#allocation2 + $0x8] sm:$0xff] %vm773_vm4, %v770_v40  ;;  %2740 = vmatpush3.bf16.msra.mxu1 %v2795_v49 }
0x12d9   :  { %v768_v42 = vpop.permute.xlu1 %767  ;;  %2741 = vmatprep.subr.bf16.mxu1 %v2796_v2 }
0x12da   :  { %v2924_v43 = vpop.eup %2923  ;;  %774 = vst.msk [vmem:[#allocation2] sm:$0xff] %vm773_vm4, %v768_v42 }
0x12db   :  { %v1025_v54 = vpop.permute.xlu0 %1024  ;;  %v2195_v57 = vmul.f32 %v2924_v43, %v2916_v31 }
0x12dc   :  { %v2926_v56 = vpop.eup %2925  ;;  %1030 = vst.msk [vmem:[#allocation2 + $0x8] sm:$0xff] %vm1028_vm5, %v1025_v54  ;;  %2742 = vmatpush3.bf16.msra.mxu1 %v2796_v2 }
0x12dd   :  { %v2196_v8 = vmul.f32 %v2926_v56, %v2918_v36  ;;  %v1023_v10 = vpop.permute.xlu1 %1022  ;;  %2743 = vmatprep.subr.bf16.mxu1 %v2797_v51 }
0x12de   :  { %1029 = vst.msk [vmem:[#allocation2] sm:$0xff] %vm1028_vm5, %v1023_v10 }
0x12df   :  { %v1280_v12 = vpop.permute.xlu0 %1279  ;;  %v2198_v37 = vpack.c.bf16 %v2196_v8, %v2195_v57 }
0x12e0   :  { %1285 = vst.msk [vmem:[#allocation2 + $0x8] sm:$0xff] %vm1283_vm6, %v1280_v12  ;;  %2744 = vmatpush3.bf16.msra.mxu1 %v2797_v51 }
0x12e1   :  { %2736 = vmatmul.mubr.msk.bf16.vlgmr.msra.gmra.mrb[64].mxu0 %vm380_vm3, %v2198_v37  ;;  %v1278_v39 = vpop.permute.xlu1 %1277  ;;  %2745 = vmatprep.subr.bf16.mxu1 %v2798_v18 }
0x12e2   :  { %1284 = vst.msk [vmem:[#allocation2] sm:$0xff] %vm1283_vm6, %v1278_v39 }
0x12e3   :  { %v1535_v41 = vpop.permute.xlu0 %1534 }
0x12e4   :  { %1540 = vst.msk [vmem:[#allocation2 + $0x8] sm:$0xff] %vm1538_vm7, %v1535_v41  ;;  %2746 = vmatpush3.bf16.msra.mxu1 %v2798_v18 }
0x12e5   :  { %v1533_v59 = vpop.permute.xlu1 %1532 }
0x12e6   :  { %1539 = vst.msk [vmem:[#allocation2] sm:$0xff] %vm1538_vm7, %v1533_v59 }
0x12e7   :  { %v1790_v62 = vpop.permute.xlu0 %1789 }
0x12e8   :  { %1795 = vst.msk [vmem:[#allocation2 + $0x8] sm:$0xff] %vm1793_vm8, %v1790_v62 }
0x12e9   :  { %v1788_v63 = vpop.permute.xlu1 %1787 }
0x12ea   :  { %1794 = vst.msk [vmem:[#allocation2] sm:$0xff] %vm1793_vm8, %v1788_v63 }
0x12eb   :  { %v2045_v38 = vpop.permute.xlu0 %2044 }
0x12ec   :  { %2050 = vst.msk [vmem:[#allocation2 + $0x8] sm:$0xff] %vm2048_vm9, %v2045_v38 }
0x12ed   :  { %v2043_v46 = vpop.permute.xlu1 %2042 }
0x12ee   :  { %2049 = vst.msk [vmem:[#allocation2] sm:$0xff] %vm2048_vm9, %v2043_v46 }
0x13aa   :  { %v2239_v7 = vpop.f32.mrb[64].mxu1 }
0x13ab   :  { %v2731_v9 = vpop.f32.mrb[65].mxu1 }
0x13ac   :  { %v2242_v55 = vpop.f32.mrb[66].mxu1 }
0x13ad   :  { %v2293_v44 = vpack.c.bf16 %v2242_v55, %v2239_v7  ;;  %v2732_v22 = vpop.f32.mrb[67].mxu1 }
0x13af   :  { %2297 = vrot.lane.b32.xlu1 %v2293_v44, %s3106_s5 }
0x13b4   :  { %v2286_v50 = vpop.f32.mrb[64].mxu0 }
0x13b5   :  { %v2737_v45 = vpop.f32.mrb[65].mxu0 }
0x13b6   :  { %v2289_v47 = vpop.f32.mrb[66].mxu0 }
0x13b7   :  { %v2294_v52 = vpack.c.bf16 %v2289_v47, %v2286_v50  ;;  %v2738_v48 = vpop.f32.mrb[67].mxu0 }
0x13b9   :  { %2299 = vrot.lane.b32.xlu0 %v2294_v52, %s3106_s5 }
0x1421   :  { %v2298_v53 = vpop.permute.xlu1 %2297 }
0x1422   :  { %2304 = vst.msk [vmem:[#allocation2] sm:$0xff] %vm2303_vm10, %v2298_v53 }
0x1429   :  { %v2306_v60 = vld [vmem:[#allocation2] sm:$0xff] }
0x142a   :  { %2747 = vmatprep.mubr.msk.bf16.mxu1 %vm167_vm0, %v2306_v60 }
0x142b   :  { %v2300_v0 = vpop.permute.xlu0 %2299 }
0x142c   :  { %2305 = vst.msk [vmem:[#allocation2 + $0x8] sm:$0xff] %vm2303_vm10, %v2300_v0 }
0x1433   :  { %v2307_v1 = vld [vmem:[#allocation2 + $0x8] sm:$0xff] }
0x1434   :  { %2748 = vmatmul.mubr.msk.bf16.vlgmr.msra.gmra.mrb[68].mxu1 %vm167_vm0, %v2307_v1 }
0x1507   :  { %v2749_v13 = vpop.f32.mrb[68].mxu1 }
0x1508   :  { %v2396_v14 = vadd.f32 %v2749_v13, %v2470_v4  ;;  %v2387_v20 = vpop.f32.mrb[69].mxu1 }
0x1509   :  { %v2388_v58 = vadd.f32 %v2470_v4, %v2387_v20  ;;  %v2750_v26 = vpop.f32.mrb[70].mxu1 }
0x150a   :  { %2404 = vst.msk [vmem:[#allocation14 + $0x10] sm:$0xff] %vm167_vm0, %v2396_v14  ;;  %v2399_v24 = vadd.f32 %v2750_v26, %v2470_v4  ;;  %v2390_v61 = vpop.f32.mrb[71].mxu1 }
0x150b   :  { %2402 = vst.msk [vmem:[#allocation14] sm:$0xff] %vm167_vm0, %v2388_v58  ;;  %v2391_v28 = vadd.f32 %v2470_v4, %v2390_v61 }
0x150c   :  { %2405 = vst.msk [vmem:[#allocation14 + $0x18] sm:$0xff] %vm167_vm0, %v2399_v24 }
0x150d   :  { %2403 = vst.msk [vmem:[#allocation14 + $0x8] sm:$0xff] %vm167_vm0, %v2391_v28 }
0x150e   :  { %3070 = shalt.err (!%p3067_p10)
}
0x150f   :  { %s3071_s16 = scalar_lea.hbm %s3730_s6, 512 }
0x1510   :  { %p3072_p11 = scmp.ne.s32.totalorder %s3730_s6, %s3071_s16  ;;  %p3075_p12 = scmp.lt.u32.totalorder %s3071_s16, %s3730_s6 }
0x1512   :  { %p3077_p13 = pnand %p3075_p12, %p3072_p11 }
0x1514   :  { %3080 = shalt.err (!%p3077_p13)
}
0x1515   :  { %2417 = dma.vmem_to_hbm [thread:$0]  %s2412_s12, 512, %s3730_s6, [#allocation5], %s3096_s22, %s3096_s22, %s3097_s23  }
0x1516   :  { %3089 = dma.done.wait [#allocation5], 512  }
0x1517   :  { %3090 = vsyncadd [#allocation5], 4294966784 }
0x1518   :  { %2421 = vsyncpa [#allocation4], 1 }
0x1519   :  { %2422 = vsyncpa [#allocation7], 1 }
0x151a   :  { %2423 = vsyncpa [#allocation10], 1 }
0x151b   :  { %2424 = vsyncpa [#allocation13], 1 }
0x151c   :  { %2425 = vsyncpa [#allocation5], 1 }

// kernel: tpu_custom_call.1
= control target key start
LH: loop header
LB: loop body
LE: loop exit
PB: predicated region body
PF: predicated region fallthrough
CT: control target
= control target key end

     0   :  { %11 = vsyncpa [#allocation4], 0  ;;  %s3724_s0 = inlined_call_operand.hbm [shape: f32[2,16,1], index: 0, kind: input, shape index: {}]   ;;  %s3725_s1 = inlined_call_operand.hbm [shape: f32[2,1,16], index: 1, kind: input, shape index: {}]   ;;  %s3726_s2 = inlined_call_operand.hbm [shape: bf16[2,16,64], index: 2, kind: input, shape index: {}]   ;;  %s3727_s3 = inlined_call_operand.hbm [shape: bf16[64,192], index: 3, kind: input, shape index: {}]   ;;  %s3728_s4 = inlined_call_operand.hbm [shape: bf16[64,64], index: 4, kind: input, shape index: {}]   ;;  %s3729_s5 = inlined_call_operand.hbm [shape: f32[1,64], index: 5, kind: input, shape index: {}]   ;;  %s3730_s6 = inlined_call_operand.hbm [shape: f32[2,16,64], index: 6, kind: output, shape index: {}]  }
   0x1   :  { %12 = vsyncpa [#allocation7], 0 }
   0x2   :  { %13 = vsyncpa [#allocation10], 0 }
   0x3   :  { %14 = vsyncpa [#allocation13], 0 }
   0x4   :  { %15 = vsyncpa [#allocation5], 0  ;;  %s3091_s21 = smov [#allocation6]   ;;  %s2927_s25 = scalar_lea.hbm %s3725_s1, 32 }
   0x5   :  { %s33_s22 = sshll.u32 %s3091_s21, 4  ;;  %p2928_p0 = scmp.ne.s32.totalorder %s3725_s1, %s2927_s25  ;;  %s34_s22 = int_to_ptr.vmem [resolvable:$true] %s33_s22 }
   0x6   :  { %p2931_p1 = scmp.lt.u32.totalorder %s2927_s25, %s3725_s1 }
   0x8   :  { %p2933_p2 = pnand %p2931_p1, %p2928_p0 }
   0xa   :  { %2936 = shalt.err (!%p2933_p2)
}
   0xb   :  { %s2937_s30 = scalar_lea.vmem %s34_s22, 32  ;;  %p2942_p4 = scmp.lt.s32.totalorder %s34_s22, %s34_s22 }
   0xc   :  { %p2938_p3 = scmp.ne.s32.totalorder %s34_s22, %s2937_s30  ;;  %p2943_p5 = scmp.lt.s32.totalorder %s2937_s30, %s2937_s30 }
   0xe   :  { %p2944_p6 = por %p2943_p5, %p2942_p4 }
  0x10   :  { %p2945_p7 = pnand %p2944_p6, %p2938_p3 }
  0x12   :  { %2948 = shalt.err (!%p2945_p7)
}
  0x13   :  { %s3092_s7 = smov 16   ;;  %s3093_s8 = smov 1  }
  0x14   :  { %39 = dma.hbm_to_vmem [thread:$0]  %s3725_s1, 32, %s34_s22, [#allocation7], %s3092_s7, %s3092_s7, %s3093_s8  }
  0x15   :  { %s3094_s11 = smov [#allocation9]   ;;  %s3095_s13 = smov [#allocation3]  }
  0x16   :  { %s57_s12 = sshll.u32 %s3094_s11, 4  ;;  %s21_s14 = sshll.u32 %s3095_s13, 4  ;;  %s58_s12 = int_to_ptr.vmem [resolvable:$true] %s57_s12  ;;  %s22_s14 = int_to_ptr.vmem [resolvable:$true] %s21_s14 }
  0x17   :  { %s2949_s17 = scalar_lea.hbm %s3727_s3, 1024 }
  0x18   :  { %p2950_p8 = scmp.ne.s32.totalorder %s3727_s3, %s2949_s17  ;;  %p2953_p9 = scmp.lt.u32.totalorder %s2949_s17, %s3727_s3 }
  0x1a   :  { %p2955_p10 = pnand %p2953_p9, %p2950_p8 }
  0x1c   :  { %2958 = shalt.err (!%p2955_p10)
}
  0x1d   :  { %s2959_s1 = scalar_lea.vmem %s58_s12, 1024  ;;  %p2964_p12 = scmp.lt.s32.totalorder %s58_s12, %s58_s12 }
  0x1e   :  { %p2960_p11 = scmp.ne.s32.totalorder %s58_s12, %s2959_s1  ;;  %p2965_p13 = scmp.lt.s32.totalorder %s2959_s1, %s2959_s1 }
  0x20   :  { %p2966_p0 = por %p2965_p13, %p2964_p12 }
  0x22   :  { %p2967_p1 = pnand %p2966_p0, %p2960_p11 }
  0x24   :  { %2970 = shalt.err (!%p2967_p1)
}
  0x25   :  { %s3096_s22 = smov 128   ;;  %s3097_s23 = smov 8  }
  0x26   :  { %63 = dma.hbm_to_vmem [thread:$0]  %s3727_s3, 1024, %s58_s12, [#allocation10], %s3096_s22, %s3096_s22, %s3097_s23  }
  0x27   :  { %s2971_s28 = scalar_lea.hbm %s3724_s0, 512 }
  0x28   :  { %p2972_p2 = scmp.ne.s32.totalorder %s3724_s0, %s2971_s28  ;;  %p2975_p3 = scmp.lt.u32.totalorder %s2971_s28, %s3724_s0 }
  0x2a   :  { %p2977_p4 = pnand %p2975_p3, %p2972_p2 }
  0x2c   :  { %2980 = shalt.err (!%p2977_p4)
}
  0x2d   :  { %s2981_s10 = scalar_lea.vmem %s22_s14, 512  ;;  %p2986_p6 = scmp.lt.s32.totalorder %s22_s14, %s22_s14 }
  0x2e   :  { %p2982_p5 = scmp.ne.s32.totalorder %s22_s14, %s2981_s10  ;;  %p2987_p7 = scmp.lt.s32.totalorder %s2981_s10, %s2981_s10 }
  0x30   :  { %p2988_p8 = por %p2987_p7, %p2986_p6 }
  0x32   :  { %p2989_p9 = pnand %p2988_p8, %p2982_p5 }
  0x34   :  { %2992 = shalt.err (!%p2989_p9)
}
  0x35   :  { %27 = dma.hbm_to_vmem [thread:$0]  %s3724_s0, 512, %s22_s14, [#allocation4], %s3096_s22, %s3096_s22, %s3097_s23  }
  0x36   :  { %s3098_s12 = smov [#allocation8]   ;;  %s2993_s17 = scalar_lea.hbm %s3726_s2, 256 }
  0x37   :  { %s45_s13 = sshll.u32 %s3098_s12, 4  ;;  %p2994_p10 = scmp.ne.s32.totalorder %s3726_s2, %s2993_s17  ;;  %s46_s13 = int_to_ptr.vmem [resolvable:$true] %s45_s13 }
  0x38   :  { %p2997_p11 = scmp.lt.u32.totalorder %s2993_s17, %s3726_s2 }
  0x3a   :  { %p2999_p12 = pnand %p2997_p11, %p2994_p10 }
  0x3c   :  { %3002 = shalt.err (!%p2999_p12)
}
  0x3d   :  { %s3003_s1 = scalar_lea.vmem %s46_s13, 256  ;;  %p3008_p0 = scmp.lt.s32.totalorder %s46_s13, %s46_s13 }
  0x3e   :  { %p3004_p13 = scmp.ne.s32.totalorder %s46_s13, %s3003_s1  ;;  %p3009_p1 = scmp.lt.s32.totalorder %s3003_s1, %s3003_s1 }
  0x40   :  { %p3010_p2 = por %p3009_p1, %p3008_p0 }
  0x42   :  { %p3011_p3 = pnand %p3010_p2, %p3004_p13 }
  0x44   :  { %3014 = shalt.err (!%p3011_p3)
}
  0x45   :  { %s3099_s0 = smov 64   ;;  %s3100_s14 = smov 4  }
  0x46   :  { %51 = dma.hbm_to_vmem [thread:$0]  %s3726_s2, 256, %s46_s13, [#allocation7], %s3099_s0, %s3099_s0, %s3100_s14  }
  0x47   :  { %s3101_s26 = smov [#allocation11]   ;;  %s3102_s28 = smov [#allocation12]  }
  0x48   :  { %s69_s27 = sshll.u32 %s3101_s26, 4  ;;  %s82_s29 = sshll.u32 %s3102_s28, 4  ;;  %s70_s27 = int_to_ptr.vmem [resolvable:$true] %s69_s27  ;;  %s83_s29 = int_to_ptr.vmem [resolvable:$true] %s82_s29 }
  0x49   :  { %s3015_s9 = scalar_lea.hbm %s3728_s4, 512 }
  0x4a   :  { %p3016_p4 = scmp.ne.s32.totalorder %s3728_s4, %s3015_s9  ;;  %p3019_p5 = scmp.lt.u32.totalorder %s3015_s9, %s3728_s4 }
  0x4c   :  { %p3021_p6 = pnand %p3019_p5, %p3016_p4 }
  0x4e   :  { %3024 = shalt.err (!%p3021_p6)
}
  0x4f   :  { %s3025_s2 = scalar_lea.vmem %s70_s27, 512  ;;  %p3030_p8 = scmp.lt.s32.totalorder %s70_s27, %s70_s27 }
  0x50   :  { %p3026_p7 = scmp.ne.s32.totalorder %s70_s27, %s3025_s2  ;;  %p3031_p9 = scmp.lt.s32.totalorder %s3025_s2, %s3025_s2 }
  0x52   :  { %p3032_p10 = por %p3031_p9, %p3030_p8 }
  0x54   :  { %p3033_p11 = pnand %p3032_p10, %p3026_p7 }
  0x56   :  { %3036 = shalt.err (!%p3033_p11)
}
  0x57   :  { %75 = dma.hbm_to_vmem [thread:$0]  %s3728_s4, 512, %s70_s27, [#allocation10], %s3099_s0, %s3099_s0, %s3100_s14  }
  0x58   :  { %s3037_s18 = scalar_lea.hbm %s3729_s5, 16 }
  0x59   :  { %p3038_p12 = scmp.ne.s32.totalorder %s3729_s5, %s3037_s18  ;;  %p3041_p13 = scmp.lt.u32.totalorder %s3037_s18, %s3729_s5 }
  0x5b   :  { %p3043_p0 = pnand %p3041_p13, %p3038_p12 }
  0x5d   :  { %3046 = shalt.err (!%p3043_p0)
}
  0x5e   :  { %s3047_s24 = scalar_lea.vmem %s83_s29, 16  ;;  %s3051_s25 = scalar_lea.vmem %s83_s29, 32 }
  0x5f   :  { %p3048_p1 = scmp.ne.s32.totalorder %s83_s29, %s3047_s24  ;;  %p3052_p2 = scmp.lt.s32.totalorder %s83_s29, %s83_s29 }
  0x60   :  { %p3053_p3 = scmp.lt.s32.totalorder %s3051_s25, %s3047_s24 }
  0x62   :  { %p3054_p4 = por %p3053_p3, %p3052_p2 }
  0x64   :  { %p3055_p5 = pnand %p3054_p4, %p3048_p1 }
  0x66   :  { %3058 = shalt.err (!%p3055_p5)
}
  0x67   :  { %85 = dma.hbm_to_vmem [thread:$0]  %s3729_s5, 16, %s83_s29, [#allocation13]  }
  0x68   :  { %3081 = dma.done.wait [#allocation4], 512  }
  0x69   :  { %3082 = vsyncadd [#allocation4], 4294966784 }
  0x6a   :  { %3083 = dma.done.wait [#allocation7], 288  }
  0x6b   :  { %3084 = vsyncadd [#allocation7], 4294967008 }
  0x6c   :  { %3085 = dma.done.wait [#allocation10], 1536  }
  0x6d   :  { %3086 = vsyncadd [#allocation10], 4294965760 }
  0x6e   :  { %3087 = dma.done.wait [#allocation13], 16  }
  0x6f   :  { %3088 = vsyncadd [#allocation13], 4294967280  ;;  %v3103_v0 = vmov 0   ;;  %v2781_v1 = vld [vmem:[#allocation9 + $0x4] ss:$8 sps:$4 sm:$0xff]   ;;  %v2793_v9 = vld [vmem:[#allocation8] sm:$0xff]   ;;  %v261_v32 = vlaneseq }
  0x70   :  { %206 = vmatprep.mubr.bf16.mxu0 %v3103_v0  ;;  %2779 = vset.pattern.permute.xlu1 %v3103_v0  ;;  %v2783_v2 = vld [vmem:[#allocation9] ss:$8 sps:$4 sm:$0xff]   ;;  %v2784_v3 = vld [vmem:[#allocation9 + $0x14] ss:$8 sps:$4 sm:$0xff]   ;;  %v2786_v4 = vld [vmem:[#allocation9 + $0x10] ss:$8 sps:$4 sm:$0xff]  }
  0x71   :  { %2780 = vset.pattern.permute.xlu0 %v3103_v0  ;;  %174 = vmatprep.subr.bf16.mxu0 %v2781_v1  ;;  %v2787_v5 = vld [vmem:[#allocation9 + $0x24] ss:$8 sps:$4 sm:$0xff]   ;;  %v2789_v6 = vld [vmem:[#allocation9 + $0x20] ss:$8 sps:$4 sm:$0xff]   ;;  %v2790_v7 = vld [vmem:[#allocation9 + $0x34] ss:$8 sps:$4 sm:$0xff]  }
  0x72   :  { %175 = vmatpush1.bf16.msra.mxu0 %v2783_v2  ;;  %v2792_v8 = vld [vmem:[#allocation9 + $0x30] ss:$8 sps:$4 sm:$0xff]   ;;  %vm167_vm0 = vcmask 523264   ;;  %v3104_v11 = vmov 0.0   ;;  %vm3105_vm1 = vmmov 0   ;;  %v233_v26 = vld [vmem:[#allocation3 + $0x10] sm:$0xff] }
  0x73   :  { %176 = vmatprep.subr.bf16.mxu0 %v2784_v3  ;;  %v2794_v10 = vld [vmem:[#allocation8 + $0x8] sm:$0xff]   ;;  %2547 = vmatprep.subr.bf16.mxu1 %v3104_v11  ;;  %v231_v20 = vld [vmem:[#allocation3] sm:$0xff]  ;;  %v234_v27 = vld [vmem:[#allocation3 + $0x18] sm:$0xff]  ;;  %vm282_vm2 = vcmask 64512   ;;  %v262_v33 = vshrl.u32 %v261_v32, 7  ;;  %vm380_vm3 = vcmask 130048  }
  0x74   :  { %2549 = vmatprep.mubr.msk.bf16.mxu1 %vm3105_vm1, %v3104_v11  ;;  %241 = vperm.xlu1 %2779, %v231_v20   ;;  %v232_v24 = vld [vmem:[#allocation3 + $0x8] sm:$0xff]  ;;  %v235_v34 = vld [vmem:[#allocation6] sm:$0x1]  ;;  %v236_v39 = vld [vmem:[#allocation6 + $0x1] sm:$0x1]  ;;  %s3106_s5 = smov 56  }
  0x75   :  { %v237_v35 = vsub.f32 1.0, %v235_v34  ;;  %v263_v36 = vsub.s32 0, %v262_v33  ;;  %v238_v41 = vsub.f32 1.0, %v236_v39  ;;  %s3108_s26 = smov 48   ;;  %s3109_s27 = smov 112   ;;  %vm773_vm4 = vcmask 130112  }
  0x76   :  { %177 = vmatpush1.bf16.msra.mxu0 %v2786_v4  ;;  %s3110_s28 = smov 40   ;;  %s3111_s29 = smov 104   ;;  %vm1028_vm5 = vcmask 195712   ;;  %vm1283_vm6 = vcmask 261312   ;;  %vm1538_vm7 = vcmask 326912   ;;  %vm1793_vm8 = vcmask 392512  }
  0x77   :  { %178 = vmatprep.subr.bf16.mxu0 %v2787_v5  ;;  %v264_v38 = vrot.slane %v237_v35, %v263_v36  ;;  %v268_v46 = vrot.slane %v238_v41, %v263_v36  ;;  %s3112_s30 = smov 32   ;;  %s3113_s8 = smov 96   ;;  %vm2048_vm9 = vcmask 458112   ;;  %vm2303_vm10 = vcmask 523712  }
  0x78   :  { %246 = vperm.xlu1 %2779, %v232_v24   ;;  %s3114_s9 = smov 24   ;;  %s3115_s10 = smov 88  }
  0x79   :  { %s3116_s3 = smov 80   ;;  %s3117_s11 = smov 72  }
  0x7a   :  { %179 = vmatpush1.bf16.msra.mxu0 %v2789_v6 }
  0x7b   :  { %180 = vmatprep.subr.bf16.mxu0 %v2790_v7 }
  0x7c   :  { %256 = vperm.xlu1 %2779, %v234_v27  }
  0x7e   :  { %181 = vmatpush1.bf16.msra.mxu0 %v2792_v8 }
  0x7f   :  { %2565 = vmatprep.subr.bf16.mxu0 %v3104_v11 }
  0x81   :  { %2436 = vmatmul.mubr.msk.bf16.vlgmr.msra.gmra.mrb[0].mxu0 %vm167_vm0, %v2793_v9 }
  0x82   :  { %216 = vmatprep.mubr.bf16.mxu0 %v3103_v0 }
  0x89   :  { %2437 = vmatmul.mubr.msk.bf16.gmra.mrb[4].mxu0 %vm167_vm0, %v2794_v10 }
  0x8a   :  { %2567 = vmatprep.mubr.msk.bf16.mxu0 %vm3105_vm1, %v3104_v11 }
  0xf3   :  { %v242_v37 = vpop.permute.xlu1 %241 }
  0xf4   :  { %v271_v40 = vmul.f32 %v264_v38, %v242_v37 }
  0xf6   :  { %v3274_v45 = vmul.f32 -1e+30, %v271_v40 }
  0xf7   :  { %v247_v42 = vpop.permute.xlu1 %246 }
  0xf8   :  { %v272_v43 = vmul.f32 %v264_v38, %v247_v42 }
  0xfa   :  { %v3276_v48 = vmul.f32 -1e+30, %v272_v43 }
  0xfb   :  { %v257_v52 = vpop.permute.xlu1 %256 }
  0xfc   :  { %v274_v57 = vmul.f32 %v268_v46, %v257_v52 }
  0xfe   :  { %v3284_v61 = vmul.f32 -1e+30, %v274_v57 }
 0x154   :  { %v208_v12 = vpop.f32.mrb[0].mxu0 }
 0x155   :  { %v210_v13 = vpop.f32.mrb[1].mxu0 }
 0x156   :  { %v212_v14 = vpop.f32.mrb[2].mxu0 }
 0x157   :  { %v3246_v15 = vpack.c.bf16 %v212_v14, %v208_v12  ;;  %v214_v16 = vpop.f32.mrb[3].mxu0 }
 0x158   :  { %v3248_v17 = vpack.c.bf16 %v214_v16, %v210_v13 }
 0x159   :  { %280 = vrot.lane.b32.xlu0 %v3246_v15, %s3099_s0 }
 0x15c   :  { %v218_v18 = vpop.f32.mrb[4].mxu0 }
 0x15d   :  { %v220_v19 = vpop.f32.mrb[5].mxu0 }
 0x15e   :  { %v222_v21 = vpop.f32.mrb[6].mxu0 }
 0x15f   :  { %v3252_v22 = vpack.c.bf16 %v222_v21, %v218_v18  ;;  %v224_v23 = vpop.f32.mrb[7].mxu0 }
 0x160   :  { %v3254_v25 = vpack.c.bf16 %v224_v23, %v220_v19 }
 0x161   :  { %331 = vrot.lane.b32.xlu0 %v3252_v22, %s3099_s0  ;;  %s3107_s0 = smov 120  }
 0x162   :  { %2566 = vmatpush3.bf16.msra.mxu0 %v3254_v25 }
 0x163   :  { %2577 = vmatprep.subr.bf16.mxu0 %v3104_v11 }
 0x165   :  { %251 = vperm.xlu0 %2780, %v233_v26  }
 0x1cb   :  { %v281_v28 = vpop.permute.xlu0 %280 }
 0x1cc   :  { %v287_v29 = vsel %vm282_vm2, %v281_v28, 0 }
 0x1cd   :  { %2548 = vmatpush3.bf16.xpose.msra.mxu1 %v287_v29 }
 0x1ce   :  { %2553 = vmatprep.subr.bf16.mxu1 %v3104_v11 }
 0x1d3   :  { %v332_v30 = vpop.permute.xlu0 %331 }
 0x1d4   :  { %v337_v31 = vsel %vm282_vm2, %v332_v30, 0  ;;  %2550 = vmatmul.mubr.msk.bf16.vlgmr.msra.gmra.mrb[0].mxu1 %vm282_vm2, %v3246_v15 }
 0x1d5   :  { %2554 = vmatpush3.bf16.xpose.msra.mxu1 %v337_v31  ;;  %2555 = vmatprep.mubr.msk.bf16.mxu1 %vm3105_vm1, %v3104_v11 }
 0x1d6   :  { %2559 = vmatprep.subr.bf16.mxu1 %v3104_v11 }
 0x1dc   :  { %2556 = vmatmul.mubr.msk.bf16.vlgmr.msra.gmra.mrb[4].mxu1 %vm282_vm2, %v3252_v22 }
 0x1dd   :  { %2560 = vmatpush3.bf16.msra.mxu1 %v3248_v17  ;;  %2561 = vmatprep.mubr.msk.bf16.mxu1 %vm3105_vm1, %v3104_v11 }
 0x1de   :  { %2571 = vmatprep.subr.bf16.mxu1 %v3104_v11 }
 0x1e4   :  { %v252_v44 = vpop.permute.xlu0 %251 }
 0x1e5   :  { %v273_v51 = vmul.f32 %v268_v46, %v252_v44 }
 0x1e7   :  { %v3281_v58 = vmul.f32 -1e+30, %v273_v51 }
 0x2a7   :  { %v323_v47 = vpop.f32.mrb[0].mxu1 }
 0x2a8   :  { %v324_v49 = vadd.f32 %v323_v47, %v3274_v45  ;;  %v2551_v50 = vpop.f32.mrb[1].mxu1 }
 0x2a9   :  { %v326_v53 = vpop.f32.mrb[2].mxu1 }
 0x2aa   :  { %v327_v54 = vadd.f32 %v326_v53, %v3276_v48  ;;  %v2552_v55 = vpop.f32.mrb[3].mxu1  ;;  %v381_v56 = vsel %vm380_vm3, %v324_v49, -inf }
 0x2ab   :  { %382 = vmax.xlane.f32.xlu1 %v381_v56 }
 0x2ac   :  { %v384_v59 = vsel %vm380_vm3, %v327_v54, -inf }
 0x2ad   :  { %385 = vmax.xlane.f32.xlu0 %v384_v59 }
 0x2af   :  { %v373_v60 = vpop.f32.mrb[4].mxu1 }
 0x2b0   :  { %v374_v62 = vadd.f32 %v373_v60, %v3281_v58  ;;  %v2557_v63 = vpop.f32.mrb[5].mxu1 }
 0x2b1   :  { %v376_v0 = vpop.f32.mrb[6].mxu1 }
 0x2b2   :  { %v377_v1 = vadd.f32 %v376_v0, %v3284_v61  ;;  %v2558_v2 = vpop.f32.mrb[7].mxu1  ;;  %v387_v3 = vsel %vm380_vm3, %v374_v62, -inf }
 0x2b3   :  { %388 = vmax.xlane.f32.xlu0 %v387_v3 }
 0x2b4   :  { %v390_v4 = vsel %vm380_vm3, %v377_v1, -inf }
 0x2b5   :  { %391 = vmax.xlane.f32.xlu1 %v390_v4 }
 0x338   :  { %v383_v5 = vpop.xlane.xlu1 %382 }
 0x339   :  { %v393_v6 = vsub.f32 %v324_v49, %v383_v5 }
 0x33a   :  { %v386_v7 = vpop.xlane.xlu0 %385 }
 0x33b   :  { %v397_v8 = vmul.f32 1.442695, %v393_v6  ;;  %v394_v9 = vsub.f32 %v327_v54, %v386_v7 }
 0x33d   :  { %2799 = vpow2.f32 %v397_v8  ;;  %v399_v10 = vmul.f32 1.442695, %v394_v9 }
 0x33f   :  { %2801 = vpow2.f32 %v399_v10 }
 0x340   :  { %v389_v12 = vpop.xlane.xlu0 %388 }
 0x341   :  { %v395_v13 = vsub.f32 %v374_v62, %v389_v12 }
 0x342   :  { %v392_v24 = vpop.xlane.xlu1 %391 }
 0x343   :  { %v401_v14 = vmul.f32 1.442695, %v395_v13  ;;  %v396_v26 = vsub.f32 %v377_v1, %v392_v24 }
 0x345   :  { %2803 = vpow2.f32 %v401_v14  ;;  %v403_v27 = vmul.f32 1.442695, %v396_v26 }
 0x347   :  { %v2800_v16 = vpop.eup %2799  ;;  %2805 = vpow2.f32 %v403_v27 }
 0x348   :  { %v405_v18 = vsel %vm380_vm3, %v2800_v16, 0.0 }
 0x349   :  { %v2802_v19 = vpop.eup %2801  ;;  %406 = vadd.xlane.f32.xlu0 %v405_v18 }
 0x34a   :  { %v408_v20 = vsel %vm380_vm3, %v2802_v19, 0.0 }
 0x34b   :  { %409 = vadd.xlane.f32.xlu1 %v408_v20 }
 0x34f   :  { %v2804_v21 = vpop.eup %2803 }
 0x350   :  { %v411_v23 = vsel %vm380_vm3, %v2804_v21, 0.0 }
 0x351   :  { %412 = vadd.xlane.f32.xlu0 %v411_v23  ;;  %v2806_v28 = vpop.eup %2805 }
 0x352   :  { %v414_v29 = vsel %vm380_vm3, %v2806_v28, 0.0 }
 0x35c   :  { %572 = vrot.lane.b32.xlu1 %v3252_v22, %s3106_s5 }
 0x367   :  { %521 = vrot.lane.b32.xlu0 %v3246_v15, %s3106_s5 }
 0x36b   :  { %570 = vrot.lane.b32.xlu0 %v3252_v22, %s3107_s0 }
 0x380   :  { %415 = vadd.xlane.f32.xlu1 %v414_v29 }
 0x391   :  { %519 = vrot.lane.b32.xlu1 %v3246_v15, %s3107_s0 }
 0x3d6   :  { %v407_v30 = vpop.xlane.xlu0 %406 }
 0x3d7   :  { %2807 = vrcp.f32 %v407_v30 }
 0x3d8   :  { %v410_v31 = vpop.xlane.xlu1 %409 }
 0x3d9   :  { %2809 = vrcp.f32 %v410_v31 }
 0x3dc   :  { %v573_v40 = vpop.permute.xlu1 %572 }
 0x3dd   :  { %v578_v50 = vsel %vm282_vm2, %v573_v40, 0 }
 0x3de   :  { %v413_v32 = vpop.xlane.xlu0 %412 }
 0x3df   :  { %2811 = vrcp.f32 %v413_v32 }
 0x3e1   :  { %v2808_v33 = vpop.eup %2807 }
 0x3e2   :  { %v421_v35 = vmul.f32 %v2808_v33, %v2800_v16  ;;  %v522_v37 = vpop.permute.xlu0 %521 }
 0x3e3   :  { %v2810_v34 = vpop.eup %2809  ;;  %v527_v39 = vsel %vm282_vm2, %v522_v37, 0 }
 0x3e4   :  { %v422_v36 = vmul.f32 %v2810_v34, %v2802_v19 }
 0x3e6   :  { %v425_v38 = vpack.c.bf16 %v422_v36, %v421_v35  ;;  %v571_v51 = vpop.permute.xlu0 %570 }
 0x3e8   :  { %2562 = vmatmul.mubr.msk.bf16.vlgmr.msra.gmra.mrb[8].mxu1 %vm380_vm3, %v425_v38 }
 0x3e9   :  { %2572 = vmatpush3.bf16.xpose.msra.mxu1 %v527_v39  ;;  %2573 = vmatprep.mubr.msk.bf16.mxu1 %vm3105_vm1, %v3104_v11  ;;  %v2812_v43 = vpop.eup %2811 }
 0x3ea   :  { %2583 = vmatprep.subr.bf16.mxu1 %v3104_v11  ;;  %v423_v46 = vmul.f32 %v2812_v43, %v2804_v21 }
 0x40d   :  { %v416_v41 = vpop.xlane.xlu1 %415 }
 0x40e   :  { %2813 = vrcp.f32 %v416_v41 }
 0x411   :  { %v520_v42 = vpop.permute.xlu1 %519 }
 0x412   :  { %2574 = vmatmul.mubr.msk.bf16.vlgmr.msra.gmra.mrb[12].mxu1 %vm282_vm2, %v520_v42 }
 0x413   :  { %2585 = vmatprep.mubr.msk.bf16.mxu1 %vm3105_vm1, %v3104_v11 }
 0x418   :  { %v2814_v44 = vpop.eup %2813 }
 0x419   :  { %v424_v47 = vmul.f32 %v2814_v44, %v2806_v28 }
 0x41b   :  { %v426_v49 = vpack.c.bf16 %v424_v47, %v423_v46 }
 0x41d   :  { %2568 = vmatmul.mubr.msk.bf16.vlgmr.msra.gmra.mrb[8].mxu0 %vm380_vm3, %v426_v49 }
 0x41e   :  { %2578 = vmatpush3.bf16.xpose.msra.mxu0 %v578_v50  ;;  %2579 = vmatprep.mubr.msk.bf16.mxu0 %vm3105_vm1, %v3104_v11 }
 0x41f   :  { %2589 = vmatprep.subr.bf16.mxu0 %v3104_v11 }
 0x425   :  { %2580 = vmatmul.mubr.msk.bf16.vlgmr.msra.gmra.mrb[12].mxu0 %vm282_vm2, %v571_v51 }
 0x426   :  { %2591 = vmatprep.mubr.msk.bf16.mxu0 %vm3105_vm1, %v3104_v11 }
 0x4bb   :  { %v464_v52 = vpop.f32.mrb[8].mxu1 }
 0x4bc   :  { %v2563_v53 = vpop.f32.mrb[9].mxu1 }
 0x4bd   :  { %v467_v54 = vpop.f32.mrb[10].mxu1 }
 0x4be   :  { %v515_v55 = vpack.c.bf16 %v467_v54, %v464_v52  ;;  %v2564_v56 = vpop.f32.mrb[11].mxu1 }
 0x4c0   :  { %517 = vst.msk [vmem:[#allocation2] sm:$0xff] %vm282_vm2, %v515_v55 }
 0x4e5   :  { %v563_v57 = vpop.f32.mrb[12].mxu1 }
 0x4e6   :  { %v564_v59 = vadd.f32 %v563_v57, %v3274_v45  ;;  %v2575_v60 = vpop.f32.mrb[13].mxu1 }
 0x4e7   :  { %v566_v62 = vpop.f32.mrb[14].mxu1 }
 0x4e8   :  { %v567_v63 = vadd.f32 %v566_v62, %v3276_v48  ;;  %v2576_v0 = vpop.f32.mrb[15].mxu1  ;;  %v621_v1 = vsel %vm380_vm3, %v564_v59, -inf }
 0x4e9   :  { %622 = vmax.xlane.f32.xlu1 %v621_v1 }
 0x4ea   :  { %v624_v2 = vsel %vm380_vm3, %v567_v63, -inf }
 0x4eb   :  { %625 = vmax.xlane.f32.xlu0 %v624_v2 }
 0x4f0   :  { %v508_v3 = vpop.f32.mrb[8].mxu0 }
 0x4f1   :  { %v2569_v4 = vpop.f32.mrb[9].mxu0 }
 0x4f2   :  { %v511_v5 = vpop.f32.mrb[10].mxu0 }
 0x4f3   :  { %v516_v6 = vpack.c.bf16 %v511_v5, %v508_v3  ;;  %v2570_v7 = vpop.f32.mrb[11].mxu0 }
 0x4f5   :  { %518 = vst.msk [vmem:[#allocation2 + $0x8] sm:$0xff] %vm282_vm2, %v516_v6 }
 0x4f8   :  { %v614_v8 = vpop.f32.mrb[12].mxu0 }
 0x4f9   :  { %v615_v9 = vadd.f32 %v614_v8, %v3281_v58  ;;  %v2581_v10 = vpop.f32.mrb[13].mxu0 }
 0x4fa   :  { %v617_v12 = vpop.f32.mrb[14].mxu0 }
 0x4fb   :  { %v618_v13 = vadd.f32 %v617_v12, %v3284_v61  ;;  %v2582_v14 = vpop.f32.mrb[15].mxu0  ;;  %v627_v16 = vsel %vm380_vm3, %v615_v9, -inf }
 0x4fc   :  { %628 = vmax.xlane.f32.xlu0 %v627_v16 }
 0x4fd   :  { %v630_v18 = vsel %vm380_vm3, %v618_v13, -inf }
 0x4fe   :  { %631 = vmax.xlane.f32.xlu1 %v630_v18 }
 0x50f   :  { %716 = vrot.lane.b32.xlu1 %v3254_v25, %s3107_s0 }
 0x512   :  { %668 = vrot.lane.b32.xlu0 %v3248_v17, %s3107_s0 }
 0x513   :  { %778 = vrot.lane.b32.xlu1 %v3246_v15, %s3108_s26 }
 0x576   :  { %v623_v19 = vpop.xlane.xlu1 %622 }
 0x577   :  { %v633_v20 = vsub.f32 %v564_v59, %v623_v19 }
 0x578   :  { %v626_v21 = vpop.xlane.xlu0 %625 }
 0x579   :  { %v637_v23 = vmul.f32 1.442695, %v633_v20  ;;  %v634_v24 = vsub.f32 %v567_v63, %v626_v21 }
 0x57b   :  { %2815 = vpow2.f32 %v637_v23  ;;  %v639_v26 = vmul.f32 1.442695, %v634_v24 }
 0x57d   :  { %2817 = vpow2.f32 %v639_v26 }
 0x585   :  { %v2816_v27 = vpop.eup %2815 }
 0x586   :  { %v645_v28 = vsel %vm380_vm3, %v2816_v27, 0.0 }
 0x587   :  { %v2818_v29 = vpop.eup %2817  ;;  %646 = vadd.xlane.f32.xlu0 %v645_v28 }
 0x588   :  { %v648_v30 = vsel %vm380_vm3, %v2818_v29, 0.0 }
 0x589   :  { %v629_v31 = vpop.xlane.xlu0 %628  ;;  %649 = vadd.xlane.f32.xlu1 %v648_v30 }
 0x58a   :  { %v635_v32 = vsub.f32 %v615_v9, %v629_v31 }
 0x58b   :  { %v632_v33 = vpop.xlane.xlu1 %631 }
 0x58c   :  { %v641_v34 = vmul.f32 1.442695, %v635_v32  ;;  %v636_v35 = vsub.f32 %v618_v13, %v632_v33 }
 0x58d   :  { %v669_v36 = vpop.permute.xlu0 %668 }
 0x58e   :  { %2819 = vpow2.f32 %v641_v34  ;;  %v643_v37 = vmul.f32 1.442695, %v636_v35  ;;  %2584 = vmatpush3.bf16.msra.mxu1 %v669_v36 }
 0x58f   :  { %v717_v38 = vpop.permute.xlu1 %716  ;;  %2595 = vmatprep.subr.bf16.mxu1 %v3104_v11 }
 0x590   :  { %2821 = vpow2.f32 %v643_v37  ;;  %2590 = vmatpush3.bf16.msra.mxu0 %v717_v38 }
 0x591   :  { %2601 = vmatprep.subr.bf16.mxu0 %v3104_v11 }
 0x593   :  { %v779_v43 = vpop.permute.xlu1 %778 }
 0x594   :  { %v784_v53 = vsel %vm282_vm2, %v779_v43, 0 }
 0x598   :  { %v2820_v39 = vpop.eup %2819 }
 0x599   :  { %v651_v40 = vsel %vm380_vm3, %v2820_v39, 0.0 }
 0x59a   :  { %v2822_v41 = vpop.eup %2821  ;;  %652 = vadd.xlane.f32.xlu0 %v651_v40 }
 0x59b   :  { %v654_v42 = vsel %vm380_vm3, %v2822_v41, 0.0 }
 0x59c   :  { %655 = vadd.xlane.f32.xlu1 %v654_v42 }
 0x5ad   :  { %776 = vrot.lane.b32.xlu1 %v3246_v15, %s3109_s27 }
 0x5b0   :  { %829 = vrot.lane.b32.xlu0 %v3252_v22, %s3108_s26 }
 0x5b4   :  { %827 = vrot.lane.b32.xlu0 %v3252_v22, %s3109_s27 }
 0x614   :  { %v647_v44 = vpop.xlane.xlu0 %646 }
 0x615   :  { %2823 = vrcp.f32 %v647_v44 }
 0x616   :  { %v650_v46 = vpop.xlane.xlu1 %649 }
 0x617   :  { %2825 = vrcp.f32 %v650_v46 }
 0x61f   :  { %v2824_v47 = vpop.eup %2823 }
 0x620   :  { %v661_v50 = vmul.f32 %v2824_v47, %v2816_v27 }
 0x621   :  { %v2826_v49 = vpop.eup %2825 }
 0x622   :  { %v662_v51 = vmul.f32 %v2826_v49, %v2818_v29 }
 0x624   :  { %v665_v52 = vpack.c.bf16 %v662_v51, %v661_v50 }
 0x626   :  { %2586 = vmatmul.mubr.msk.bf16.vlgmr.msra.gmra.mrb[16].mxu1 %vm380_vm3, %v665_v52 }
 0x627   :  { %2596 = vmatpush3.bf16.xpose.msra.mxu1 %v784_v53  ;;  %v653_v54 = vpop.xlane.xlu0 %652  ;;  %2597 = vmatprep.mubr.msk.bf16.mxu1 %vm3105_vm1, %v3104_v11 }
 0x628   :  { %2827 = vrcp.f32 %v653_v54  ;;  %2607 = vmatprep.subr.bf16.mxu1 %v3104_v11 }
 0x629   :  { %v656_v55 = vpop.xlane.xlu1 %655 }
 0x62a   :  { %2829 = vrcp.f32 %v656_v55 }
 0x62b   :  { %v830_v63 = vpop.permute.xlu0 %829 }
 0x62c   :  { %v835_v1 = vsel %vm282_vm2, %v830_v63, 0 }
 0x62d   :  { %v777_v56 = vpop.permute.xlu1 %776 }
 0x62e   :  { %2598 = vmatmul.mubr.msk.bf16.vlgmr.msra.gmra.mrb[20].mxu1 %vm282_vm2, %v777_v56 }
 0x62f   :  { %2609 = vmatprep.mubr.msk.bf16.mxu1 %vm3105_vm1, %v3104_v11  ;;  %v828_v2 = vpop.permute.xlu0 %827 }
 0x632   :  { %v2828_v57 = vpop.eup %2827 }
 0x633   :  { %v663_v60 = vmul.f32 %v2828_v57, %v2820_v39 }
 0x634   :  { %v2830_v59 = vpop.eup %2829 }
 0x635   :  { %v664_v62 = vmul.f32 %v2830_v59, %v2822_v41 }
 0x637   :  { %v666_v0 = vpack.c.bf16 %v664_v62, %v663_v60 }
 0x639   :  { %2592 = vmatmul.mubr.msk.bf16.vlgmr.msra.gmra.mrb[16].mxu0 %vm380_vm3, %v666_v0 }
 0x63a   :  { %2602 = vmatpush3.bf16.xpose.msra.mxu0 %v835_v1  ;;  %2603 = vmatprep.mubr.msk.bf16.mxu0 %vm3105_vm1, %v3104_v11 }
 0x63b   :  { %2613 = vmatprep.subr.bf16.mxu0 %v3104_v11 }
 0x641   :  { %2604 = vmatmul.mubr.msk.bf16.vlgmr.msra.gmra.mrb[20].mxu0 %vm282_vm2, %v828_v2 }
 0x642   :  { %2615 = vmatprep.mubr.msk.bf16.mxu0 %vm3105_vm1, %v3104_v11 }
 0x6f9   :  { %v3362_v3 = vpop.f32.mrb[16].mxu1 }
 0x6fa   :  { %v2587_v4 = vpop.f32.mrb[17].mxu1 }
 0x6fb   :  { %v3364_v5 = vpop.f32.mrb[18].mxu1 }
 0x6fc   :  { %v763_v6 = vpack.c.bf16 %v3364_v5, %v3362_v3  ;;  %v2588_v7 = vpop.f32.mrb[19].mxu1 }
 0x701   :  { %v820_v8 = vpop.f32.mrb[20].mxu1 }
 0x702   :  { %v821_v9 = vadd.f32 %v820_v8, %v3274_v45  ;;  %v2599_v10 = vpop.f32.mrb[21].mxu1 }
 0x703   :  { %v823_v12 = vpop.f32.mrb[22].mxu1 }
 0x704   :  { %v824_v13 = vadd.f32 %v823_v12, %v3276_v48  ;;  %v2600_v14 = vpop.f32.mrb[23].mxu1  ;;  %v878_v16 = vsel %vm380_vm3, %v821_v9, -inf }
 0x705   :  { %879 = vmax.xlane.f32.xlu1 %v878_v16 }
 0x706   :  { %v881_v18 = vsel %vm380_vm3, %v824_v13, -inf }
 0x707   :  { %882 = vmax.xlane.f32.xlu0 %v881_v18 }
 0x70c   :  { %v3372_v19 = vpop.f32.mrb[16].mxu0 }
 0x70d   :  { %v2593_v20 = vpop.f32.mrb[17].mxu0 }
 0x70e   :  { %v3374_v21 = vpop.f32.mrb[18].mxu0 }
 0x70f   :  { %v764_v23 = vpack.c.bf16 %v3374_v21, %v3372_v19  ;;  %v2594_v24 = vpop.f32.mrb[19].mxu0 }
 0x714   :  { %v871_v26 = vpop.f32.mrb[20].mxu0 }
 0x715   :  { %v872_v27 = vadd.f32 %v871_v26, %v3281_v58  ;;  %v2605_v28 = vpop.f32.mrb[21].mxu0 }
 0x716   :  { %v874_v29 = vpop.f32.mrb[22].mxu0 }
 0x717   :  { %v875_v30 = vadd.f32 %v874_v29, %v3284_v61  ;;  %v2606_v31 = vpop.f32.mrb[23].mxu0  ;;  %v884_v32 = vsel %vm380_vm3, %v872_v27, -inf }
 0x718   :  { %885 = vmax.xlane.f32.xlu0 %v884_v32 }
 0x719   :  { %v887_v33 = vsel %vm380_vm3, %v875_v30, -inf }
 0x71a   :  { %888 = vmax.xlane.f32.xlu1 %v887_v33 }
 0x72b   :  { %971 = vrot.lane.b32.xlu1 %v3254_v25, %s3109_s27 }
 0x72e   :  { %924 = vrot.lane.b32.xlu0 %v3248_v17, %s3109_s27 }
 0x72f   :  { %1033 = vrot.lane.b32.xlu1 %v3246_v15, %s3110_s28 }
 0x792   :  { %v880_v34 = vpop.xlane.xlu1 %879 }
 0x793   :  { %v890_v35 = vsub.f32 %v821_v9, %v880_v34 }
 0x794   :  { %v883_v36 = vpop.xlane.xlu0 %882 }
 0x795   :  { %v894_v37 = vmul.f32 1.442695, %v890_v35  ;;  %v891_v38 = vsub.f32 %v824_v13, %v883_v36 }
 0x797   :  { %2831 = vpow2.f32 %v894_v37  ;;  %v896_v39 = vmul.f32 1.442695, %v891_v38 }
 0x799   :  { %2833 = vpow2.f32 %v896_v39 }
 0x7a1   :  { %v2832_v40 = vpop.eup %2831 }
 0x7a2   :  { %v902_v41 = vsel %vm380_vm3, %v2832_v40, 0.0 }
 0x7a3   :  { %v2834_v42 = vpop.eup %2833  ;;  %903 = vadd.xlane.f32.xlu0 %v902_v41 }
 0x7a4   :  { %v905_v43 = vsel %vm380_vm3, %v2834_v42, 0.0 }
 0x7a5   :  { %v886_v44 = vpop.xlane.xlu0 %885  ;;  %906 = vadd.xlane.f32.xlu1 %v905_v43 }
 0x7a6   :  { %v892_v46 = vsub.f32 %v872_v27, %v886_v44 }
 0x7a7   :  { %v889_v47 = vpop.xlane.xlu1 %888 }
 0x7a8   :  { %v898_v49 = vmul.f32 1.442695, %v892_v46  ;;  %v893_v50 = vsub.f32 %v875_v30, %v889_v47 }
 0x7a9   :  { %v925_v51 = vpop.permute.xlu0 %924 }
 0x7aa   :  { %2835 = vpow2.f32 %v898_v49  ;;  %v900_v52 = vmul.f32 1.442695, %v893_v50  ;;  %2608 = vmatpush3.bf16.msra.mxu1 %v925_v51 }
 0x7ab   :  { %v972_v53 = vpop.permute.xlu1 %971  ;;  %2619 = vmatprep.subr.bf16.mxu1 %v3104_v11 }
 0x7ac   :  { %2837 = vpow2.f32 %v900_v52  ;;  %2614 = vmatpush3.bf16.msra.mxu0 %v972_v53 }
 0x7ad   :  { %2625 = vmatprep.subr.bf16.mxu0 %v3104_v11 }
 0x7af   :  { %v1034_v59 = vpop.permute.xlu1 %1033 }
 0x7b0   :  { %v1039_v7 = vsel %vm282_vm2, %v1034_v59, 0 }
 0x7b4   :  { %v2836_v54 = vpop.eup %2835 }
 0x7b5   :  { %v908_v55 = vsel %vm380_vm3, %v2836_v54, 0.0 }
 0x7b6   :  { %v2838_v56 = vpop.eup %2837  ;;  %909 = vadd.xlane.f32.xlu0 %v908_v55 }
 0x7b7   :  { %v911_v57 = vsel %vm380_vm3, %v2838_v56, 0.0 }
 0x7b8   :  { %912 = vadd.xlane.f32.xlu1 %v911_v57 }
 0x7c9   :  { %1031 = vrot.lane.b32.xlu1 %v3246_v15, %s3111_s29 }
 0x7cc   :  { %1084 = vrot.lane.b32.xlu0 %v3252_v22, %s3110_s28 }
 0x7d0   :  { %1082 = vrot.lane.b32.xlu0 %v3252_v22, %s3111_s29 }
 0x830   :  { %v904_v60 = vpop.xlane.xlu0 %903 }
 0x831   :  { %2839 = vrcp.f32 %v904_v60 }
 0x832   :  { %v907_v62 = vpop.xlane.xlu1 %906 }
 0x833   :  { %2841 = vrcp.f32 %v907_v62 }
 0x83b   :  { %v2840_v63 = vpop.eup %2839 }
 0x83c   :  { %v918_v1 = vmul.f32 %v2840_v63, %v2832_v40 }
 0x83d   :  { %v2842_v0 = vpop.eup %2841 }
 0x83e   :  { %v919_v2 = vmul.f32 %v2842_v0, %v2834_v42 }
 0x840   :  { %v922_v4 = vpack.c.bf16 %v919_v2, %v918_v1 }
 0x842   :  { %2610 = vmatmul.mubr.msk.bf16.vlgmr.msra.gmra.mrb[24].mxu1 %vm380_vm3, %v922_v4 }
 0x843   :  { %2620 = vmatpush3.bf16.xpose.msra.mxu1 %v1039_v7  ;;  %v910_v8 = vpop.xlane.xlu0 %909  ;;  %2621 = vmatprep.mubr.msk.bf16.mxu1 %vm3105_vm1, %v3104_v11 }
 0x844   :  { %2843 = vrcp.f32 %v910_v8  ;;  %2631 = vmatprep.subr.bf16.mxu1 %v3104_v11 }
 0x845   :  { %v913_v9 = vpop.xlane.xlu1 %912 }
 0x846   :  { %2845 = vrcp.f32 %v913_v9 }
 0x847   :  { %v1085_v18 = vpop.permute.xlu0 %1084 }
 0x848   :  { %v1090_v24 = vsel %vm282_vm2, %v1085_v18, 0 }
 0x849   :  { %v1032_v10 = vpop.permute.xlu1 %1031 }
 0x84a   :  { %2622 = vmatmul.mubr.msk.bf16.vlgmr.msra.gmra.mrb[28].mxu1 %vm282_vm2, %v1032_v10 }
 0x84b   :  { %2633 = vmatprep.mubr.msk.bf16.mxu1 %vm3105_vm1, %v3104_v11  ;;  %v1083_v26 = vpop.permute.xlu0 %1082 }
 0x84e   :  { %v2844_v12 = vpop.eup %2843 }
 0x84f   :  { %v920_v14 = vmul.f32 %v2844_v12, %v2836_v54 }
 0x850   :  { %v2846_v13 = vpop.eup %2845 }
 0x851   :  { %v921_v16 = vmul.f32 %v2846_v13, %v2838_v56 }
 0x853   :  { %v923_v20 = vpack.c.bf16 %v921_v16, %v920_v14 }
 0x855   :  { %2616 = vmatmul.mubr.msk.bf16.vlgmr.msra.gmra.mrb[24].mxu0 %vm380_vm3, %v923_v20 }
 0x856   :  { %2626 = vmatpush3.bf16.xpose.msra.mxu0 %v1090_v24  ;;  %2627 = vmatprep.mubr.msk.bf16.mxu0 %vm3105_vm1, %v3104_v11 }
 0x857   :  { %2637 = vmatprep.subr.bf16.mxu0 %v3104_v11 }
 0x85d   :  { %2628 = vmatmul.mubr.msk.bf16.vlgmr.msra.gmra.mrb[28].mxu0 %vm282_vm2, %v1083_v26 }
 0x85e   :  { %2639 = vmatprep.mubr.msk.bf16.mxu0 %vm3105_vm1, %v3104_v11 }
 0x915   :  { %v3416_v27 = vpop.f32.mrb[24].mxu1 }
 0x916   :  { %v2611_v28 = vpop.f32.mrb[25].mxu1 }
 0x917   :  { %v3418_v29 = vpop.f32.mrb[26].mxu1 }
 0x918   :  { %v1018_v30 = vpack.c.bf16 %v3418_v29, %v3416_v27  ;;  %v2612_v31 = vpop.f32.mrb[27].mxu1 }
 0x91d   :  { %v1075_v32 = vpop.f32.mrb[28].mxu1 }
 0x91e   :  { %v1076_v33 = vadd.f32 %v1075_v32, %v3274_v45  ;;  %v2623_v34 = vpop.f32.mrb[29].mxu1 }
 0x91f   :  { %v1078_v35 = vpop.f32.mrb[30].mxu1 }
 0x920   :  { %v1079_v36 = vadd.f32 %v1078_v35, %v3276_v48  ;;  %v2624_v37 = vpop.f32.mrb[31].mxu1  ;;  %v1133_v38 = vsel %vm380_vm3, %v1076_v33, -inf }
 0x921   :  { %1134 = vmax.xlane.f32.xlu1 %v1133_v38 }
 0x922   :  { %v1136_v39 = vsel %vm380_vm3, %v1079_v36, -inf }
 0x923   :  { %1137 = vmax.xlane.f32.xlu0 %v1136_v39 }
 0x928   :  { %v3426_v40 = vpop.f32.mrb[24].mxu0 }
 0x929   :  { %v2617_v41 = vpop.f32.mrb[25].mxu0 }
 0x92a   :  { %v3428_v42 = vpop.f32.mrb[26].mxu0 }
 0x92b   :  { %v1019_v43 = vpack.c.bf16 %v3428_v42, %v3426_v40  ;;  %v2618_v44 = vpop.f32.mrb[27].mxu0 }
 0x930   :  { %v1126_v46 = vpop.f32.mrb[28].mxu0 }
 0x931   :  { %v1127_v47 = vadd.f32 %v1126_v46, %v3281_v58  ;;  %v2629_v49 = vpop.f32.mrb[29].mxu0 }
 0x932   :  { %v1129_v50 = vpop.f32.mrb[30].mxu0 }
 0x933   :  { %v1130_v51 = vadd.f32 %v1129_v50, %v3284_v61  ;;  %v2630_v52 = vpop.f32.mrb[31].mxu0  ;;  %v1139_v53 = vsel %vm380_vm3, %v1127_v47, -inf }
 0x934   :  { %1140 = vmax.xlane.f32.xlu0 %v1139_v53 }
 0x935   :  { %v1142_v54 = vsel %vm380_vm3, %v1130_v51, -inf }
 0x936   :  { %1143 = vmax.xlane.f32.xlu1 %v1142_v54 }
 0x947   :  { %1226 = vrot.lane.b32.xlu1 %v3254_v25, %s3111_s29 }
 0x94a   :  { %1179 = vrot.lane.b32.xlu0 %v3248_v17, %s3111_s29 }
 0x94b   :  { %1288 = vrot.lane.b32.xlu1 %v3246_v15, %s3112_s30 }
 0x9ae   :  { %v1135_v55 = vpop.xlane.xlu1 %1134 }
 0x9af   :  { %v1145_v56 = vsub.f32 %v1076_v33, %v1135_v55 }
 0x9b0   :  { %v1138_v57 = vpop.xlane.xlu0 %1137 }
 0x9b1   :  { %v1149_v59 = vmul.f32 1.442695, %v1145_v56  ;;  %v1146_v60 = vsub.f32 %v1079_v36, %v1138_v57 }
 0x9b3   :  { %2847 = vpow2.f32 %v1149_v59  ;;  %v1151_v62 = vmul.f32 1.442695, %v1146_v60 }
 0x9b5   :  { %2849 = vpow2.f32 %v1151_v62 }
 0x9bd   :  { %v2848_v63 = vpop.eup %2847 }
 0x9be   :  { %v1157_v0 = vsel %vm380_vm3, %v2848_v63, 0.0 }
 0x9bf   :  { %v2850_v1 = vpop.eup %2849  ;;  %1158 = vadd.xlane.f32.xlu0 %v1157_v0 }
 0x9c0   :  { %v1160_v2 = vsel %vm380_vm3, %v2850_v1, 0.0 }
 0x9c1   :  { %v1141_v4 = vpop.xlane.xlu0 %1140  ;;  %1161 = vadd.xlane.f32.xlu1 %v1160_v2 }
 0x9c2   :  { %v1147_v7 = vsub.f32 %v1127_v47, %v1141_v4 }
 0x9c3   :  { %v1144_v8 = vpop.xlane.xlu1 %1143 }
 0x9c4   :  { %v1153_v9 = vmul.f32 1.442695, %v1147_v7  ;;  %v1148_v10 = vsub.f32 %v1130_v51, %v1144_v8 }
 0x9c5   :  { %v1180_v12 = vpop.permute.xlu0 %1179 }
 0x9c6   :  { %2851 = vpow2.f32 %v1153_v9  ;;  %v1155_v13 = vmul.f32 1.442695, %v1148_v10  ;;  %2632 = vmatpush3.bf16.msra.mxu1 %v1180_v12 }
 0x9c7   :  { %v1227_v14 = vpop.permute.xlu1 %1226  ;;  %2643 = vmatprep.subr.bf16.mxu1 %v3104_v11 }
 0x9c8   :  { %2853 = vpow2.f32 %v1155_v13  ;;  %2638 = vmatpush3.bf16.msra.mxu0 %v1227_v14 }
 0x9c9   :  { %2649 = vmatprep.subr.bf16.mxu0 %v3104_v11 }
 0x9cb   :  { %v1289_v26 = vpop.permute.xlu1 %1288 }
 0x9cc   :  { %v1294_v37 = vsel %vm282_vm2, %v1289_v26, 0 }
 0x9d0   :  { %v2852_v16 = vpop.eup %2851 }
 0x9d1   :  { %v1163_v18 = vsel %vm380_vm3, %v2852_v16, 0.0 }
 0x9d2   :  { %v2854_v20 = vpop.eup %2853  ;;  %1164 = vadd.xlane.f32.xlu0 %v1163_v18 }
 0x9d3   :  { %v1166_v24 = vsel %vm380_vm3, %v2854_v20, 0.0 }
 0x9d4   :  { %1167 = vadd.xlane.f32.xlu1 %v1166_v24 }
 0x9e5   :  { %1286 = vrot.lane.b32.xlu1 %v3246_v15, %s3113_s8 }
 0x9e8   :  { %1339 = vrot.lane.b32.xlu0 %v3252_v22, %s3112_s30 }
 0x9ec   :  { %1337 = vrot.lane.b32.xlu0 %v3252_v22, %s3113_s8 }
 0xa4c   :  { %v1159_v28 = vpop.xlane.xlu0 %1158 }
 0xa4d   :  { %2855 = vrcp.f32 %v1159_v28 }
 0xa4e   :  { %v1162_v31 = vpop.xlane.xlu1 %1161 }
 0xa4f   :  { %2857 = vrcp.f32 %v1162_v31 }
 0xa57   :  { %v2856_v32 = vpop.eup %2855 }
 0xa58   :  { %v1173_v34 = vmul.f32 %v2856_v32, %v2848_v63 }
 0xa59   :  { %v2858_v33 = vpop.eup %2857 }
 0xa5a   :  { %v1174_v35 = vmul.f32 %v2858_v33, %v2850_v1 }
 0xa5c   :  { %v1177_v36 = vpack.c.bf16 %v1174_v35, %v1173_v34 }
 0xa5e   :  { %2634 = vmatmul.mubr.msk.bf16.vlgmr.msra.gmra.mrb[32].mxu1 %vm380_vm3, %v1177_v36 }
 0xa5f   :  { %2644 = vmatpush3.bf16.xpose.msra.mxu1 %v1294_v37  ;;  %v1165_v38 = vpop.xlane.xlu0 %1164  ;;  %2645 = vmatprep.mubr.msk.bf16.mxu1 %vm3105_vm1, %v3104_v11 }
 0xa60   :  { %2859 = vrcp.f32 %v1165_v38  ;;  %2655 = vmatprep.subr.bf16.mxu1 %v3104_v11 }
 0xa61   :  { %v1168_v39 = vpop.xlane.xlu1 %1167 }
 0xa62   :  { %2861 = vrcp.f32 %v1168_v39 }
 0xa63   :  { %v1340_v50 = vpop.permute.xlu0 %1339 }
 0xa64   :  { %v1345_v52 = vsel %vm282_vm2, %v1340_v50, 0 }
 0xa65   :  { %v1287_v41 = vpop.permute.xlu1 %1286 }
 0xa66   :  { %2646 = vmatmul.mubr.msk.bf16.vlgmr.msra.gmra.mrb[36].mxu1 %vm282_vm2, %v1287_v41 }
 0xa67   :  { %2657 = vmatprep.mubr.msk.bf16.mxu1 %vm3105_vm1, %v3104_v11  ;;  %v1338_v53 = vpop.permute.xlu0 %1337 }
 0xa6a   :  { %v2860_v44 = vpop.eup %2859 }
 0xa6b   :  { %v1175_v47 = vmul.f32 %v2860_v44, %v2852_v16 }
 0xa6c   :  { %v2862_v46 = vpop.eup %2861 }
 0xa6d   :  { %v1176_v49 = vmul.f32 %v2862_v46, %v2854_v20 }
 0xa6f   :  { %v1178_v51 = vpack.c.bf16 %v1176_v49, %v1175_v47 }
 0xa71   :  { %2640 = vmatmul.mubr.msk.bf16.vlgmr.msra.gmra.mrb[32].mxu0 %vm380_vm3, %v1178_v51 }
 0xa72   :  { %2650 = vmatpush3.bf16.xpose.msra.mxu0 %v1345_v52  ;;  %2651 = vmatprep.mubr.msk.bf16.mxu0 %vm3105_vm1, %v3104_v11 }
 0xa73   :  { %2661 = vmatprep.subr.bf16.mxu0 %v3104_v11 }
 0xa79   :  { %2652 = vmatmul.mubr.msk.bf16.vlgmr.msra.gmra.mrb[36].mxu0 %vm282_vm2, %v1338_v53 }
 0xa7a   :  { %2663 = vmatprep.mubr.msk.bf16.mxu0 %vm3105_vm1, %v3104_v11 }
 0xb31   :  { %v3470_v54 = vpop.f32.mrb[32].mxu1 }
 0xb32   :  { %v2635_v55 = vpop.f32.mrb[33].mxu1 }
 0xb33   :  { %v3472_v56 = vpop.f32.mrb[34].mxu1 }
 0xb34   :  { %v1273_v57 = vpack.c.bf16 %v3472_v56, %v3470_v54  ;;  %v2636_v59 = vpop.f32.mrb[35].mxu1 }
 0xb39   :  { %v1330_v60 = vpop.f32.mrb[36].mxu1 }
 0xb3a   :  { %v1331_v62 = vadd.f32 %v1330_v60, %v3274_v45  ;;  %v2647_v63 = vpop.f32.mrb[37].mxu1 }
 0xb3b   :  { %v1333_v0 = vpop.f32.mrb[38].mxu1 }
 0xb3c   :  { %v1334_v1 = vadd.f32 %v1333_v0, %v3276_v48  ;;  %v2648_v2 = vpop.f32.mrb[39].mxu1  ;;  %v1388_v4 = vsel %vm380_vm3, %v1331_v62, -inf }
 0xb3d   :  { %1389 = vmax.xlane.f32.xlu1 %v1388_v4 }
 0xb3e   :  { %v1391_v7 = vsel %vm380_vm3, %v1334_v1, -inf }
 0xb3f   :  { %1392 = vmax.xlane.f32.xlu0 %v1391_v7 }
 0xb44   :  { %v3480_v8 = vpop.f32.mrb[32].mxu0 }
 0xb45   :  { %v2641_v9 = vpop.f32.mrb[33].mxu0 }
 0xb46   :  { %v3482_v10 = vpop.f32.mrb[34].mxu0 }
 0xb47   :  { %v1274_v12 = vpack.c.bf16 %v3482_v10, %v3480_v8  ;;  %v2642_v13 = vpop.f32.mrb[35].mxu0 }
 0xb4c   :  { %v1381_v14 = vpop.f32.mrb[36].mxu0 }
 0xb4d   :  { %v1382_v16 = vadd.f32 %v1381_v14, %v3281_v58  ;;  %v2653_v18 = vpop.f32.mrb[37].mxu0 }
 0xb4e   :  { %v1384_v20 = vpop.f32.mrb[38].mxu0 }
 0xb4f   :  { %v1385_v24 = vadd.f32 %v1384_v20, %v3284_v61  ;;  %v2654_v26 = vpop.f32.mrb[39].mxu0  ;;  %v1394_v28 = vsel %vm380_vm3, %v1382_v16, -inf }
 0xb50   :  { %1395 = vmax.xlane.f32.xlu0 %v1394_v28 }
 0xb51   :  { %v1397_v31 = vsel %vm380_vm3, %v1385_v24, -inf }
 0xb52   :  { %1398 = vmax.xlane.f32.xlu1 %v1397_v31 }
 0xb63   :  { %1481 = vrot.lane.b32.xlu1 %v3254_v25, %s3113_s8 }
 0xb66   :  { %1434 = vrot.lane.b32.xlu0 %v3248_v17, %s3113_s8 }
 0xb67   :  { %1543 = vrot.lane.b32.xlu1 %v3246_v15, %s3114_s9 }
 0xbca   :  { %v1390_v32 = vpop.xlane.xlu1 %1389 }
 0xbcb   :  { %v1400_v33 = vsub.f32 %v1331_v62, %v1390_v32 }
 0xbcc   :  { %v1393_v34 = vpop.xlane.xlu0 %1392 }
 0xbcd   :  { %v1404_v35 = vmul.f32 1.442695, %v1400_v33  ;;  %v1401_v36 = vsub.f32 %v1334_v1, %v1393_v34 }
 0xbcf   :  { %2863 = vpow2.f32 %v1404_v35  ;;  %v1406_v37 = vmul.f32 1.442695, %v1401_v36 }
 0xbd1   :  { %2865 = vpow2.f32 %v1406_v37 }
 0xbd9   :  { %v2864_v38 = vpop.eup %2863 }
 0xbda   :  { %v1412_v39 = vsel %vm380_vm3, %v2864_v38, 0.0 }
 0xbdb   :  { %v2866_v41 = vpop.eup %2865  ;;  %1413 = vadd.xlane.f32.xlu0 %v1412_v39 }
 0xbdc   :  { %v1415_v44 = vsel %vm380_vm3, %v2866_v41, 0.0 }
 0xbdd   :  { %v1396_v46 = vpop.xlane.xlu0 %1395  ;;  %1416 = vadd.xlane.f32.xlu1 %v1415_v44 }
 0xbde   :  { %v1402_v47 = vsub.f32 %v1382_v16, %v1396_v46 }
 0xbdf   :  { %v1399_v49 = vpop.xlane.xlu1 %1398 }
 0xbe0   :  { %v1408_v50 = vmul.f32 1.442695, %v1402_v47  ;;  %v1403_v51 = vsub.f32 %v1385_v24, %v1399_v49 }
 0xbe1   :  { %v1435_v52 = vpop.permute.xlu0 %1434 }
 0xbe2   :  { %2867 = vpow2.f32 %v1408_v50  ;;  %v1410_v53 = vmul.f32 1.442695, %v1403_v51  ;;  %2656 = vmatpush3.bf16.msra.mxu1 %v1435_v52 }
 0xbe3   :  { %v1482_v55 = vpop.permute.xlu1 %1481  ;;  %2667 = vmatprep.subr.bf16.mxu1 %v3104_v11 }
 0xbe4   :  { %2869 = vpow2.f32 %v1410_v53  ;;  %2662 = vmatpush3.bf16.msra.mxu0 %v1482_v55 }
 0xbe5   :  { %2673 = vmatprep.subr.bf16.mxu0 %v3104_v11 }
 0xbe7   :  { %v1544_v0 = vpop.permute.xlu1 %1543 }
 0xbe8   :  { %v1549_v16 = vsel %vm282_vm2, %v1544_v0, 0 }
 0xbec   :  { %v2868_v59 = vpop.eup %2867 }
 0xbed   :  { %v1418_v60 = vsel %vm380_vm3, %v2868_v59, 0.0 }
 0xbee   :  { %v2870_v62 = vpop.eup %2869  ;;  %1419 = vadd.xlane.f32.xlu0 %v1418_v60 }
 0xbef   :  { %v1421_v63 = vsel %vm380_vm3, %v2870_v62, 0.0 }
 0xbf0   :  { %1422 = vadd.xlane.f32.xlu1 %v1421_v63 }
 0xc01   :  { %1541 = vrot.lane.b32.xlu1 %v3246_v15, %s3115_s10 }
 0xc04   :  { %1594 = vrot.lane.b32.xlu0 %v3252_v22, %s3114_s9 }
 0xc08   :  { %1592 = vrot.lane.b32.xlu0 %v3252_v22, %s3115_s10 }
 0xc68   :  { %v1414_v1 = vpop.xlane.xlu0 %1413 }
 0xc69   :  { %2871 = vrcp.f32 %v1414_v1 }
 0xc6a   :  { %v1417_v2 = vpop.xlane.xlu1 %1416 }
 0xc6b   :  { %2873 = vrcp.f32 %v1417_v2 }
 0xc73   :  { %v2872_v4 = vpop.eup %2871 }
 0xc74   :  { %v1428_v9 = vmul.f32 %v2872_v4, %v2864_v38 }
 0xc75   :  { %v2874_v7 = vpop.eup %2873 }
 0xc76   :  { %v1429_v13 = vmul.f32 %v2874_v7, %v2866_v41 }
 0xc78   :  { %v1432_v14 = vpack.c.bf16 %v1429_v13, %v1428_v9 }
 0xc7a   :  { %2658 = vmatmul.mubr.msk.bf16.vlgmr.msra.gmra.mrb[40].mxu1 %vm380_vm3, %v1432_v14 }
 0xc7b   :  { %2668 = vmatpush3.bf16.xpose.msra.mxu1 %v1549_v16  ;;  %v1420_v18 = vpop.xlane.xlu0 %1419  ;;  %2669 = vmatprep.mubr.msk.bf16.mxu1 %vm3105_vm1, %v3104_v11 }
 0xc7c   :  { %2875 = vrcp.f32 %v1420_v18  ;;  %2679 = vmatprep.subr.bf16.mxu1 %v3104_v11 }
 0xc7d   :  { %v1423_v20 = vpop.xlane.xlu1 %1422 }
 0xc7e   :  { %2877 = vrcp.f32 %v1423_v20 }
 0xc7f   :  { %v1595_v33 = vpop.permute.xlu0 %1594 }
 0xc80   :  { %v1600_v35 = vsel %vm282_vm2, %v1595_v33, 0 }
 0xc81   :  { %v1542_v24 = vpop.permute.xlu1 %1541 }
 0xc82   :  { %2670 = vmatmul.mubr.msk.bf16.vlgmr.msra.gmra.mrb[44].mxu1 %vm282_vm2, %v1542_v24 }
 0xc83   :  { %2681 = vmatprep.mubr.msk.bf16.mxu1 %vm3105_vm1, %v3104_v11  ;;  %v1593_v36 = vpop.permute.xlu0 %1592 }
 0xc86   :  { %v2876_v26 = vpop.eup %2875 }
 0xc87   :  { %v1430_v31 = vmul.f32 %v2876_v26, %v2868_v59 }
 0xc88   :  { %v2878_v28 = vpop.eup %2877 }
 0xc89   :  { %v1431_v32 = vmul.f32 %v2878_v28, %v2870_v62 }
 0xc8b   :  { %v1433_v34 = vpack.c.bf16 %v1431_v32, %v1430_v31 }
 0xc8d   :  { %2664 = vmatmul.mubr.msk.bf16.vlgmr.msra.gmra.mrb[40].mxu0 %vm380_vm3, %v1433_v34 }
 0xc8e   :  { %2674 = vmatpush3.bf16.xpose.msra.mxu0 %v1600_v35  ;;  %2675 = vmatprep.mubr.msk.bf16.mxu0 %vm3105_vm1, %v3104_v11 }
 0xc8f   :  { %2685 = vmatprep.subr.bf16.mxu0 %v3104_v11 }
 0xc95   :  { %2676 = vmatmul.mubr.msk.bf16.vlgmr.msra.gmra.mrb[44].mxu0 %vm282_vm2, %v1593_v36 }
 0xc96   :  { %2687 = vmatprep.mubr.msk.bf16.mxu0 %vm3105_vm1, %v3104_v11 }
 0xd4d   :  { %v3524_v37 = vpop.f32.mrb[40].mxu1 }
 0xd4e   :  { %v2659_v38 = vpop.f32.mrb[41].mxu1 }
 0xd4f   :  { %v3526_v39 = vpop.f32.mrb[42].mxu1 }
 0xd50   :  { %v1528_v41 = vpack.c.bf16 %v3526_v39, %v3524_v37  ;;  %v2660_v44 = vpop.f32.mrb[43].mxu1 }
 0xd55   :  { %v1585_v46 = vpop.f32.mrb[44].mxu1 }
 0xd56   :  { %v1586_v47 = vadd.f32 %v1585_v46, %v3274_v45  ;;  %v2671_v49 = vpop.f32.mrb[45].mxu1 }
 0xd57   :  { %v1588_v50 = vpop.f32.mrb[46].mxu1 }
 0xd58   :  { %v1589_v51 = vadd.f32 %v1588_v50, %v3276_v48  ;;  %v2672_v52 = vpop.f32.mrb[47].mxu1  ;;  %v1643_v53 = vsel %vm380_vm3, %v1586_v47, -inf }
 0xd59   :  { %1644 = vmax.xlane.f32.xlu1 %v1643_v53 }
 0xd5a   :  { %v1646_v55 = vsel %vm380_vm3, %v1589_v51, -inf }
 0xd5b   :  { %1647 = vmax.xlane.f32.xlu0 %v1646_v55 }
 0xd60   :  { %v3534_v59 = vpop.f32.mrb[40].mxu0 }
 0xd61   :  { %v2665_v60 = vpop.f32.mrb[41].mxu0 }
 0xd62   :  { %v3536_v62 = vpop.f32.mrb[42].mxu0 }
 0xd63   :  { %v1529_v63 = vpack.c.bf16 %v3536_v62, %v3534_v59  ;;  %v2666_v0 = vpop.f32.mrb[43].mxu0 }
 0xd68   :  { %v1636_v1 = vpop.f32.mrb[44].mxu0 }
 0xd69   :  { %v1637_v2 = vadd.f32 %v1636_v1, %v3281_v58  ;;  %v2677_v4 = vpop.f32.mrb[45].mxu0 }
 0xd6a   :  { %v1639_v7 = vpop.f32.mrb[46].mxu0 }
 0xd6b   :  { %v1640_v9 = vadd.f32 %v1639_v7, %v3284_v61  ;;  %v2678_v13 = vpop.f32.mrb[47].mxu0  ;;  %v1649_v14 = vsel %vm380_vm3, %v1637_v2, -inf }
 0xd6c   :  { %1650 = vmax.xlane.f32.xlu0 %v1649_v14 }
 0xd6d   :  { %v1652_v16 = vsel %vm380_vm3, %v1640_v9, -inf }
 0xd6e   :  { %1653 = vmax.xlane.f32.xlu1 %v1652_v16 }
 0xd7f   :  { %1736 = vrot.lane.b32.xlu1 %v3254_v25, %s3115_s10 }
 0xd82   :  { %1689 = vrot.lane.b32.xlu0 %v3248_v17, %s3115_s10 }
 0xd83   :  { %1798 = vrot.lane.b32.xlu1 %v3246_v15, %s3092_s7 }
 0xde6   :  { %v1645_v18 = vpop.xlane.xlu1 %1644 }
 0xde7   :  { %v1655_v20 = vsub.f32 %v1586_v47, %v1645_v18 }
 0xde8   :  { %v1648_v24 = vpop.xlane.xlu0 %1647 }
 0xde9   :  { %v1659_v26 = vmul.f32 1.442695, %v1655_v20  ;;  %v1656_v28 = vsub.f32 %v1589_v51, %v1648_v24 }
 0xdeb   :  { %2879 = vpow2.f32 %v1659_v26  ;;  %v1661_v31 = vmul.f32 1.442695, %v1656_v28 }
 0xded   :  { %2881 = vpow2.f32 %v1661_v31 }
 0xdf5   :  { %v2880_v32 = vpop.eup %2879 }
 0xdf6   :  { %v1667_v33 = vsel %vm380_vm3, %v2880_v32, 0.0 }
 0xdf7   :  { %v2882_v34 = vpop.eup %2881  ;;  %1668 = vadd.xlane.f32.xlu0 %v1667_v33 }
 0xdf8   :  { %v1670_v35 = vsel %vm380_vm3, %v2882_v34, 0.0 }
 0xdf9   :  { %v1651_v36 = vpop.xlane.xlu0 %1650  ;;  %1671 = vadd.xlane.f32.xlu1 %v1670_v35 }
 0xdfa   :  { %v1657_v38 = vsub.f32 %v1637_v2, %v1651_v36 }
 0xdfb   :  { %v1654_v44 = vpop.xlane.xlu1 %1653 }
 0xdfc   :  { %v1663_v46 = vmul.f32 1.442695, %v1657_v38  ;;  %v1658_v49 = vsub.f32 %v1640_v9, %v1654_v44 }
 0xdfd   :  { %v1690_v47 = vpop.permute.xlu0 %1689 }
 0xdfe   :  { %2883 = vpow2.f32 %v1663_v46  ;;  %v1665_v50 = vmul.f32 1.442695, %v1658_v49  ;;  %2680 = vmatpush3.bf16.msra.mxu1 %v1690_v47 }
 0xdff   :  { %v1737_v51 = vpop.permute.xlu1 %1736  ;;  %2691 = vmatprep.subr.bf16.mxu1 %v3104_v11 }
 0xe00   :  { %2885 = vpow2.f32 %v1665_v50  ;;  %2686 = vmatpush3.bf16.msra.mxu0 %v1737_v51 }
 0xe01   :  { %2697 = vmatprep.subr.bf16.mxu0 %v3104_v11 }
 0xe03   :  { %v1799_v0 = vpop.permute.xlu1 %1798 }
 0xe04   :  { %v1804_v16 = vsel %vm282_vm2, %v1799_v0, 0 }
 0xe08   :  { %v2884_v52 = vpop.eup %2883 }
 0xe09   :  { %v1673_v53 = vsel %vm380_vm3, %v2884_v52, 0.0 }
 0xe0a   :  { %v2886_v55 = vpop.eup %2885  ;;  %1674 = vadd.xlane.f32.xlu0 %v1673_v53 }
 0xe0b   :  { %v1676_v60 = vsel %vm380_vm3, %v2886_v55, 0.0 }
 0xe0c   :  { %1677 = vadd.xlane.f32.xlu1 %v1676_v60 }
 0xe1d   :  { %1796 = vrot.lane.b32.xlu1 %v3246_v15, %s3116_s3 }
 0xe20   :  { %1849 = vrot.lane.b32.xlu0 %v3252_v22, %s3092_s7 }
 0xe24   :  { %1847 = vrot.lane.b32.xlu0 %v3252_v22, %s3116_s3 }
 0xe84   :  { %v1669_v1 = vpop.xlane.xlu0 %1668 }
 0xe85   :  { %2887 = vrcp.f32 %v1669_v1 }
 0xe86   :  { %v1672_v2 = vpop.xlane.xlu1 %1671 }
 0xe87   :  { %2889 = vrcp.f32 %v1672_v2 }
 0xe8f   :  { %v2888_v4 = vpop.eup %2887 }
 0xe90   :  { %v1683_v9 = vmul.f32 %v2888_v4, %v2880_v32 }
 0xe91   :  { %v2890_v7 = vpop.eup %2889 }
 0xe92   :  { %v1684_v13 = vmul.f32 %v2890_v7, %v2882_v34 }
 0xe94   :  { %v1687_v14 = vpack.c.bf16 %v1684_v13, %v1683_v9 }
 0xe96   :  { %2682 = vmatmul.mubr.msk.bf16.vlgmr.msra.gmra.mrb[48].mxu1 %vm380_vm3, %v1687_v14 }
 0xe97   :  { %2692 = vmatpush3.bf16.xpose.msra.mxu1 %v1804_v16  ;;  %v1675_v18 = vpop.xlane.xlu0 %1674  ;;  %2693 = vmatprep.mubr.msk.bf16.mxu1 %vm3105_vm1, %v3104_v11 }
 0xe98   :  { %2891 = vrcp.f32 %v1675_v18  ;;  %2703 = vmatprep.subr.bf16.mxu1 %v3104_v11 }
 0xe99   :  { %v1678_v20 = vpop.xlane.xlu1 %1677 }
 0xe9a   :  { %2893 = vrcp.f32 %v1678_v20 }
 0xe9b   :  { %v1850_v33 = vpop.permute.xlu0 %1849 }
 0xe9c   :  { %v1855_v35 = vsel %vm282_vm2, %v1850_v33, 0 }
 0xe9d   :  { %v1797_v24 = vpop.permute.xlu1 %1796 }
 0xe9e   :  { %2694 = vmatmul.mubr.msk.bf16.vlgmr.msra.gmra.mrb[52].mxu1 %vm282_vm2, %v1797_v24 }
 0xe9f   :  { %2705 = vmatprep.mubr.msk.bf16.mxu1 %vm3105_vm1, %v3104_v11  ;;  %v1848_v36 = vpop.permute.xlu0 %1847 }
 0xea2   :  { %v2892_v26 = vpop.eup %2891 }
 0xea3   :  { %v1685_v31 = vmul.f32 %v2892_v26, %v2884_v52 }
 0xea4   :  { %v2894_v28 = vpop.eup %2893 }
 0xea5   :  { %v1686_v32 = vmul.f32 %v2894_v28, %v2886_v55 }
 0xea7   :  { %v1688_v34 = vpack.c.bf16 %v1686_v32, %v1685_v31 }
 0xea9   :  { %2688 = vmatmul.mubr.msk.bf16.vlgmr.msra.gmra.mrb[48].mxu0 %vm380_vm3, %v1688_v34 }
 0xeaa   :  { %2698 = vmatpush3.bf16.xpose.msra.mxu0 %v1855_v35  ;;  %2699 = vmatprep.mubr.msk.bf16.mxu0 %vm3105_vm1, %v3104_v11 }
 0xeab   :  { %2709 = vmatprep.subr.bf16.mxu0 %v3104_v11 }
 0xeb1   :  { %2700 = vmatmul.mubr.msk.bf16.vlgmr.msra.gmra.mrb[52].mxu0 %vm282_vm2, %v1848_v36 }
 0xeb2   :  { %2711 = vmatprep.mubr.msk.bf16.mxu0 %vm3105_vm1, %v3104_v11 }
 0xf69   :  { %v3578_v38 = vpop.f32.mrb[48].mxu1 }
 0xf6a   :  { %v2683_v44 = vpop.f32.mrb[49].mxu1 }
 0xf6b   :  { %v3580_v46 = vpop.f32.mrb[50].mxu1 }
 0xf6c   :  { %v1783_v49 = vpack.c.bf16 %v3580_v46, %v3578_v38  ;;  %v2684_v47 = vpop.f32.mrb[51].mxu1 }
 0xf71   :  { %v1840_v50 = vpop.f32.mrb[52].mxu1 }
 0xf72   :  { %v1841_v51 = vadd.f32 %v1840_v50, %v3274_v45  ;;  %v2695_v52 = vpop.f32.mrb[53].mxu1 }
 0xf73   :  { %v1843_v53 = vpop.f32.mrb[54].mxu1 }
 0xf74   :  { %v1844_v55 = vadd.f32 %v1843_v53, %v3276_v48  ;;  %v2696_v60 = vpop.f32.mrb[55].mxu1  ;;  %v1898_v0 = vsel %vm380_vm3, %v1841_v51, -inf }
 0xf75   :  { %1899 = vmax.xlane.f32.xlu1 %v1898_v0 }
 0xf76   :  { %v1901_v1 = vsel %vm380_vm3, %v1844_v55, -inf }
 0xf77   :  { %1902 = vmax.xlane.f32.xlu0 %v1901_v1 }
 0xf7c   :  { %v3588_v2 = vpop.f32.mrb[48].mxu0 }
 0xf7d   :  { %v2689_v4 = vpop.f32.mrb[49].mxu0 }
 0xf7e   :  { %v3590_v7 = vpop.f32.mrb[50].mxu0 }
 0xf7f   :  { %v1784_v9 = vpack.c.bf16 %v3590_v7, %v3588_v2  ;;  %v2690_v13 = vpop.f32.mrb[51].mxu0  ;;  %v2796_v2 = vld [vmem:[#allocation11 + $0x8] sm:$0xff]  }
 0xf84   :  { %v1891_v14 = vpop.f32.mrb[52].mxu0 }
 0xf85   :  { %v1892_v16 = vadd.f32 %v1891_v14, %v3281_v58  ;;  %v2701_v18 = vpop.f32.mrb[53].mxu0 }
 0xf86   :  { %v1894_v20 = vpop.f32.mrb[54].mxu0 }
 0xf87   :  { %v1895_v24 = vadd.f32 %v1894_v20, %v3284_v61  ;;  %v2702_v26 = vpop.f32.mrb[55].mxu0  ;;  %v1904_v28 = vsel %vm380_vm3, %v1892_v16, -inf }
 0xf88   :  { %1905 = vmax.xlane.f32.xlu0 %v1904_v28 }
 0xf89   :  { %v1907_v31 = vsel %vm380_vm3, %v1895_v24, -inf }
 0xf8a   :  { %1908 = vmax.xlane.f32.xlu1 %v1907_v31 }
 0xf9b   :  { %1991 = vrot.lane.b32.xlu1 %v3254_v25, %s3116_s3 }
 0xf9e   :  { %1944 = vrot.lane.b32.xlu0 %v3248_v17, %s3116_s3 }
 0xf9f   :  { %2053 = vrot.lane.b32.xlu1 %v3246_v15, %s3097_s23 }
0x1002   :  { %v1900_v32 = vpop.xlane.xlu1 %1899 }
0x1003   :  { %v1910_v33 = vsub.f32 %v1841_v51, %v1900_v32 }
0x1004   :  { %v1903_v34 = vpop.xlane.xlu0 %1902 }
0x1005   :  { %v1914_v35 = vmul.f32 1.442695, %v1910_v33  ;;  %v1911_v36 = vsub.f32 %v1844_v55, %v1903_v34 }
0x1007   :  { %2895 = vpow2.f32 %v1914_v35  ;;  %v1916_v44 = vmul.f32 1.442695, %v1911_v36 }
0x1009   :  { %2897 = vpow2.f32 %v1916_v44 }
0x1011   :  { %v2896_v47 = vpop.eup %2895 }
0x1012   :  { %v1922_v50 = vsel %vm380_vm3, %v2896_v47, 0.0 }
0x1013   :  { %v2898_v52 = vpop.eup %2897  ;;  %1923 = vadd.xlane.f32.xlu0 %v1922_v50 }
0x1014   :  { %v1925_v53 = vsel %vm380_vm3, %v2898_v52, 0.0 }
0x1015   :  { %v1906_v60 = vpop.xlane.xlu0 %1905  ;;  %1926 = vadd.xlane.f32.xlu1 %v1925_v53 }
0x1016   :  { %v1912_v0 = vsub.f32 %v1892_v16, %v1906_v60 }
0x1017   :  { %v1909_v1 = vpop.xlane.xlu1 %1908 }
0x1018   :  { %v1918_v4 = vmul.f32 1.442695, %v1912_v0  ;;  %v1913_v13 = vsub.f32 %v1895_v24, %v1909_v1 }
0x1019   :  { %v1945_v51 = vpop.permute.xlu0 %1944 }
0x101a   :  { %2899 = vpow2.f32 %v1918_v4  ;;  %v1920_v14 = vmul.f32 1.442695, %v1913_v13  ;;  %2704 = vmatpush3.bf16.msra.mxu1 %v1945_v51 }
0x101b   :  { %v1992_v55 = vpop.permute.xlu1 %1991  ;;  %2715 = vmatprep.subr.bf16.mxu1 %v3104_v11 }
0x101c   :  { %2901 = vpow2.f32 %v1920_v14  ;;  %2710 = vmatpush3.bf16.msra.mxu0 %v1992_v55 }
0x101d   :  { %2721 = vmatprep.subr.bf16.mxu0 %v3104_v11 }
0x101f   :  { %v2054_v24 = vpop.permute.xlu1 %2053 }
0x1020   :  { %v2059_v44 = vsel %vm282_vm2, %v2054_v24, 0 }
0x1024   :  { %v2900_v18 = vpop.eup %2899 }
0x1025   :  { %v1928_v20 = vsel %vm380_vm3, %v2900_v18, 0.0 }
0x1026   :  { %v2902_v26 = vpop.eup %2901  ;;  %1929 = vadd.xlane.f32.xlu0 %v1928_v20 }
0x1027   :  { %v1931_v16 = vsel %vm380_vm3, %v2902_v26, 0.0 }
0x1028   :  { %1932 = vadd.xlane.f32.xlu1 %v1931_v16 }
0x1039   :  { %2051 = vrot.lane.b32.xlu1 %v3246_v15, %s3117_s11 }
0x103c   :  { %2104 = vrot.lane.b32.xlu0 %v3252_v22, %s3097_s23 }
0x1040   :  { %2102 = vrot.lane.b32.xlu0 %v3252_v22, %s3117_s11 }
0x10a0   :  { %v1924_v28 = vpop.xlane.xlu0 %1923 }
0x10a1   :  { %2903 = vrcp.f32 %v1924_v28 }
0x10a2   :  { %v1927_v31 = vpop.xlane.xlu1 %1926 }
0x10a3   :  { %2905 = vrcp.f32 %v1927_v31 }
0x10ab   :  { %v2904_v32 = vpop.eup %2903 }
0x10ac   :  { %v1938_v34 = vmul.f32 %v2904_v32, %v2896_v47 }
0x10ad   :  { %v2906_v33 = vpop.eup %2905 }
0x10ae   :  { %v1939_v35 = vmul.f32 %v2906_v33, %v2898_v52 }
0x10b0   :  { %v1942_v36 = vpack.c.bf16 %v1939_v35, %v1938_v34 }
0x10b2   :  { %2706 = vmatmul.mubr.msk.bf16.vlgmr.msra.gmra.mrb[56].mxu1 %vm380_vm3, %v1942_v36 }
0x10b3   :  { %2716 = vmatpush3.bf16.xpose.msra.mxu1 %v2059_v44  ;;  %v1930_v15 = vpop.xlane.xlu0 %1929  ;;  %2717 = vmatprep.mubr.msk.bf16.mxu1 %vm3105_vm1, %v3104_v11 }
0x10b4   :  { %2907 = vrcp.f32 %v1930_v15  ;;  %2727 = vmatprep.subr.bf16.mxu1 %v3104_v11 }
0x10b5   :  { %v1933_v22 = vpop.xlane.xlu1 %1932 }
0x10b6   :  { %2909 = vrcp.f32 %v1933_v22 }
0x10b7   :  { %v2105_v0 = vpop.permute.xlu0 %2104 }
0x10b8   :  { %v2110_v4 = vsel %vm282_vm2, %v2105_v0, 0 }
0x10b9   :  { %v2052_v50 = vpop.permute.xlu1 %2051 }
0x10ba   :  { %2718 = vmatmul.mubr.msk.bf16.vlgmr.msra.gmra.mrb[60].mxu1 %vm282_vm2, %v2052_v50 }
0x10bb   :  { %2729 = vmatprep.mubr.msk.bf16.mxu1 %vm3105_vm1, %v3104_v11  ;;  %v2103_v13 = vpop.permute.xlu0 %2102 }
0x10be   :  { %v2908_v47 = vpop.eup %2907 }
0x10bf   :  { %v1940_v53 = vmul.f32 %v2908_v47, %v2900_v18 }
0x10c0   :  { %v2910_v52 = vpop.eup %2909 }
0x10c1   :  { %v1941_v60 = vmul.f32 %v2910_v52, %v2902_v26 }
0x10c3   :  { %v1943_v1 = vpack.c.bf16 %v1941_v60, %v1940_v53 }
0x10c5   :  { %2712 = vmatmul.mubr.msk.bf16.vlgmr.msra.gmra.mrb[56].mxu0 %vm380_vm3, %v1943_v1 }
0x10c6   :  { %2722 = vmatpush3.bf16.xpose.msra.mxu0 %v2110_v4  ;;  %2723 = vmatprep.mubr.msk.bf16.mxu0 %vm3105_vm1, %v3104_v11 }
0x10c7   :  { %2733 = vmatprep.subr.bf16.mxu0 %v3104_v11 }
0x10cd   :  { %2724 = vmatmul.mubr.msk.bf16.vlgmr.msra.gmra.mrb[60].mxu0 %vm282_vm2, %v2103_v13 }
0x10ce   :  { %2735 = vmatprep.mubr.msk.bf16.mxu0 %vm3105_vm1, %v3104_v11 }
0x1185   :  { %v3632_v51 = vpop.f32.mrb[56].mxu1 }
0x1186   :  { %v2707_v14 = vpop.f32.mrb[57].mxu1 }
0x1187   :  { %v3634_v55 = vpop.f32.mrb[58].mxu1 }
0x1188   :  { %v2038_v18 = vpack.c.bf16 %v3634_v55, %v3632_v51  ;;  %v2708_v20 = vpop.f32.mrb[59].mxu1  ;;  %v2797_v51 = vld [vmem:[#allocation11 + $0x10] sm:$0xff]  }
0x118d   :  { %v2095_v26 = vpop.f32.mrb[60].mxu1 }
0x118e   :  { %v2096_v16 = vadd.f32 %v2095_v26, %v3274_v45  ;;  %v2719_v24 = vpop.f32.mrb[61].mxu1 }
0x118f   :  { %v2098_v28 = vpop.f32.mrb[62].mxu1 }
0x1190   :  { %v2099_v31 = vadd.f32 %v2098_v28, %v3276_v48  ;;  %v2720_v32 = vpop.f32.mrb[63].mxu1  ;;  %v2153_v33 = vsel %vm380_vm3, %v2096_v16, -inf }
0x1191   :  { %2154 = vmax.xlane.f32.xlu1 %v2153_v33 }
0x1192   :  { %v2156_v11 = vsel %vm380_vm3, %v2099_v31, -inf }
0x1193   :  { %2157 = vmax.xlane.f32.xlu0 %v2156_v11 }
0x1198   :  { %v2031_v34 = vpop.f32.mrb[56].mxu0 }
0x1199   :  { %v2713_v35 = vpop.f32.mrb[57].mxu0 }
0x119a   :  { %v2034_v36 = vpop.f32.mrb[58].mxu0 }
0x119b   :  { %v2039_v44 = vpack.c.bf16 %v2034_v36, %v2031_v34  ;;  %v2714_v15 = vpop.f32.mrb[59].mxu0 }
0x11a0   :  { %v2146_v22 = vpop.f32.mrb[60].mxu0 }
0x11a1   :  { %v2147_v50 = vadd.f32 %v2146_v22, %v3281_v58  ;;  %v2725_v45 = vpop.f32.mrb[61].mxu0 }
0x11a2   :  { %v2149_v47 = vpop.f32.mrb[62].mxu0 }
0x11a3   :  { %v2150_v52 = vadd.f32 %v2149_v47, %v3284_v61  ;;  %v2726_v48 = vpop.f32.mrb[63].mxu0  ;;  %v2159_v53 = vsel %vm380_vm3, %v2147_v50, -inf }
0x11a4   :  { %2160 = vmax.xlane.f32.xlu0 %v2159_v53 }
0x11a5   :  { %v2162_v60 = vsel %vm380_vm3, %v2150_v52, -inf }
0x11a6   :  { %2163 = vmax.xlane.f32.xlu1 %v2162_v60 }
0x121e   :  { %v2155_v0 = vpop.xlane.xlu1 %2154 }
0x121f   :  { %v2165_v1 = vsub.f32 %v2096_v16, %v2155_v0 }
0x1220   :  { %v2158_v4 = vpop.xlane.xlu0 %2157 }
0x1221   :  { %v2169_v13 = vmul.f32 1.442695, %v2165_v1  ;;  %v2166_v14 = vsub.f32 %v2099_v31, %v2158_v4  ;;  %v2470_v4 = vld [vmem:[#allocation12] ss:$0 sm:$0xff] }
0x1223   :  { %2911 = vpow2.f32 %v2169_v13  ;;  %v2171_v20 = vmul.f32 1.442695, %v2166_v14 }
0x1225   :  { %2913 = vpow2.f32 %v2171_v20 }
0x122d   :  { %v2912_v58 = vpop.eup %2911 }
0x122e   :  { %v2177_v26 = vsel %vm380_vm3, %v2912_v58, 0.0 }
0x122f   :  { %v2914_v24 = vpop.eup %2913  ;;  %2178 = vadd.xlane.f32.xlu0 %v2177_v26 }
0x1230   :  { %v2180_v61 = vsel %vm380_vm3, %v2914_v24, 0.0 }
0x1231   :  { %v2161_v28 = vpop.xlane.xlu0 %2160  ;;  %2181 = vadd.xlane.f32.xlu1 %v2180_v61 }
0x1232   :  { %v2167_v32 = vsub.f32 %v2147_v50, %v2161_v28 }
0x1233   :  { %v2164_v33 = vpop.xlane.xlu1 %2163 }
0x1234   :  { %v2173_v11 = vmul.f32 1.442695, %v2167_v32  ;;  %v2168_v34 = vsub.f32 %v2150_v52, %v2164_v33 }
0x1236   :  { %2915 = vpow2.f32 %v2173_v11  ;;  %v2175_v16 = vmul.f32 1.442695, %v2168_v34 }
0x1238   :  { %2917 = vpow2.f32 %v2175_v16 }
0x1240   :  { %v2916_v31 = vpop.eup %2915 }
0x1241   :  { %v2183_v35 = vsel %vm380_vm3, %v2916_v31, 0.0 }
0x1242   :  { %v2918_v36 = vpop.eup %2917  ;;  %2184 = vadd.xlane.f32.xlu0 %v2183_v35 }
0x1243   :  { %v2186_v15 = vsel %vm380_vm3, %v2918_v36, 0.0 }
0x1244   :  { %2187 = vadd.xlane.f32.xlu1 %v2186_v15 }
0x1255   :  { %2246 = vrot.lane.b32.xlu1 %v3254_v25, %s3117_s11 }
0x1258   :  { %2199 = vrot.lane.b32.xlu0 %v3248_v17, %s3117_s11 }
0x1259   :  { %767 = vrot.lane.b32.xlu1 %v763_v6, %s3097_s23 }
0x125c   :  { %769 = vrot.lane.b32.xlu0 %v764_v23, %s3097_s23 }
0x125d   :  { %1022 = vrot.lane.b32.xlu1 %v1018_v30, %s3092_s7 }
0x1260   :  { %1024 = vrot.lane.b32.xlu0 %v1019_v43, %s3092_s7  ;;  %s3118_s7 = smov [#allocation14]  }
0x1261   :  { %1277 = vrot.lane.b32.xlu1 %v1273_v57, %s3114_s9  ;;  %s2411_s12 = sshll.u32 %s3118_s7, 4  ;;  %s2412_s12 = int_to_ptr.vmem [resolvable:$true] %s2411_s12 }
0x1262   :  { %s3059_s2 = scalar_lea.vmem %s2412_s12, 512  ;;  %p3064_p7 = scmp.lt.s32.totalorder %s2412_s12, %s2412_s12 }
0x1263   :  { %p3060_p6 = scmp.ne.s32.totalorder %s2412_s12, %s3059_s2  ;;  %p3065_p8 = scmp.lt.s32.totalorder %s3059_s2, %s3059_s2 }
0x1264   :  { %1279 = vrot.lane.b32.xlu0 %v1274_v12, %s3114_s9 }
0x1265   :  { %1532 = vrot.lane.b32.xlu1 %v1528_v41, %s3112_s30  ;;  %p3066_p9 = por %p3065_p8, %p3064_p7 }
0x1267   :  { %p3067_p10 = pnand %p3066_p9, %p3060_p6 }
0x1268   :  { %1534 = vrot.lane.b32.xlu0 %v1529_v63, %s3112_s30 }
0x1269   :  { %1787 = vrot.lane.b32.xlu1 %v1783_v49, %s3110_s28  ;;  %v2795_v49 = vld [vmem:[#allocation11] sm:$0xff]  }
0x126c   :  { %1789 = vrot.lane.b32.xlu0 %v1784_v9, %s3110_s28 }
0x126d   :  { %2042 = vrot.lane.b32.xlu1 %v2038_v18, %s3108_s26  ;;  %v2798_v18 = vld [vmem:[#allocation11 + $0x18] sm:$0xff]  }
0x1270   :  { %2044 = vrot.lane.b32.xlu0 %v2039_v44, %s3108_s26 }
0x12bc   :  { %v2179_v25 = vpop.xlane.xlu0 %2178 }
0x12be   :  { %v2182_v17 = vpop.xlane.xlu1 %2181 }
0x12bf   :  { %2919 = vrcp.f32 %v2182_v17 }
0x12c0   :  { %2921 = vrcp.f32 %v2179_v25 }
0x12c9   :  { %v2920_v3 = vpop.eup %2919 }
0x12ca   :  { %v2922_v6 = vpop.eup %2921  ;;  %v2194_v19 = vmul.f32 %v2920_v3, %v2914_v24 }
0x12cb   :  { %v2193_v23 = vmul.f32 %v2922_v6, %v2912_v58 }
0x12cd   :  { %v2197_v30 = vpack.c.bf16 %v2194_v19, %v2193_v23 }
0x12cf   :  { %v2185_v5 = vpop.xlane.xlu0 %2184 }
0x12d0   :  { %2923 = vrcp.f32 %v2185_v5 }
0x12d1   :  { %v2188_v21 = vpop.xlane.xlu1 %2187 }
0x12d2   :  { %2925 = vrcp.f32 %v2188_v21 }
0x12d3   :  { %v2200_v27 = vpop.permute.xlu0 %2199 }
0x12d4   :  { %2728 = vmatpush3.bf16.msra.mxu1 %v2200_v27 }
0x12d5   :  { %v2247_v29 = vpop.permute.xlu1 %2246  ;;  %2739 = vmatprep.subr.bf16.mxu1 %v2795_v49 }
0x12d6   :  { %2734 = vmatpush3.bf16.msra.mxu0 %v2247_v29 }
0x12d7   :  { %v770_v40 = vpop.permute.xlu0 %769  ;;  %2730 = vmatmul.mubr.msk.bf16.vlgmr.msra.gmra.mrb[64].mxu1 %vm380_vm3, %v2197_v30 }
0x12d8   :  { %775 = vst.msk [vmem:[#allocation2 + $0x8] sm:$0xff] %vm773_vm4, %v770_v40  ;;  %2740 = vmatpush3.bf16.msra.mxu1 %v2795_v49 }
0x12d9   :  { %v768_v42 = vpop.permute.xlu1 %767  ;;  %2741 = vmatprep.subr.bf16.mxu1 %v2796_v2 }
0x12da   :  { %v2924_v43 = vpop.eup %2923  ;;  %774 = vst.msk [vmem:[#allocation2] sm:$0xff] %vm773_vm4, %v768_v42 }
0x12db   :  { %v1025_v54 = vpop.permute.xlu0 %1024  ;;  %v2195_v57 = vmul.f32 %v2924_v43, %v2916_v31 }
0x12dc   :  { %v2926_v56 = vpop.eup %2925  ;;  %1030 = vst.msk [vmem:[#allocation2 + $0x8] sm:$0xff] %vm1028_vm5, %v1025_v54  ;;  %2742 = vmatpush3.bf16.msra.mxu1 %v2796_v2 }
0x12dd   :  { %v2196_v8 = vmul.f32 %v2926_v56, %v2918_v36  ;;  %v1023_v10 = vpop.permute.xlu1 %1022  ;;  %2743 = vmatprep.subr.bf16.mxu1 %v2797_v51 }
0x12de   :  { %1029 = vst.msk [vmem:[#allocation2] sm:$0xff] %vm1028_vm5, %v1023_v10 }
0x12df   :  { %v1280_v12 = vpop.permute.xlu0 %1279  ;;  %v2198_v37 = vpack.c.bf16 %v2196_v8, %v2195_v57 }
0x12e0   :  { %1285 = vst.msk [vmem:[#allocation2 + $0x8] sm:$0xff] %vm1283_vm6, %v1280_v12  ;;  %2744 = vmatpush3.bf16.msra.mxu1 %v2797_v51 }
0x12e1   :  { %2736 = vmatmul.mubr.msk.bf16.vlgmr.msra.gmra.mrb[64].mxu0 %vm380_vm3, %v2198_v37  ;;  %v1278_v39 = vpop.permute.xlu1 %1277  ;;  %2745 = vmatprep.subr.bf16.mxu1 %v2798_v18 }
0x12e2   :  { %1284 = vst.msk [vmem:[#allocation2] sm:$0xff] %vm1283_vm6, %v1278_v39 }
0x12e3   :  { %v1535_v41 = vpop.permute.xlu0 %1534 }
0x12e4   :  { %1540 = vst.msk [vmem:[#allocation2 + $0x8] sm:$0xff] %vm1538_vm7, %v1535_v41  ;;  %2746 = vmatpush3.bf16.msra.mxu1 %v2798_v18 }
0x12e5   :  { %v1533_v59 = vpop.permute.xlu1 %1532 }
0x12e6   :  { %1539 = vst.msk [vmem:[#allocation2] sm:$0xff] %vm1538_vm7, %v1533_v59 }
0x12e7   :  { %v1790_v62 = vpop.permute.xlu0 %1789 }
0x12e8   :  { %1795 = vst.msk [vmem:[#allocation2 + $0x8] sm:$0xff] %vm1793_vm8, %v1790_v62 }
0x12e9   :  { %v1788_v63 = vpop.permute.xlu1 %1787 }
0x12ea   :  { %1794 = vst.msk [vmem:[#allocation2] sm:$0xff] %vm1793_vm8, %v1788_v63 }
0x12eb   :  { %v2045_v38 = vpop.permute.xlu0 %2044 }
0x12ec   :  { %2050 = vst.msk [vmem:[#allocation2 + $0x8] sm:$0xff] %vm2048_vm9, %v2045_v38 }
0x12ed   :  { %v2043_v46 = vpop.permute.xlu1 %2042 }
0x12ee   :  { %2049 = vst.msk [vmem:[#allocation2] sm:$0xff] %vm2048_vm9, %v2043_v46 }
0x13aa   :  { %v2239_v7 = vpop.f32.mrb[64].mxu1 }
0x13ab   :  { %v2731_v9 = vpop.f32.mrb[65].mxu1 }
0x13ac   :  { %v2242_v55 = vpop.f32.mrb[66].mxu1 }
0x13ad   :  { %v2293_v44 = vpack.c.bf16 %v2242_v55, %v2239_v7  ;;  %v2732_v22 = vpop.f32.mrb[67].mxu1 }
0x13af   :  { %2297 = vrot.lane.b32.xlu1 %v2293_v44, %s3106_s5 }
0x13b4   :  { %v2286_v50 = vpop.f32.mrb[64].mxu0 }
0x13b5   :  { %v2737_v45 = vpop.f32.mrb[65].mxu0 }
0x13b6   :  { %v2289_v47 = vpop.f32.mrb[66].mxu0 }
0x13b7   :  { %v2294_v52 = vpack.c.bf16 %v2289_v47, %v2286_v50  ;;  %v2738_v48 = vpop.f32.mrb[67].mxu0 }
0x13b9   :  { %2299 = vrot.lane.b32.xlu0 %v2294_v52, %s3106_s5 }
0x1421   :  { %v2298_v53 = vpop.permute.xlu1 %2297 }
0x1422   :  { %2304 = vst.msk [vmem:[#allocation2] sm:$0xff] %vm2303_vm10, %v2298_v53 }
0x1429   :  { %v2306_v60 = vld [vmem:[#allocation2] sm:$0xff] }
0x142a   :  { %2747 = vmatprep.mubr.msk.bf16.mxu1 %vm167_vm0, %v2306_v60 }
0x142b   :  { %v2300_v0 = vpop.permute.xlu0 %2299 }
0x142c   :  { %2305 = vst.msk [vmem:[#allocation2 + $0x8] sm:$0xff] %vm2303_vm10, %v2300_v0 }
0x1433   :  { %v2307_v1 = vld [vmem:[#allocation2 + $0x8] sm:$0xff] }
0x1434   :  { %2748 = vmatmul.mubr.msk.bf16.vlgmr.msra.gmra.mrb[68].mxu1 %vm167_vm0, %v2307_v1 }
0x1507   :  { %v2749_v13 = vpop.f32.mrb[68].mxu1 }
0x1508   :  { %v2396_v14 = vadd.f32 %v2749_v13, %v2470_v4  ;;  %v2387_v20 = vpop.f32.mrb[69].mxu1 }
0x1509   :  { %v2388_v58 = vadd.f32 %v2470_v4, %v2387_v20  ;;  %v2750_v26 = vpop.f32.mrb[70].mxu1 }
0x150a   :  { %2404 = vst.msk [vmem:[#allocation14 + $0x10] sm:$0xff] %vm167_vm0, %v2396_v14  ;;  %v2399_v24 = vadd.f32 %v2750_v26, %v2470_v4  ;;  %v2390_v61 = vpop.f32.mrb[71].mxu1 }
0x150b   :  { %2402 = vst.msk [vmem:[#allocation14] sm:$0xff] %vm167_vm0, %v2388_v58  ;;  %v2391_v28 = vadd.f32 %v2470_v4, %v2390_v61 }
0x150c   :  { %2405 = vst.msk [vmem:[#allocation14 + $0x18] sm:$0xff] %vm167_vm0, %v2399_v24 }
0x150d   :  { %2403 = vst.msk [vmem:[#allocation14 + $0x8] sm:$0xff] %vm167_vm0, %v2391_v28 }
0x150e   :  { %3070 = shalt.err (!%p3067_p10)
}
0x150f   :  { %s3071_s16 = scalar_lea.hbm %s3730_s6, 512 }
0x1510   :  { %p3072_p11 = scmp.ne.s32.totalorder %s3730_s6, %s3071_s16  ;;  %p3075_p12 = scmp.lt.u32.totalorder %s3071_s16, %s3730_s6 }
0x1512   :  { %p3077_p13 = pnand %p3075_p12, %p3072_p11 }
0x1514   :  { %3080 = shalt.err (!%p3077_p13)
}
0x1515   :  { %2417 = dma.vmem_to_hbm [thread:$0]  %s2412_s12, 512, %s3730_s6, [#allocation5], %s3096_s22, %s3096_s22, %s3097_s23  }
0x1516   :  { %3089 = dma.done.wait [#allocation5], 512  }
0x1517   :  { %3090 = vsyncadd [#allocation5], 4294966784 }
0x1518   :  { %2421 = vsyncpa [#allocation4], 1 }
0x1519   :  { %2422 = vsyncpa [#allocation7], 1 }
0x151a   :  { %2423 = vsyncpa [#allocation10], 1 }
0x151b   :  { %2424 = vsyncpa [#allocation13], 1 }
0x151c   :  { %2425 = vsyncpa [#allocation5], 1 }

</bundles_post_ra>
